<compile_context>
chip_gen: v6e
topology: v6e:2x2x1
jax: 0.10.0
libtpu: 0.0.40
codegen_flags: <defaults>
</compile_context>

<pallas_src>
import jax
import jax.numpy as jnp
from jax.experimental import pallas as pl
from jax.experimental.pallas import tpu as pltpu

LEAKY_SLOPE = 0.01
LN_EPS = 1e-5
H1, H2, H3 = 256, 256, 128
LANES = 128


def _round_up(n, m):
    return ((n + m - 1) // m) * m


def _leaky_relu(v):
    return jnp.where(v >= 0, v, LEAKY_SLOPE * v)


def _layer_norm(v, gamma, beta):
    # Scale/shift form: normalize pass is a single fma per element.
    mu = jnp.mean(v, axis=-1, keepdims=True)
    var = jnp.maximum(jnp.mean(v * v, axis=-1, keepdims=True) - mu * mu, 0.0)
    s = gamma * jax.lax.rsqrt(var + LN_EPS)      # rsqrt -> EUP slot (has slack)
    t = beta - mu * s
    return v * s + t


def critic_kernel(x_ref, w1_ref, w2_ref, w3_ref, p256_ref, p128_ref, b4_ref,
                  out_ref):
    x = x_ref[...].astype(jnp.bfloat16)          # (TB, F)

    p256 = p256_ref[...]                         # (8, 256): b1,g1,be1,b2,g2,be2
    p128 = p128_ref[...]                         # (8, 128): b3,g3,be3,w4_row
    b1, g1, be1 = p256[0:1], p256[1:2], p256[2:3]
    b2, g2, be2 = p256[3:4], p256[4:5], p256[5:6]
    b3, g3, be3, w4 = p128[0:1], p128[1:2], p128[2:3], p128[3:4]

    # fc1 (bf16 MXU, f32 acc) -> leaky_relu -> layer_norm1 (dropout = identity)
    h = jnp.dot(x, w1_ref[...], preferred_element_type=jnp.float32) + b1
    h = _layer_norm(_leaky_relu(h), g1, be1)

    # fc2 -> leaky_relu -> layer_norm2
    h = jnp.dot(h.astype(jnp.bfloat16), w2_ref[...],
                preferred_element_type=jnp.float32) + b2
    h = _layer_norm(_leaky_relu(h), g2, be2)

    # fc3 -> leaky_relu -> layer_norm3
    h = jnp.dot(h.astype(jnp.bfloat16), w3_ref[...],
                preferred_element_type=jnp.float32) + b3
    h = _layer_norm(_leaky_relu(h), g3, be3)

    # v_out head (K=128, N=1): VPU multiply + lane reduction, no MXU matmul.
    v = jnp.sum(h * w4, axis=-1, keepdims=True) + b4_ref[0]   # (TB, 1)
    # Lane-dense relayout (sublane->lane, XLU has slack): (TB,1) -> (TB//128,128)
    tb = v.shape[0]
    out_ref[...] = v.reshape(tb // LANES, LANES)


def _choose_tile(batch):
    b = _round_up(batch, LANES)
    if b <= 256:
        return b                                 # one small tile
    # >= 2 tiles for v7x 2-TC sharding; cap at 1024 to amortize step overhead
    # while staying far below v5e's 16 MiB scoped-VMEM default.
    return min(1024, _round_up((b + 1) // 2, LANES))


def critic_forward(state, params, *, tb=None):
    """state: (B, feature_num) f32 -> (B, 1) f32."""
    (w1, w2, w3, p256, p128, b4) = params
    B, F = state.shape
    if tb is None:
        tb = _choose_tile(B)
    tb = _round_up(tb, LANES)
    B_pad = _round_up(B, tb)
    num_tiles = B_pad // tb
    tb_sub = tb // LANES

    # Zero-pad ONLY the batch dim (no feature padding).  Padded rows are
    # constant-per-column after the fc1 bias -> var >= 0 and rsqrt(var+eps)
    # stays finite; they are sliced away at the end.  NB: keep it that way if
    # LN eps / reductions are ever changed.
    x = state.astype(jnp.float32)
    if B_pad != B:
        x = jnp.pad(x, ((0, B_pad - B), (0, 0)))

    vmem_full = pl.BlockSpec(memory_space=pltpu.MemorySpace.VMEM)  # resident

    in_specs = [
        pl.BlockSpec((tb, F), lambda i: (i, 0)),             # streamed state tile
        vmem_full, vmem_full, vmem_full,                      # w1, w2, w3 (bf16)
        vmem_full, vmem_full,                                 # packed bias/LN rows
        pl.BlockSpec(memory_space=pltpu.MemorySpace.SMEM),    # b4 scalar
    ]
    # Lane-dense output: (num_tiles, tb//128, 128), reshaped to (B, 1) below.
    out_specs = pl.BlockSpec((None, tb_sub, LANES), lambda i: (i, 0, 0))

    flops = 2 * B_pad * (F * H1 + H1 * H2 + H2 * H3 + H3)
    bytes_accessed = (B_pad * F * 4 + B_pad * 4
                      + sum(int(p.size) * p.dtype.itemsize for p in params))
    cost = pl.CostEstimate(flops=flops, transcendentals=3 * B_pad,
                           bytes_accessed=bytes_accessed)

    out = pl.pallas_call(
        critic_kernel,
        grid=(num_tiles,),
        out_shape=jax.ShapeDtypeStruct((num_tiles, tb_sub, LANES), jnp.float32),
        in_specs=in_specs,
        out_specs=out_specs,
        compiler_params=pltpu.CompilerParams(
            dimension_semantics=("parallel",)),
        cost_estimate=cost,
    )(x, w1, w2, w3, p256, p128, b4)
    return out.reshape(B_pad, 1)[:B]


def init_critic_params(key, feature_num):
    """Init mimicking nn.Linear's U(-1/sqrt(fan_in), +1/sqrt(fan_in)).
    Matmul weights stored (in, out) in bf16; the eight (H,) bias / LayerNorm
    vectors and the v_out row are packed into two small f32 arrays; v_out bias
    is an SMEM scalar."""
    dims = [(feature_num, H1), (H1, H2), (H2, H3), (H3, 1)]
    keys = jax.random.split(key, 2 * len(dims))
    raw = []
    for idx, (fan_in, fan_out) in enumerate(dims):
        bound = 1.0 / (fan_in ** 0.5)
        w = jax.random.uniform(keys[2 * idx], (fan_in, fan_out),
                               minval=-bound, maxval=bound, dtype=jnp.float32)
        b = jax.random.uniform(keys[2 * idx + 1], (fan_out,),
                               minval=-bound, maxval=bound, dtype=jnp.float32)
        raw.append((w, b))
    (w1, b1), (w2, b2), (w3, b3), (w4, b4) = raw

    w1 = w1.astype(jnp.bfloat16)
    w2 = w2.astype(jnp.bfloat16)
    w3 = w3.astype(jnp.bfloat16)

    # Packed (8, 256): rows = [b1, gamma1, beta1, b2, gamma2, beta2, 0, 0]
    p256 = jnp.zeros((8, H1), jnp.float32)
    p256 = (p256.at[0].set(b1).at[1].set(jnp.ones((H1,), jnp.float32))
                 .at[2].set(jnp.zeros((H1,), jnp.float32))
                 .at[3].set(b2).at[4].set(jnp.ones((H1,), jnp.float32))
                 .at[5].set(jnp.zeros((H1,), jnp.float32)))
    # Packed (8, 128): rows = [b3, gamma3, beta3, w4_row, 0, ...]
    p128 = jnp.zeros((8, H3), jnp.float32)
    p128 = (p128.at[0].set(b3).at[1].set(jnp.ones((H3,), jnp.float32))
                 .at[2].set(jnp.zeros((H3,), jnp.float32))
                 .at[3].set(w4.reshape(-1)))
    b4 = b4.reshape(1)
    return (w1, w2, w3, p256, p128, b4)


def critic_reference(state, params):
    """Pure-JAX reference (same bf16-matmul / f32-LN recipe as the kernel)."""
    (w1, w2, w3, p256, p128, b4) = params
    b1, g1, be1 = p256[0:1], p256[1:2], p256[2:3]
    b2, g2, be2 = p256[3:4], p256[4:5], p256[5:6]
    b3, g3, be3, w4 = p128[0:1], p128[1:2], p128[2:3], p128[3:4]
    x = state.astype(jnp.bfloat16)
    h = _layer_norm(_leaky_relu(
        jnp.dot(x, w1, preferred_element_type=jnp.float32) + b1), g1, be1)
    h = _layer_norm(_leaky_relu(
        jnp.dot(h.astype(jnp.bfloat16), w2,
                preferred_element_type=jnp.float32) + b2), g2, be2)
    h = _layer_norm(_leaky_relu(
        jnp.dot(h.astype(jnp.bfloat16), w3,
                preferred_element_type=jnp.float32) + b3), g3, be3)
    return jnp.sum(h * w4, axis=-1, keepdims=True) + b4[0]


if __name__ == "__main__":
    key = jax.random.PRNGKey(0)
    k_state, k_params, k_state2 = jax.random.split(key, 3)

    feature_num = 32
    params = init_critic_params(k_params, feature_num)

    # Small case: one 128-row batch tile (batch padded up internally).
    state = jax.random.normal(k_state, (8, feature_num), dtype=jnp.float32)
    out = jax.block_until_ready(critic_forward(state, params))
    ref = critic_reference(state, params)
    assert out.shape == (8, 1)
    assert jnp.allclose(out, ref, atol=2e-2, rtol=2e-2)

    # Multi-tile case: exercises the adaptive batch grid (2 tiles) + padding.
    state2 = jax.random.normal(k_state2, (600, feature_num), dtype=jnp.float32)
    out2 = jax.block_until_ready(critic_forward(state2, params))
    ref2 = critic_reference(state2, params)
    assert out2.shape == (600, 1)
    assert jnp.allclose(out2, ref2, atol=2e-2, rtol=2e-2)

    print("KERNEL_OK")
</pallas_src>

<mosaic_0001>
module attributes {stable_mosaic.version = 11 : i64} {
  func.func @critic_kernel(%arg0: i32, %arg1: memref<128x32xf32, #tpu.memory_space<vmem>>, %arg2: memref<32x256xbf16, #tpu.memory_space<vmem>>, %arg3: memref<256x256xbf16, #tpu.memory_space<vmem>>, %arg4: memref<256x128xbf16, #tpu.memory_space<vmem>>, %arg5: memref<8x256xf32, #tpu.memory_space<vmem>>, %arg6: memref<8x128xf32, #tpu.memory_space<vmem>>, %arg7: memref<1xf32, #tpu.memory_space<smem>>, %arg8: memref<1x1x128xf32, #tpu.memory_space<vmem>>) attributes {dimension_semantics = [#tpu.dimension_semantics<parallel>], iteration_bounds = array<i64: 1>, scalar_prefetch = 0 : i64, scratch_operands = 0 : i64, tpu.core_type = #tpu.core_type<tc>, window_params = [{transform_indices = @transform_0, window_bounds = array<i64: 128, 32>}, {pipeline_mode = #tpu.pipeline_mode<synchronous>, transform_indices = @transform_1, window_bounds = array<i64: 32, 256>}, {pipeline_mode = #tpu.pipeline_mode<synchronous>, transform_indices = @transform_2, window_bounds = array<i64: 256, 256>}, {pipeline_mode = #tpu.pipeline_mode<synchronous>, transform_indices = @transform_3, window_bounds = array<i64: 256, 128>}, {pipeline_mode = #tpu.pipeline_mode<synchronous>, transform_indices = @transform_4, window_bounds = array<i64: 8, 256>}, {pipeline_mode = #tpu.pipeline_mode<synchronous>, transform_indices = @transform_5, window_bounds = array<i64: 8, 128>}, {transform_indices = @transform_6, window_bounds = array<i64: 1>}, {transform_indices = @transform_7, window_bounds = array<i64: 1, 1, 128>}]} {
    %c0 = arith.constant 0 : index
    %c0_0 = arith.constant 0 : index
    %0 = vector.load %arg1[%c0, %c0_0] : memref<128x32xf32, #tpu.memory_space<vmem>>, vector<128x32xf32>
    %1 = arith.truncf %0 : vector<128x32xf32> to vector<128x32xbf16>
    %c0_1 = arith.constant 0 : index
    %c0_2 = arith.constant 0 : index
    %2 = vector.load %arg5[%c0_1, %c0_2] : memref<8x256xf32, #tpu.memory_space<vmem>>, vector<8x256xf32>
    %c0_3 = arith.constant 0 : index
    %c0_4 = arith.constant 0 : index
    %3 = vector.load %arg6[%c0_3, %c0_4] : memref<8x128xf32, #tpu.memory_space<vmem>>, vector<8x128xf32>
    %4 = vector.extract_strided_slice %2 {offsets = [0, 0], sizes = [1, 256], strides = [1, 1]} : vector<8x256xf32> to vector<1x256xf32>
    %5 = vector.extract_strided_slice %2 {offsets = [1, 0], sizes = [1, 256], strides = [1, 1]} : vector<8x256xf32> to vector<1x256xf32>
    %6 = vector.extract_strided_slice %2 {offsets = [2, 0], sizes = [1, 256], strides = [1, 1]} : vector<8x256xf32> to vector<1x256xf32>
    %7 = vector.extract_strided_slice %2 {offsets = [3, 0], sizes = [1, 256], strides = [1, 1]} : vector<8x256xf32> to vector<1x256xf32>
    %8 = vector.extract_strided_slice %2 {offsets = [4, 0], sizes = [1, 256], strides = [1, 1]} : vector<8x256xf32> to vector<1x256xf32>
    %9 = vector.extract_strided_slice %2 {offsets = [5, 0], sizes = [1, 256], strides = [1, 1]} : vector<8x256xf32> to vector<1x256xf32>
    %10 = vector.extract_strided_slice %3 {offsets = [0, 0], sizes = [1, 128], strides = [1, 1]} : vector<8x128xf32> to vector<1x128xf32>
    %11 = vector.extract_strided_slice %3 {offsets = [1, 0], sizes = [1, 128], strides = [1, 1]} : vector<8x128xf32> to vector<1x128xf32>
    %12 = vector.extract_strided_slice %3 {offsets = [2, 0], sizes = [1, 128], strides = [1, 1]} : vector<8x128xf32> to vector<1x128xf32>
    %13 = vector.extract_strided_slice %3 {offsets = [3, 0], sizes = [1, 128], strides = [1, 1]} : vector<8x128xf32> to vector<1x128xf32>
    %c0_5 = arith.constant 0 : index
    %c0_6 = arith.constant 0 : index
    %14 = vector.load %arg2[%c0_5, %c0_6] : memref<32x256xbf16, #tpu.memory_space<vmem>>, vector<32x256xbf16>
    %cst = arith.constant dense<0.000000e+00> : vector<128x256xf32>
    %15 = tpu.matmul %1, %14, %cst {dimension_numbers = #tpu.dot_dimension_numbers<[1], [0], [0], [1], [0, 0, 1, 1], [], []>} : vector<128x32xbf16>, vector<32x256xbf16>, vector<128x256xf32> -> vector<128x256xf32>
    %16 = vector.broadcast %4 : vector<1x256xf32> to vector<128x256xf32>
    %17 = arith.addf %15, %16 : vector<128x256xf32>
    %cst_7 = arith.constant 0.000000e+00 : f32
    %18 = vector.broadcast %cst_7 : f32 to vector<128x256xf32>
    %19 = arith.cmpf oge, %17, %18 : vector<128x256xf32>
    %cst_8 = arith.constant 0.00999999977 : f32
    %20 = vector.broadcast %cst_8 : f32 to vector<128x256xf32>
    %21 = arith.mulf %20, %17 : vector<128x256xf32>
    %22 = arith.select %19, %17, %21 : vector<128x256xi1>, vector<128x256xf32>
    %cst_9 = arith.constant dense<0.000000e+00> : vector<128xf32>
    %23 = vector.multi_reduction <add>, %22, %cst_9 [1] : vector<128x256xf32> to vector<128xf32>
    %24 = vector.shape_cast %23 : vector<128xf32> to vector<128x1xf32>
    %cst_10 = arith.constant 2.560000e+02 : f32
    %25 = vector.broadcast %cst_10 : f32 to vector<128x1xf32>
    %26 = arith.divf %24, %25 : vector<128x1xf32>
    %27 = arith.mulf %22, %22 : vector<128x256xf32>
    %cst_11 = arith.constant dense<0.000000e+00> : vector<128xf32>
    %28 = vector.multi_reduction <add>, %27, %cst_11 [1] : vector<128x256xf32> to vector<128xf32>
    %29 = vector.shape_cast %28 : vector<128xf32> to vector<128x1xf32>
    %cst_12 = arith.constant 2.560000e+02 : f32
    %30 = vector.broadcast %cst_12 : f32 to vector<128x1xf32>
    %31 = arith.divf %29, %30 : vector<128x1xf32>
    %32 = arith.mulf %26, %26 : vector<128x1xf32>
    %33 = arith.subf %31, %32 : vector<128x1xf32>
    %cst_13 = arith.constant 0.000000e+00 : f32
    %34 = vector.broadcast %cst_13 : f32 to vector<128x1xf32>
    %35 = arith.maximumf %33, %34 : vector<128x1xf32>
    %cst_14 = arith.constant 9.99999974E-6 : f32
    %36 = vector.broadcast %cst_14 : f32 to vector<128x1xf32>
    %37 = arith.addf %35, %36 : vector<128x1xf32>
    %38 = math.rsqrt %37 : vector<128x1xf32>
    %39 = vector.broadcast %5 : vector<1x256xf32> to vector<128x256xf32>
    %40 = vector.broadcast %38 : vector<128x1xf32> to vector<128x256xf32>
    %41 = arith.mulf %39, %40 : vector<128x256xf32>
    %42 = vector.broadcast %26 : vector<128x1xf32> to vector<128x256xf32>
    %43 = arith.mulf %42, %41 : vector<128x256xf32>
    %44 = vector.broadcast %6 : vector<1x256xf32> to vector<128x256xf32>
    %45 = arith.subf %44, %43 : vector<128x256xf32>
    %46 = arith.mulf %22, %41 : vector<128x256xf32>
    %47 = arith.addf %46, %45 : vector<128x256xf32>
    %48 = arith.truncf %47 : vector<128x256xf32> to vector<128x256xbf16>
    %c0_15 = arith.constant 0 : index
    %c0_16 = arith.constant 0 : index
    %49 = vector.load %arg3[%c0_15, %c0_16] : memref<256x256xbf16, #tpu.memory_space<vmem>>, vector<256x256xbf16>
    %cst_17 = arith.constant dense<0.000000e+00> : vector<128x256xf32>
    %50 = tpu.matmul %48, %49, %cst_17 {dimension_numbers = #tpu.dot_dimension_numbers<[1], [0], [0], [1], [0, 0, 1, 1], [], []>} : vector<128x256xbf16>, vector<256x256xbf16>, vector<128x256xf32> -> vector<128x256xf32>
    %51 = vector.broadcast %7 : vector<1x256xf32> to vector<128x256xf32>
    %52 = arith.addf %50, %51 : vector<128x256xf32>
    %cst_18 = arith.constant 0.000000e+00 : f32
    %53 = vector.broadcast %cst_18 : f32 to vector<128x256xf32>
    %54 = arith.cmpf oge, %52, %53 : vector<128x256xf32>
    %cst_19 = arith.constant 0.00999999977 : f32
    %55 = vector.broadcast %cst_19 : f32 to vector<128x256xf32>
    %56 = arith.mulf %55, %52 : vector<128x256xf32>
    %57 = arith.select %54, %52, %56 : vector<128x256xi1>, vector<128x256xf32>
    %cst_20 = arith.constant dense<0.000000e+00> : vector<128xf32>
    %58 = vector.multi_reduction <add>, %57, %cst_20 [1] : vector<128x256xf32> to vector<128xf32>
    %59 = vector.shape_cast %58 : vector<128xf32> to vector<128x1xf32>
    %cst_21 = arith.constant 2.560000e+02 : f32
    %60 = vector.broadcast %cst_21 : f32 to vector<128x1xf32>
    %61 = arith.divf %59, %60 : vector<128x1xf32>
    %62 = arith.mulf %57, %57 : vector<128x256xf32>
    %cst_22 = arith.constant dense<0.000000e+00> : vector<128xf32>
    %63 = vector.multi_reduction <add>, %62, %cst_22 [1] : vector<128x256xf32> to vector<128xf32>
    %64 = vector.shape_cast %63 : vector<128xf32> to vector<128x1xf32>
    %cst_23 = arith.constant 2.560000e+02 : f32
    %65 = vector.broadcast %cst_23 : f32 to vector<128x1xf32>
    %66 = arith.divf %64, %65 : vector<128x1xf32>
    %67 = arith.mulf %61, %61 : vector<128x1xf32>
    %68 = arith.subf %66, %67 : vector<128x1xf32>
    %cst_24 = arith.constant 0.000000e+00 : f32
    %69 = vector.broadcast %cst_24 : f32 to vector<128x1xf32>
    %70 = arith.maximumf %68, %69 : vector<128x1xf32>
    %cst_25 = arith.constant 9.99999974E-6 : f32
    %71 = vector.broadcast %cst_25 : f32 to vector<128x1xf32>
    %72 = arith.addf %70, %71 : vector<128x1xf32>
    %73 = math.rsqrt %72 : vector<128x1xf32>
    %74 = vector.broadcast %8 : vector<1x256xf32> to vector<128x256xf32>
    %75 = vector.broadcast %73 : vector<128x1xf32> to vector<128x256xf32>
    %76 = arith.mulf %74, %75 : vector<128x256xf32>
    %77 = vector.broadcast %61 : vector<128x1xf32> to vector<128x256xf32>
    %78 = arith.mulf %77, %76 : vector<128x256xf32>
    %79 = vector.broadcast %9 : vector<1x256xf32> to vector<128x256xf32>
    %80 = arith.subf %79, %78 : vector<128x256xf32>
    %81 = arith.mulf %57, %76 : vector<128x256xf32>
    %82 = arith.addf %81, %80 : vector<128x256xf32>
    %83 = arith.truncf %82 : vector<128x256xf32> to vector<128x256xbf16>
    %c0_26 = arith.constant 0 : index
    %c0_27 = arith.constant 0 : index
    %84 = vector.load %arg4[%c0_26, %c0_27] : memref<256x128xbf16, #tpu.memory_space<vmem>>, vector<256x128xbf16>
    %cst_28 = arith.constant dense<0.000000e+00> : vector<128x128xf32>
    %85 = tpu.matmul %83, %84, %cst_28 {dimension_numbers = #tpu.dot_dimension_numbers<[1], [0], [0], [1], [0, 0, 1, 1], [], []>} : vector<128x256xbf16>, vector<256x128xbf16>, vector<128x128xf32> -> vector<128x128xf32>
    %86 = vector.broadcast %10 : vector<1x128xf32> to vector<128x128xf32>
    %87 = arith.addf %85, %86 : vector<128x128xf32>
    %cst_29 = arith.constant 0.000000e+00 : f32
    %88 = vector.broadcast %cst_29 : f32 to vector<128x128xf32>
    %89 = arith.cmpf oge, %87, %88 : vector<128x128xf32>
    %cst_30 = arith.constant 0.00999999977 : f32
    %90 = vector.broadcast %cst_30 : f32 to vector<128x128xf32>
    %91 = arith.mulf %90, %87 : vector<128x128xf32>
    %92 = arith.select %89, %87, %91 : vector<128x128xi1>, vector<128x128xf32>
    %cst_31 = arith.constant dense<0.000000e+00> : vector<128xf32>
    %93 = vector.multi_reduction <add>, %92, %cst_31 [1] : vector<128x128xf32> to vector<128xf32>
    %94 = vector.shape_cast %93 : vector<128xf32> to vector<128x1xf32>
    %cst_32 = arith.constant 1.280000e+02 : f32
    %95 = vector.broadcast %cst_32 : f32 to vector<128x1xf32>
    %96 = arith.divf %94, %95 : vector<128x1xf32>
    %97 = arith.mulf %92, %92 : vector<128x128xf32>
    %cst_33 = arith.constant dense<0.000000e+00> : vector<128xf32>
    %98 = vector.multi_reduction <add>, %97, %cst_33 [1] : vector<128x128xf32> to vector<128xf32>
    %99 = vector.shape_cast %98 : vector<128xf32> to vector<128x1xf32>
    %cst_34 = arith.constant 1.280000e+02 : f32
    %100 = vector.broadcast %cst_34 : f32 to vector<128x1xf32>
    %101 = arith.divf %99, %100 : vector<128x1xf32>
    %102 = arith.mulf %96, %96 : vector<128x1xf32>
    %103 = arith.subf %101, %102 : vector<128x1xf32>
    %cst_35 = arith.constant 0.000000e+00 : f32
    %104 = vector.broadcast %cst_35 : f32 to vector<128x1xf32>
    %105 = arith.maximumf %103, %104 : vector<128x1xf32>
    %cst_36 = arith.constant 9.99999974E-6 : f32
    %106 = vector.broadcast %cst_36 : f32 to vector<128x1xf32>
    %107 = arith.addf %105, %106 : vector<128x1xf32>
    %108 = math.rsqrt %107 : vector<128x1xf32>
    %109 = vector.broadcast %11 : vector<1x128xf32> to vector<128x128xf32>
    %110 = vector.broadcast %108 : vector<128x1xf32> to vector<128x128xf32>
    %111 = arith.mulf %109, %110 : vector<128x128xf32>
    %112 = vector.broadcast %96 : vector<128x1xf32> to vector<128x128xf32>
    %113 = arith.mulf %112, %111 : vector<128x128xf32>
    %114 = vector.broadcast %12 : vector<1x128xf32> to vector<128x128xf32>
    %115 = arith.subf %114, %113 : vector<128x128xf32>
    %116 = arith.mulf %92, %111 : vector<128x128xf32>
    %117 = arith.addf %116, %115 : vector<128x128xf32>
    %118 = vector.broadcast %13 : vector<1x128xf32> to vector<128x128xf32>
    %119 = arith.mulf %117, %118 : vector<128x128xf32>
    %cst_37 = arith.constant dense<0.000000e+00> : vector<128xf32>
    %120 = vector.multi_reduction <add>, %119, %cst_37 [1] : vector<128x128xf32> to vector<128xf32>
    %121 = vector.shape_cast %120 : vector<128xf32> to vector<128x1xf32>
    %c0_38 = arith.constant 0 : index
    %122 = memref.load %arg7[%c0_38] : memref<1xf32, #tpu.memory_space<smem>>
    %123 = vector.broadcast %122 : f32 to vector<128x1xf32>
    %124 = arith.addf %121, %123 : vector<128x1xf32>
    %125 = vector.shape_cast %124 : vector<128x1xf32> to vector<1x128xf32>
    %c0_39 = arith.constant 0 : index
    %c0_40 = arith.constant 0 : index
    %c0_41 = arith.constant 0 : index
    %126 = vector.load %arg8[%c0_39, %c0_40, %c0_41] : memref<1x1x128xf32, #tpu.memory_space<vmem>>, vector<1x1x128xf32>
    %127 = vector.shape_cast %126 : vector<1x1x128xf32> to vector<1x128xf32>
    %128 = vector.shape_cast %125 : vector<1x128xf32> to vector<1x1x128xf32>
    tpu.vector_store %arg8[%c0_39, %c0_40, %c0_41], %128 {strides = array<i32>} : memref<1x1x128xf32, #tpu.memory_space<vmem>>, vector<1x1x128xf32>,
    return
  }
  func.func @transform_0(%arg0: i32) -> (i32, i32) {
    %c0_i32 = arith.constant 0 : i32
    %c0_i32_0 = arith.constant 0 : i32
    return %arg0, %c0_i32 : i32, i32
  }
  func.func @transform_1(%arg0: i32) -> (i32, i32) {
    %c0_i32 = arith.constant 0 : i32
    %c0_i32_0 = arith.constant 0 : i32
    %c0_i32_1 = arith.constant 0 : i32
    return %c0_i32, %c0_i32_0 : i32, i32
  }
  func.func @transform_2(%arg0: i32) -> (i32, i32) {
    %c0_i32 = arith.constant 0 : i32
    %c0_i32_0 = arith.constant 0 : i32
    %c0_i32_1 = arith.constant 0 : i32
    return %c0_i32, %c0_i32_0 : i32, i32
  }
  func.func @transform_3(%arg0: i32) -> (i32, i32) {
    %c0_i32 = arith.constant 0 : i32
    %c0_i32_0 = arith.constant 0 : i32
    %c0_i32_1 = arith.constant 0 : i32
    return %c0_i32, %c0_i32_0 : i32, i32
  }
  func.func @transform_4(%arg0: i32) -> (i32, i32) {
    %c0_i32 = arith.constant 0 : i32
    %c0_i32_0 = arith.constant 0 : i32
    %c0_i32_1 = arith.constant 0 : i32
    return %c0_i32, %c0_i32_0 : i32, i32
  }
  func.func @transform_5(%arg0: i32) -> (i32, i32) {
    %c0_i32 = arith.constant 0 : i32
    %c0_i32_0 = arith.constant 0 : i32
    %c0_i32_1 = arith.constant 0 : i32
    return %c0_i32, %c0_i32_0 : i32, i32
  }
  func.func @transform_6(%arg0: i32) -> i32 {
    %c0_i32 = arith.constant 0 : i32
    %c0_i32_0 = arith.constant 0 : i32
    return %c0_i32 : i32
  }
  func.func @transform_7(%arg0: i32) -> (i32, i32, i32) {
    %c0_i32 = arith.constant 0 : i32
    %c0_i32_0 = arith.constant 0 : i32
    %c0_i32_1 = arith.constant 0 : i32
    return %arg0, %c0_i32, %c0_i32_0 : i32, i32, i32
  }
}

</mosaic_0001>

<bundles_post_ra>
// kernel: tpu_custom_call.1
= control target key start
LH: loop header
LB: loop body
LE: loop exit
PB: predicated region body
PF: predicated region fallthrough
CT: control target
= control target key end

     0   :  { %13 = vsyncpa [#allocation4], 0  ;;  %s4088_s0 = inlined_call_operand.vmem [shape: f32[128,32], index: 0, kind: input, shape index: {}]   ;;  %s4089_s1 = inlined_call_operand.vmem [shape: bf16[32,256], index: 1, kind: input, shape index: {}]   ;;  %s4090_s2 = inlined_call_operand.hbm [shape: bf16[256,256], index: 2, kind: input, shape index: {}]   ;;  %s4091_s3 = inlined_call_operand.vmem [shape: bf16[256,128], index: 3, kind: input, shape index: {}]   ;;  %s4092_s4 = inlined_call_operand.hbm [shape: f32[8,256], index: 4, kind: input, shape index: {}]   ;;  %s4093_s5 = inlined_call_operand.vmem [shape: f32[8,128], index: 5, kind: input, shape index: {}]   ;;  %s4094_s6 = inlined_call_operand.<no memory space> [shape: f32[1], index: 6, kind: input, shape index: {}]   ;;  %s4095_s7 = inlined_call_operand.hbm [shape: f32[1,1,128], index: 7, kind: output, shape index: {}]  }
   0x1   :  { %14 = vsyncpa [#allocation7], 0 }
   0x2   :  { %15 = vsyncpa [#allocation5], 0  ;;  %s2759_s24 = smov [#allocation3]  }
   0x3   :  { %s25_s25 = sshll.u32 %s2759_s24, 4  ;;  %s26_s25 = int_to_ptr.vmem [resolvable:$true] %s25_s25 }
   0x4   :  { %s2701_s26 = scalar_lea.vmem %s26_s25, 4096  ;;  %p2706_p1 = scmp.lt.s32.totalorder %s26_s25, %s26_s25 }
   0x5   :  { %p2702_p0 = scmp.ne.s32.totalorder %s26_s25, %s2701_s26  ;;  %p2707_p2 = scmp.lt.s32.totalorder %s2701_s26, %s2701_s26 }
   0x7   :  { %p2708_p3 = por %p2707_p2, %p2706_p1 }
   0x9   :  { %p2709_p4 = pnand %p2708_p3, %p2702_p0 }
   0xb   :  { %2712 = shalt.err (!%p2709_p4)
}
   0xc   :  { %s2760_s27 = smov 128   ;;  %s2761_s28 = smov 8  }
   0xd   :  { %31 = dma.hbm_to_vmem [thread:$0]  %s4090_s2, 4096, %s26_s25, [#allocation4], %s2760_s27, %s2760_s27, %s2761_s28  }
   0xe   :  { %s2762_s8 = smov [#allocation6]  }
   0xf   :  { %s40_s9 = sshll.u32 %s2762_s8, 4  ;;  %s41_s9 = int_to_ptr.vmem [resolvable:$true] %s40_s9 }
  0x10   :  { %s2721_s10 = scalar_lea.vmem %s41_s9, 256  ;;  %p2726_p6 = scmp.lt.s32.totalorder %s41_s9, %s41_s9 }
  0x11   :  { %p2722_p5 = scmp.ne.s32.totalorder %s41_s9, %s2721_s10  ;;  %p2727_p7 = scmp.lt.s32.totalorder %s2721_s10, %s2721_s10 }
  0x13   :  { %p2728_p8 = por %p2727_p7, %p2726_p6 }
  0x15   :  { %p2729_p9 = pnand %p2728_p8, %p2722_p5 }
  0x17   :  { %2732 = shalt.err (!%p2729_p9)
}
  0x18   :  { %43 = dma.hbm_to_vmem [thread:$0]  %s4092_s4, 256, %s41_s9, [#allocation7]  }
  0x19   :  { %2753 = dma.done.wait [#allocation4], 4096  }
  0x1a   :  { %2754 = vsyncadd [#allocation4], 4294963200 }
  0x1b   :  { %2755 = dma.done.wait [#allocation7], 256  }
  0x1c   :  { %2756 = vsyncadd [#allocation7], 4294967040  ;;  %v2763_v0 = vmov 0   ;;  %v2525_v1 = vld [vmem:[%s4089_s1 + $0x14] ss:$8 sps:$4 sm:$0xff]   ;;  %v55_v5 = vld [vmem:[%s4088_s0] sm:$0xff]  ;;  %v4096_v42 = vlaneseq }
  0x1d   :  { %171 = vmatprep.mubr.bf16.mxu0 %v2763_v0  ;;  %v2527_v2 = vld [vmem:[%s4089_s1 + $0x10] ss:$8 sps:$4 sm:$0xff]   ;;  %151 = vmatprep.subr.bf16.mxu0 %v2525_v1  ;;  %v2528_v3 = vld [vmem:[%s4089_s1 + $0x4] ss:$8 sps:$4 sm:$0xff]   ;;  %v2530_v4 = vld [vmem:[%s4089_s1] ss:$8 sps:$4 sm:$0xff]  }
  0x1e   :  { %152 = vmatpush1.bf16.msra.mxu0 %v2527_v2  ;;  %v56_v6 = vld [vmem:[%s4088_s0 + $0x8] sm:$0xff]  ;;  %vm114_vm0 = vcmask 261120   ;;  %v57_v8 = vld [vmem:[%s4088_s0 + $0x10] sm:$0xff]  ;;  %v58_v9 = vld [vmem:[%s4088_s0 + $0x18] sm:$0xff]  ;;  %v2880_v43 = vshrl.u32 %v4096_v42, 7 }
  0x1f   :  { %153 = vmatprep.subr.bf16.mxu0 %v2528_v3  ;;  %v71_v7 = vpack.c.bf16 %v56_v6, %v55_v5  ;;  %v72_v10 = vpack.c.bf16 %v58_v9, %v57_v8  ;;  %v59_v11 = vld [vmem:[%s4088_s0 + $0x20] sm:$0xff]  ;;  %v60_v12 = vld [vmem:[%s4088_s0 + $0x28] sm:$0xff]  ;;  %v61_v14 = vld [vmem:[%s4088_s0 + $0x30] sm:$0xff] }
  0x20   :  { %v73_v13 = vpack.c.bf16 %v60_v12, %v59_v11  ;;  %v62_v15 = vld [vmem:[%s4088_s0 + $0x38] sm:$0xff]  ;;  %v63_v17 = vld [vmem:[%s4088_s0 + $0x40] sm:$0xff]  ;;  %v64_v18 = vld [vmem:[%s4088_s0 + $0x48] sm:$0xff]  ;;  %4105 = vst [vmem:[#allocation12_spill] sm:$0xff] %v2880_v43  ;;  %v2883_v44 = vsub.s32 0, %v2880_v43 }
  0x21   :  { %v74_v16 = vpack.c.bf16 %v62_v15, %v61_v14  ;;  %v75_v19 = vpack.c.bf16 %v64_v18, %v63_v17  ;;  %v65_v20 = vld [vmem:[%s4088_s0 + $0x50] sm:$0xff]  ;;  %v66_v21 = vld [vmem:[%s4088_s0 + $0x58] sm:$0xff]  ;;  %v67_v23 = vld [vmem:[%s4088_s0 + $0x60] sm:$0xff] }
  0x22   :  { %154 = vmatpush1.bf16.msra.mxu0 %v2530_v4  ;;  %v76_v22 = vpack.c.bf16 %v66_v21, %v65_v20  ;;  %v68_v24 = vld [vmem:[%s4088_s0 + $0x68] sm:$0xff]  ;;  %v69_v26 = vld [vmem:[%s4088_s0 + $0x70] sm:$0xff]  ;;  %v70_v27 = vld [vmem:[%s4088_s0 + $0x78] sm:$0xff]  ;;  %4106 = vst [vmem:[#allocation13_spill] sm:$0xff] %v2883_v44 }
  0x23   :  { %v77_v25 = vpack.c.bf16 %v68_v24, %v67_v23  ;;  %v78_v28 = vpack.c.bf16 %v70_v27, %v69_v26  ;;  %v2531_v29 = vld [vmem:[#allocation3 + $0x74] ss:$8 sps:$4 sm:$0xff]   ;;  %v2533_v30 = vld [vmem:[#allocation3 + $0x70] ss:$8 sps:$4 sm:$0xff]   ;;  %v2534_v31 = vld [vmem:[#allocation3 + $0x64] ss:$8 sps:$4 sm:$0xff]  }
  0x24   :  { %981 = vmatprep.subr.bf16.mxu1 %v2531_v29  ;;  %v2536_v32 = vld [vmem:[#allocation3 + $0x60] ss:$8 sps:$4 sm:$0xff]   ;;  %v2537_v33 = vld [vmem:[#allocation3 + $0x54] ss:$8 sps:$4 sm:$0xff]   ;;  %v2539_v34 = vld [vmem:[#allocation3 + $0x50] ss:$8 sps:$4 sm:$0xff]  }
  0x25   :  { %2399 = vmatmul.mubr.msk.bf16.vlgmr.msra.gmra.mxu0 %vm114_vm0, %v71_v7  ;;  %982 = vmatpush1.bf16.msra.mxu1 %v2533_v30  ;;  %v2540_v35 = vld [vmem:[#allocation3 + $0x44] ss:$8 sps:$4 sm:$0xff]   ;;  %v2542_v36 = vld [vmem:[#allocation3 + $0x40] ss:$8 sps:$4 sm:$0xff]   ;;  %v2543_v37 = vld [vmem:[#allocation3 + $0x34] ss:$8 sps:$4 sm:$0xff]  }
  0x26   :  { %181 = vmatprep.mubr.bf16.mxu0 %v2763_v0  ;;  %983 = vmatprep.subr.bf16.mxu1 %v2534_v31  ;;  %v2545_v38 = vld [vmem:[#allocation3 + $0x30] ss:$8 sps:$4 sm:$0xff]   ;;  %v2546_v39 = vld [vmem:[#allocation3 + $0x24] ss:$8 sps:$4 sm:$0xff]   ;;  %v2548_v40 = vld [vmem:[#allocation3 + $0x20] ss:$8 sps:$4 sm:$0xff]  }
  0x27   :  { %v2549_v41 = vld [vmem:[#allocation3 + $0x14] ss:$8 sps:$4 sm:$0xff]   ;;  %v2885_v45 = vld [vmem:[#allocation6] sm:$0xff]  ;;  %v2887_v46 = vld [vmem:[#allocation6 + $0x8] sm:$0xff] }
  0x28   :  { %v2891_v47 = vrot.slane %v2885_v45, %v2883_v44  ;;  %v2895_v48 = vrot.slane %v2887_v46, %v2883_v44  ;;  %v2551_v29 = vld [vmem:[#allocation3 + $0x10] ss:$8 sps:$4 sm:$0xff]  }
  0x29   :  { %984 = vmatpush1.bf16.msra.mxu1 %v2536_v32 }
  0x2a   :  { %985 = vmatprep.subr.bf16.mxu1 %v2537_v33 }
  0x2d   :  { %2400 = vmatmul.mubr.msk.bf16.gmra.mxu0 %vm114_vm0, %v72_v10  ;;  %986 = vmatpush1.bf16.msra.mxu1 %v2539_v34 }
  0x2e   :  { %191 = vmatprep.mubr.bf16.mxu0 %v2763_v0  ;;  %987 = vmatprep.subr.bf16.mxu1 %v2540_v35 }
  0x31   :  { %988 = vmatpush1.bf16.msra.mxu1 %v2542_v36 }
  0x32   :  { %989 = vmatprep.subr.bf16.mxu1 %v2543_v37 }
  0x35   :  { %2401 = vmatmul.mubr.msk.bf16.gmra.mxu0 %vm114_vm0, %v73_v13  ;;  %990 = vmatpush1.bf16.msra.mxu1 %v2545_v38 }
  0x36   :  { %201 = vmatprep.mubr.bf16.mxu0 %v2763_v0  ;;  %991 = vmatprep.subr.bf16.mxu1 %v2546_v39 }
  0x39   :  { %992 = vmatpush1.bf16.msra.mxu1 %v2548_v40  ;;  %v2552_v40 = vld [vmem:[#allocation3 + $0x4] ss:$8 sps:$4 sm:$0xff]  }
  0x3a   :  { %993 = vmatprep.subr.bf16.mxu1 %v2549_v41 }
  0x3d   :  { %2402 = vmatmul.mubr.msk.bf16.gmra.mxu0 %vm114_vm0, %v74_v16  ;;  %994 = vmatpush1.bf16.msra.mxu1 %v2551_v29 }
  0x3e   :  { %211 = vmatprep.mubr.bf16.mxu0 %v2763_v0  ;;  %995 = vmatprep.subr.bf16.mxu1 %v2552_v40 }
  0x45   :  { %2403 = vmatmul.mubr.msk.bf16.gmra.mxu0 %vm114_vm0, %v75_v19 }
  0x46   :  { %221 = vmatprep.mubr.bf16.mxu0 %v2763_v0 }
  0x4d   :  { %2404 = vmatmul.mubr.msk.bf16.gmra.mxu0 %vm114_vm0, %v76_v22 }
  0x4e   :  { %231 = vmatprep.mubr.bf16.mxu0 %v2763_v0 }
  0x55   :  { %2405 = vmatmul.mubr.msk.bf16.gmra.mxu0 %vm114_vm0, %v77_v25 }
  0x56   :  { %241 = vmatprep.mubr.bf16.mxu0 %v2763_v0 }
  0x5d   :  { %2406 = vmatmul.mubr.msk.bf16.gmra.mxu0 %vm114_vm0, %v78_v28 }
  0xe5   :  { %v173_v49 = vpop.f32.mrf.mxu0 }
  0xe6   :  { %v174_v50 = vadd.f32 %v173_v49, %v2891_v47 }
  0xe7   :  { %v175_v51 = vpop.f32.mrf.mxu0 }
  0xe8   :  { %v284_v52 = vmul.f32 0.01, %v174_v50  ;;  %v176_v53 = vadd.f32 %v175_v51, %v2895_v48  ;;  %vm252_vm1 = vcmp.ge.f32.partialorder %v174_v50, 0.0 }
  0xe9   :  { %v177_v54 = vpop.f32.mrf.mxu0 }
  0xea   :  { %v285_v55 = vmul.f32 0.01, %v176_v53  ;;  %v178_v56 = vadd.f32 %v177_v54, %v2891_v47  ;;  %vm253_vm2 = vcmp.ge.f32.partialorder %v176_v53, 0.0  ;;  %v2900_v57 = vsel %vm252_vm1, %v174_v50, %v284_v52  ;;  %v2554_v50 = vld [vmem:[#allocation3] ss:$8 sps:$4 sm:$0xff]  }
  0xeb   :  { %v179_v58 = vpop.f32.mrf.mxu0  ;;  %v413_v0 = vmul.f32 %v2900_v57, %v2900_v57  ;;  %996 = vmatpush1.bf16.msra.mxu1 %v2554_v50 }
  0xec   :  { %vm254_vm3 = vcmp.ge.f32.partialorder %v178_v56, 0.0  ;;  %v286_v59 = vmul.f32 0.01, %v178_v56  ;;  %v180_v60 = vadd.f32 %v179_v58, %v2895_v48  ;;  %v2903_v61 = vsel %vm253_vm2, %v176_v53, %v285_v55 }
  0xed   :  { %v183_v62 = vpop.f32.mrf.mxu0  ;;  %v348_v63 = vadd.f32 %v2903_v61, %v2900_v57  ;;  %v414_v1 = vmul.f32 %v2903_v61, %v2903_v61 }
  0xee   :  { %vm255_vm4 = vcmp.ge.f32.partialorder %v180_v60, 0.0  ;;  %v287_v2 = vmul.f32 0.01, %v180_v60  ;;  %v184_v3 = vadd.f32 %v183_v62, %v2891_v47  ;;  %v2912_v4 = vsel %vm254_vm3, %v178_v56, %v286_v59 }
  0xef   :  { %v185_v5 = vpop.f32.mrf.mxu0  ;;  %349 = vadd.xlane.f32.xlu0 %v348_v63  ;;  %v445_v6 = vadd.f32 %v414_v1, %v413_v0  ;;  %v415_v12 = vmul.f32 %v2912_v4, %v2912_v4  ;;  %v2555_v63 = vld [vmem:[#allocation3 + $0xf4] ss:$8 sps:$4 sm:$0xff]  }
  0xf0   :  { %v288_v7 = vmul.f32 0.01, %v184_v3  ;;  %v186_v8 = vadd.f32 %v185_v5, %v2895_v48  ;;  %v2915_v9 = vsel %vm255_vm4, %v180_v60, %v287_v2  ;;  %vm256_vm5 = vcmp.ge.f32.partialorder %v184_v3, 0.0  ;;  %v2557_v2 = vld [vmem:[#allocation3 + $0xf0] ss:$8 sps:$4 sm:$0xff]   ;;  %997 = vmatprep.subr.bf16.mxu1 %v2555_v63 }
  0xf1   :  { %v187_v10 = vpop.f32.mrf.mxu0  ;;  %446 = vadd.xlane.f32.xlu1 %v445_v6  ;;  %v351_v11 = vadd.f32 %v2915_v9, %v2912_v4  ;;  %v416_v13 = vmul.f32 %v2915_v9, %v2915_v9  ;;  %998 = vmatpush2.bf16.msra.mxu1 %v2557_v2 }
  0xf2   :  { %vm257_vm6 = vcmp.ge.f32.partialorder %v186_v8, 0.0  ;;  %v289_v14 = vmul.f32 0.01, %v186_v8  ;;  %v188_v15 = vadd.f32 %v187_v10, %v2891_v47  ;;  %v2925_v20 = vsel %vm256_vm5, %v184_v3, %v288_v7 }
  0xf3   :  { %v189_v16 = vpop.f32.mrf.mxu0  ;;  %352 = vadd.xlane.f32.xlu0 %v351_v11  ;;  %v448_v17 = vadd.f32 %v416_v13, %v415_v12  ;;  %v417_v28 = vmul.f32 %v2925_v20, %v2925_v20 }
  0xf4   :  { %v290_v18 = vmul.f32 0.01, %v188_v15  ;;  %v190_v19 = vadd.f32 %v189_v16, %v2895_v48  ;;  %v2927_v21 = vsel %vm257_vm6, %v186_v8, %v289_v14  ;;  %vm258_vm7 = vcmp.ge.f32.partialorder %v188_v15, 0.0 }
  0xf5   :  { %v193_v22 = vpop.f32.mrf.mxu0  ;;  %449 = vadd.xlane.f32.xlu1 %v448_v17  ;;  %v354_v23 = vadd.f32 %v2927_v21, %v2925_v20  ;;  %v418_v24 = vmul.f32 %v2927_v21, %v2927_v21 }
  0xf6   :  { %vm259_vm8 = vcmp.ge.f32.partialorder %v190_v19, 0.0  ;;  %v291_v25 = vmul.f32 0.01, %v190_v19  ;;  %v194_v26 = vadd.f32 %v193_v22, %v2891_v47  ;;  %v2937_v32 = vsel %vm258_vm7, %v188_v15, %v290_v18  ;;  %v2558_v15 = vld [vmem:[#allocation3 + $0xe4] ss:$8 sps:$4 sm:$0xff]  }
  0xf7   :  { %v195_v27 = vpop.f32.mrf.mxu0  ;;  %355 = vadd.xlane.f32.xlu0 %v354_v23  ;;  %v451_v36 = vadd.f32 %v418_v24, %v417_v28  ;;  %v419_v49 = vmul.f32 %v2937_v32, %v2937_v32  ;;  %v2560_v18 = vld [vmem:[#allocation3 + $0xe0] ss:$8 sps:$4 sm:$0xff]   ;;  %999 = vmatprep.subr.bf16.mxu1 %v2558_v15  ;;  %v2569_v15 = vld [vmem:[#allocation3 + $0xb0] ss:$8 sps:$4 sm:$0xff]  }
  0xf8   :  { %v292_v30 = vmul.f32 0.01, %v194_v26  ;;  %v196_v31 = vadd.f32 %v195_v27, %v2895_v48  ;;  %v2939_v33 = vsel %vm259_vm8, %v190_v19, %v291_v25  ;;  %vm260_vm9 = vcmp.ge.f32.partialorder %v194_v26, 0.0  ;;  %1000 = vmatpush2.bf16.msra.mxu1 %v2560_v18 }
  0xf9   :  { %v197_v34 = vpop.f32.mrf.mxu0  ;;  %v357_v35 = vadd.f32 %v2939_v33, %v2937_v32  ;;  %v420_v37 = vmul.f32 %v2939_v33, %v2939_v33 }
  0xfa   :  { %vm261_vm10 = vcmp.ge.f32.partialorder %v196_v31, 0.0  ;;  %v293_v38 = vmul.f32 0.01, %v196_v31  ;;  %v198_v39 = vadd.f32 %v197_v34, %v2891_v47  ;;  %v2950_v53 = vsel %vm260_vm9, %v194_v26, %v292_v30 }
  0xfb   :  { %v199_v41 = vpop.f32.mrf.mxu0  ;;  %358 = vadd.xlane.f32.xlu1 %v357_v35  ;;  %452 = vadd.xlane.f32.xlu0 %v451_v36  ;;  %v454_v56 = vadd.f32 %v420_v37, %v419_v49  ;;  %v421_v1 = vmul.f32 %v2950_v53, %v2950_v53  ;;  %v2563_v36 = vld [vmem:[#allocation3 + $0xd0] ss:$8 sps:$4 sm:$0xff]  }
  0xfc   :  { %v294_v51 = vmul.f32 0.01, %v198_v39  ;;  %v200_v52 = vadd.f32 %v199_v41, %v2895_v48  ;;  %v2952_v54 = vsel %vm261_vm10, %v196_v31, %v293_v38  ;;  %vm262_vm11 = vcmp.ge.f32.partialorder %v198_v39, 0.0  ;;  %v2561_v31 = vld [vmem:[#allocation3 + $0xd4] ss:$8 sps:$4 sm:$0xff]  }
  0xfd   :  { %v203_v55 = vpop.f32.mrf.mxu0  ;;  %v360_v58 = vadd.f32 %v2952_v54, %v2950_v53  ;;  %v422_v59 = vmul.f32 %v2952_v54, %v2952_v54  ;;  %1001 = vmatprep.subr.bf16.mxu1 %v2561_v31 }
  0xfe   :  { %vm263_vm12 = vcmp.ge.f32.partialorder %v200_v52, 0.0  ;;  %v295_v60 = vmul.f32 0.01, %v200_v52  ;;  %v204_v62 = vadd.f32 %v203_v55, %v2891_v47  ;;  %v2963_v6 = vsel %vm262_vm11, %v198_v39, %v294_v51  ;;  %1002 = vmatpush2.bf16.msra.mxu1 %v2563_v36 }
  0xff   :  { %v205_v0 = vpop.f32.mrf.mxu0  ;;  %455 = vadd.xlane.f32.xlu1 %v454_v56  ;;  %361 = vadd.xlane.f32.xlu0 %v360_v58  ;;  %v457_v11 = vadd.f32 %v422_v59, %v421_v1  ;;  %v423_v17 = vmul.f32 %v2963_v6, %v2963_v6  ;;  %v2564_v56 = vld [vmem:[#allocation3 + $0xc4] ss:$8 sps:$4 sm:$0xff]  }
 0x100   :  { %v296_v3 = vmul.f32 0.01, %v204_v62  ;;  %v206_v5 = vadd.f32 %v205_v0, %v2895_v48  ;;  %v2965_v7 = vsel %vm263_vm12, %v200_v52, %v295_v60  ;;  %vm264_vm13 = vcmp.ge.f32.partialorder %v204_v62, 0.0  ;;  %v2566_v60 = vld [vmem:[#allocation3 + $0xc0] ss:$8 sps:$4 sm:$0xff]   ;;  %1003 = vmatprep.subr.bf16.mxu1 %v2564_v56 }
 0x101   :  { %v207_v8 = vpop.f32.mrf.mxu0  ;;  %v363_v10 = vadd.f32 %v2965_v7, %v2963_v6  ;;  %v424_v12 = vmul.f32 %v2965_v7, %v2965_v7 }
 0x102   :  { %vm265_vm14 = vcmp.ge.f32.partialorder %v206_v5, 0.0  ;;  %v297_v13 = vmul.f32 0.01, %v206_v5  ;;  %v208_v14 = vadd.f32 %v207_v8, %v2891_v47  ;;  %v2976_v23 = vsel %vm264_vm13, %v204_v62, %v296_v3  ;;  %1004 = vmatpush2.bf16.msra.mxu1 %v2566_v60 }
 0x103   :  { %v209_v16 = vpop.f32.mrf.mxu0  ;;  %364 = vadd.xlane.f32.xlu1 %v363_v10  ;;  %458 = vadd.xlane.f32.xlu0 %v457_v11  ;;  %v460_v26 = vadd.f32 %v424_v12, %v423_v17  ;;  %v425_v35 = vmul.f32 %v2976_v23, %v2976_v23  ;;  %v2567_v12 = vld [vmem:[#allocation3 + $0xb4] ss:$8 sps:$4 sm:$0xff]  }
 0x104   :  { %v298_v19 = vmul.f32 0.01, %v208_v14  ;;  %v210_v22 = vadd.f32 %v209_v16, %v2895_v48  ;;  %v2978_v24 = vsel %vm265_vm14, %v206_v5, %v297_v13  ;;  %vm266_vm15 = vcmp.ge.f32.partialorder %v208_v14, 0.0  ;;  %1005 = vmatprep.subr.bf16.mxu1 %v2567_v12 }
 0x105   :  { %v213_v25 = vpop.f32.mrf.mxu0  ;;  %v366_v27 = vadd.f32 %v2978_v24, %v2976_v23  ;;  %v426_v28 = vmul.f32 %v2978_v24, %v2978_v24 }
 0x106   :  { %vm267_vm0 = vcmp.ge.f32.partialorder %v210_v22, 0.0  ;;  %v299_v29 = vmul.f32 0.01, %v210_v22  ;;  %v214_v30 = vadd.f32 %v213_v25, %v2891_v47  ;;  %v2989_v39 = vsel %vm266_vm15, %v208_v14, %v298_v19  ;;  %1006 = vmatpush2.bf16.msra.mxu1 %v2569_v15  ;;  %v2576_v15 = vld [vmem:[#allocation3 + $0x84] ss:$8 sps:$4 sm:$0xff]  }
 0x107   :  { %v215_v34 = vpop.f32.mrf.mxu0  ;;  %461 = vadd.xlane.f32.xlu1 %v460_v26  ;;  %367 = vadd.xlane.f32.xlu0 %v366_v27  ;;  %v463_v50 = vadd.f32 %v426_v28, %v425_v35  ;;  %v427_v59 = vmul.f32 %v2989_v39, %v2989_v39  ;;  %v2572_v35 = vld [vmem:[#allocation3 + $0xa0] ss:$8 sps:$4 sm:$0xff]  }
 0x108   :  { %v300_v37 = vmul.f32 0.01, %v214_v30  ;;  %v216_v38 = vadd.f32 %v215_v34, %v2895_v48  ;;  %v2991_v40 = vsel %vm267_vm0, %v210_v22, %v299_v29  ;;  %vm268_vm1 = vcmp.ge.f32.partialorder %v214_v30, 0.0 }
 0x109   :  { %v217_v41 = vpop.f32.mrf.mxu0  ;;  %v369_v49 = vadd.f32 %v2991_v40, %v2989_v39  ;;  %v428_v51 = vmul.f32 %v2991_v40, %v2991_v40 }
 0x10a   :  { %vm269_vm2 = vcmp.ge.f32.partialorder %v216_v38, 0.0  ;;  %v301_v52 = vmul.f32 0.01, %v216_v38  ;;  %v218_v55 = vadd.f32 %v217_v41, %v2891_v47  ;;  %v3002_v0 = vsel %vm268_vm1, %v214_v30, %v300_v37  ;;  %v2570_v30 = vld [vmem:[#allocation3 + $0xa4] ss:$8 sps:$4 sm:$0xff]  }
 0x10b   :  { %v219_v58 = vpop.f32.mrf.mxu0  ;;  %370 = vadd.xlane.f32.xlu1 %v369_v49  ;;  %464 = vadd.xlane.f32.xlu0 %v463_v50  ;;  %v466_v3 = vadd.f32 %v428_v51, %v427_v59  ;;  %v429_v14 = vmul.f32 %v3002_v0, %v3002_v0 }
 0x10c   :  { %v302_v62 = vmul.f32 0.01, %v218_v55  ;;  %v220_v63 = vadd.f32 %v219_v58, %v2895_v48  ;;  %v3004_v1 = vsel %vm269_vm2, %v216_v38, %v301_v52  ;;  %vm270_vm3 = vcmp.ge.f32.partialorder %v218_v55, 0.0  ;;  %1007 = vmatprep.subr.bf16.mxu1 %v2570_v30  ;;  %v2573_v58 = vld [vmem:[#allocation3 + $0x94] ss:$8 sps:$4 sm:$0xff]  }
 0x10d   :  { %v223_v2 = vpop.f32.mrf.mxu0  ;;  %v372_v5 = vadd.f32 %v3004_v1, %v3002_v0  ;;  %v430_v8 = vmul.f32 %v3004_v1, %v3004_v1  ;;  %1008 = vmatpush2.bf16.msra.mxu1 %v2572_v35 }
 0x10e   :  { %vm271_vm4 = vcmp.ge.f32.partialorder %v220_v63, 0.0  ;;  %v303_v10 = vmul.f32 0.01, %v220_v63  ;;  %v224_v11 = vadd.f32 %v223_v2, %v2891_v47  ;;  %v3015_v18 = vsel %vm270_vm3, %v218_v55, %v302_v62  ;;  %v2575_v62 = vld [vmem:[#allocation3 + $0x90] ss:$8 sps:$4 sm:$0xff]   ;;  %1009 = vmatprep.subr.bf16.mxu1 %v2573_v58 }
 0x10f   :  { %v225_v13 = vpop.f32.mrf.mxu0  ;;  %467 = vadd.xlane.f32.xlu1 %v466_v3  ;;  %373 = vadd.xlane.f32.xlu0 %v372_v5  ;;  %v469_v26 = vadd.f32 %v430_v8, %v429_v14  ;;  %v431_v34 = vmul.f32 %v3015_v18, %v3015_v18 }
 0x110   :  { %v304_v16 = vmul.f32 0.01, %v224_v11  ;;  %v226_v17 = vadd.f32 %v225_v13, %v2895_v48  ;;  %v3017_v19 = vsel %vm271_vm4, %v220_v63, %v303_v10  ;;  %vm272_vm5 = vcmp.ge.f32.partialorder %v224_v11, 0.0 }
 0x111   :  { %v227_v22 = vpop.f32.mrf.mxu0  ;;  %v375_v25 = vadd.f32 %v3017_v19, %v3015_v18  ;;  %v432_v27 = vmul.f32 %v3017_v19, %v3017_v19  ;;  %1010 = vmatpush2.bf16.msra.mxu1 %v2575_v62 }
 0x112   :  { %vm273_vm6 = vcmp.ge.f32.partialorder %v226_v17, 0.0  ;;  %v305_v28 = vmul.f32 0.01, %v226_v17  ;;  %v228_v29 = vadd.f32 %v227_v22, %v2891_v47  ;;  %v3028_v38 = vsel %vm272_vm5, %v224_v11, %v304_v16  ;;  %v2578_v22 = vld [vmem:[#allocation3 + $0x80] ss:$8 sps:$4 sm:$0xff]   ;;  %1011 = vmatprep.subr.bf16.mxu1 %v2576_v15 }
 0x113   :  { %v229_v31 = vpop.f32.mrf.mxu0  ;;  %376 = vadd.xlane.f32.xlu1 %v375_v25  ;;  %470 = vadd.xlane.f32.xlu0 %v469_v26  ;;  %v472_v50 = vadd.f32 %v432_v27, %v431_v34  ;;  %v433_v60 = vmul.f32 %v3028_v38, %v3028_v38 }
 0x114   :  { %v306_v36 = vmul.f32 0.01, %v228_v29  ;;  %v230_v37 = vadd.f32 %v229_v31, %v2895_v48  ;;  %v3030_v41 = vsel %vm273_vm6, %v226_v17, %v305_v28  ;;  %vm274_vm7 = vcmp.ge.f32.partialorder %v228_v29, 0.0 }
 0x115   :  { %v233_v49 = vpop.f32.mrf.mxu0  ;;  %v378_v51 = vadd.f32 %v3030_v41, %v3028_v38  ;;  %v434_v52 = vmul.f32 %v3030_v41, %v3030_v41  ;;  %1012 = vmatpush2.bf16.msra.mxu1 %v2578_v22 }
 0x116   :  { %vm275_vm8 = vcmp.ge.f32.partialorder %v230_v37, 0.0  ;;  %v307_v55 = vmul.f32 0.01, %v230_v37  ;;  %v234_v56 = vadd.f32 %v233_v49, %v2891_v47  ;;  %v3041_v3 = vsel %vm274_vm7, %v228_v29, %v306_v36 }
 0x117   :  { %v235_v59 = vpop.f32.mrf.mxu0  ;;  %473 = vadd.xlane.f32.xlu1 %v472_v50  ;;  %379 = vadd.xlane.f32.xlu0 %v378_v51  ;;  %v475_v11 = vadd.f32 %v434_v52, %v433_v60  ;;  %v435_v17 = vmul.f32 %v3041_v3, %v3041_v3 }
 0x118   :  { %v308_v63 = vmul.f32 0.01, %v234_v56  ;;  %v236_v2 = vadd.f32 %v235_v59, %v2895_v48  ;;  %v3043_v5 = vsel %vm275_vm8, %v230_v37, %v307_v55  ;;  %vm276_vm9 = vcmp.ge.f32.partialorder %v234_v56, 0.0 }
 0x119   :  { %v237_v8 = vpop.f32.mrf.mxu0  ;;  %v381_v10 = vadd.f32 %v3043_v5, %v3041_v3  ;;  %v436_v12 = vmul.f32 %v3043_v5, %v3043_v5 }
 0x11a   :  { %vm277_vm10 = vcmp.ge.f32.partialorder %v236_v2, 0.0  ;;  %v309_v13 = vmul.f32 0.01, %v236_v2  ;;  %v238_v14 = vadd.f32 %v237_v8, %v2891_v47  ;;  %v3054_v27 = vsel %vm276_vm9, %v234_v56, %v308_v63 }
 0x11b   :  { %v239_v16 = vpop.f32.mrf.mxu0  ;;  %382 = vadd.xlane.f32.xlu1 %v381_v10  ;;  %476 = vadd.xlane.f32.xlu0 %v475_v11  ;;  %v478_v30 = vadd.f32 %v436_v12, %v435_v17  ;;  %v437_v49 = vmul.f32 %v3054_v27, %v3054_v27 }
 0x11c   :  { %v310_v25 = vmul.f32 0.01, %v238_v14  ;;  %v240_v26 = vadd.f32 %v239_v16, %v2895_v48  ;;  %v3056_v28 = vsel %vm277_vm10, %v236_v2, %v309_v13  ;;  %vm278_vm11 = vcmp.ge.f32.partialorder %v238_v14, 0.0 }
 0x11d   :  { %v243_v29 = vpop.f32.mrf.mxu0  ;;  %v384_v31 = vadd.f32 %v3056_v28, %v3054_v27  ;;  %v438_v34 = vmul.f32 %v3056_v28, %v3056_v28 }
 0x11e   :  { %vm279_vm12 = vcmp.ge.f32.partialorder %v240_v26, 0.0  ;;  %v311_v35 = vmul.f32 0.01, %v240_v26  ;;  %v244_v36 = vadd.f32 %v243_v29, %v2891_v47  ;;  %v3066_v52 = vsel %vm278_vm11, %v238_v14, %v310_v25 }
 0x11f   :  { %v245_v37 = vpop.f32.mrf.mxu0  ;;  %479 = vadd.xlane.f32.xlu1 %v478_v30  ;;  %385 = vadd.xlane.f32.xlu0 %v384_v31  ;;  %v481_v59 = vadd.f32 %v438_v34, %v437_v49  ;;  %v439_v8 = vmul.f32 %v3066_v52, %v3066_v52 }
 0x120   :  { %v312_v50 = vmul.f32 0.01, %v244_v36  ;;  %v246_v51 = vadd.f32 %v245_v37, %v2895_v48  ;;  %v3068_v55 = vsel %vm279_vm12, %v240_v26, %v311_v35  ;;  %vm280_vm13 = vcmp.ge.f32.partialorder %v244_v36, 0.0 }
 0x121   :  { %v247_v56 = vpop.f32.mrf.mxu0  ;;  %v387_v58 = vadd.f32 %v3068_v55, %v3066_v52  ;;  %v440_v60 = vmul.f32 %v3068_v55, %v3068_v55 }
 0x122   :  { %vm281_vm14 = vcmp.ge.f32.partialorder %v246_v51, 0.0  ;;  %v313_v62 = vmul.f32 0.01, %v246_v51  ;;  %v248_v63 = vadd.f32 %v247_v56, %v2891_v47  ;;  %v3078_v12 = vsel %vm280_vm13, %v244_v36, %v312_v50 }
 0x123   :  { %v249_v2 = vpop.f32.mrf.mxu0  ;;  %388 = vadd.xlane.f32.xlu1 %v387_v58  ;;  %482 = vadd.xlane.f32.xlu0 %v481_v59  ;;  %v484_v14 = vadd.f32 %v440_v60, %v439_v8  ;;  %v441_v17 = vmul.f32 %v3078_v12, %v3078_v12 }
 0x124   :  { %v314_v10 = vmul.f32 0.01, %v248_v63  ;;  %v250_v11 = vadd.f32 %v249_v2, %v2895_v48  ;;  %v3080_v13 = vsel %vm281_vm14, %v246_v51, %v313_v62  ;;  %vm282_vm15 = vcmp.ge.f32.partialorder %v248_v63, 0.0 }
 0x125   :  { %v390_v15 = vadd.f32 %v3080_v13, %v3078_v12  ;;  %v442_v47 = vmul.f32 %v3080_v13, %v3080_v13 }
 0x126   :  { %vm283_vm0 = vcmp.ge.f32.partialorder %v250_v11, 0.0  ;;  %v315_v16 = vmul.f32 0.01, %v250_v11  ;;  %v3088_v48 = vsel %vm282_vm15, %v248_v63, %v314_v10 }
 0x127   :  { %485 = vadd.xlane.f32.xlu1 %v484_v14  ;;  %391 = vadd.xlane.f32.xlu0 %v390_v15  ;;  %4107 = vst [vmem:[#allocation14_spill] sm:$0xff] %v3088_v48  ;;  %v487_v26 = vadd.f32 %v442_v47, %v441_v17  ;;  %v443_v30 = vmul.f32 %v3088_v48, %v3088_v48 }
 0x128   :  { %v3090_v22 = vsel %vm283_vm0, %v250_v11, %v315_v16 }
 0x129   :  { %4108 = vst [vmem:[#allocation15_spill] sm:$0xff] %v3090_v22  ;;  %v393_v25 = vadd.f32 %v3090_v22, %v3088_v48  ;;  %v444_v29 = vmul.f32 %v3090_v22, %v3090_v22 }
 0x12b   :  { %394 = vadd.xlane.f32.xlu1 %v393_v25  ;;  %488 = vadd.xlane.f32.xlu0 %v487_v26  ;;  %v490_v31 = vadd.f32 %v444_v29, %v443_v30 }
 0x12f   :  { %491 = vadd.xlane.f32.xlu1 %v490_v31 }
 0x178   :  { %v350_v34 = vpop.xlane.xlu0 %349 }
 0x179   :  { %v3098_v35 = vmul.f32 0.00390625, %v350_v34 }
 0x17a   :  { %v447_v36 = vpop.xlane.xlu1 %446 }
 0x17b   :  { %v493_v37 = vmul.f32 0.00390625, %v447_v36  ;;  %v509_v49 = vmul.f32 %v3098_v35, %v3098_v35 }
 0x17c   :  { %v353_v50 = vpop.xlane.xlu0 %352 }
 0x17d   :  { %v525_v51 = vsub.f32 %v493_v37, %v509_v49  ;;  %v3102_v56 = vmul.f32 0.00390625, %v353_v50  ;;  %v3117_v49 = vsub.s32 1, %v2880_v43 }
 0x17e   :  { %v450_v58 = vpop.xlane.xlu1 %449 }
 0x17f   :  { %v541_v59 = vmax.f32 %v525_v51, 0.0  ;;  %v494_v60 = vmul.f32 0.00390625, %v450_v58  ;;  %v510_v62 = vmul.f32 %v3102_v56, %v3102_v56  ;;  %4109 = vst [vmem:[#allocation16_spill] sm:$0xff] %v3117_v49 }
 0x180   :  { %v356_v63 = vpop.xlane.xlu0 %355 }
 0x181   :  { %v557_v2 = vadd.f32 1e-05, %v541_v59  ;;  %v526_v8 = vsub.f32 %v494_v60, %v510_v62  ;;  %v3106_v10 = vmul.f32 0.00390625, %v356_v63 }
 0x183   :  { %2595 = vrsqrt.f32 %v557_v2  ;;  %v542_v11 = vmax.f32 %v526_v8, 0.0  ;;  %v511_v17 = vmul.f32 %v3106_v10, %v3106_v10  ;;  %v3125_v8 = vrot.slane %v2887_v46, %v3117_v49 }
 0x184   :  { %v359_v14 = vpop.xlane.xlu1 %358  ;;  %v453_v15 = vpop.xlane.xlu0 %452 }
 0x185   :  { %v558_v47 = vadd.f32 1e-05, %v542_v11  ;;  %v3108_v16 = vmul.f32 0.00390625, %v359_v14  ;;  %v495_v25 = vmul.f32 0.00390625, %v453_v15  ;;  %v3128_v11 = vsub.s32 2, %v2880_v43 }
 0x186   :  { %v3132_v14 = vrot.slane %v2885_v45, %v3117_v49 }
 0x187   :  { %2597 = vrsqrt.f32 %v558_v47  ;;  %v527_v26 = vsub.f32 %v495_v25, %v511_v17  ;;  %v512_v34 = vmul.f32 %v3108_v16, %v3108_v16  ;;  %4110 = vst [vmem:[#allocation17_spill] sm:$0xff] %v3128_v11 }
 0x188   :  { %v456_v29 = vpop.xlane.xlu1 %455  ;;  %v362_v30 = vpop.xlane.xlu0 %361 }
 0x189   :  { %v543_v31 = vmax.f32 %v527_v26, 0.0  ;;  %v496_v36 = vmul.f32 0.00390625, %v456_v29  ;;  %v3114_v37 = vmul.f32 0.00390625, %v362_v30 }
 0x18b   :  { %v559_v50 = vadd.f32 1e-05, %v543_v31  ;;  %v528_v51 = vsub.f32 %v496_v36, %v512_v34  ;;  %v513_v59 = vmul.f32 %v3114_v37, %v3114_v37 }
 0x18c   :  { %v365_v58 = vpop.xlane.xlu1 %364  ;;  %v459_v60 = vpop.xlane.xlu0 %458 }
 0x18d   :  { %2599 = vrsqrt.f32 %v559_v50  ;;  %v544_v62 = vmax.f32 %v528_v51, 0.0  ;;  %v3121_v63 = vmul.f32 0.00390625, %v365_v58  ;;  %v497_v2 = vmul.f32 0.00390625, %v459_v60 }
 0x18e   :  { %v3141_v50 = vrot.slane %v2887_v46, %v3128_v11  ;;  %v3146_v60 = vrot.slane %v2885_v45, %v3128_v11 }
 0x18f   :  { %v560_v15 = vadd.f32 1e-05, %v544_v62  ;;  %v529_v47 = vsub.f32 %v497_v2, %v513_v59  ;;  %v514_v25 = vmul.f32 %v3121_v63, %v3121_v63 }
 0x190   :  { %v2596_v17 = vpop.eup %2595  ;;  %v462_v26 = vpop.xlane.xlu1 %461 }
 0x191   :  { %v368_v29 = vpop.xlane.xlu0 %367  ;;  %2601 = vrsqrt.f32 %v560_v15  ;;  %v545_v30 = vmax.f32 %v529_v47, 0.0  ;;  %v498_v31 = vmul.f32 0.00390625, %v462_v26  ;;  %v598_v36 = vmul.f32 %v2596_v17, %v3125_v8 }
 0x192   :  { %v3136_v34 = vmul.f32 0.00390625, %v368_v29  ;;  %v597_v51 = vmul.f32 %v2596_v17, %v3132_v14 }
 0x193   :  { %v561_v58 = vadd.f32 1e-05, %v545_v30  ;;  %v530_v59 = vsub.f32 %v498_v31, %v514_v25  ;;  %v630_v26 = vmul.f32 %v598_v36, %v3098_v35  ;;  %v702_v30 = vmul.f32 %v598_v36, %v2903_v61 }
 0x194   :  { %v2598_v62 = vpop.eup %2597  ;;  %v371_v2 = vpop.xlane.xlu1 %370  ;;  %v515_v15 = vmul.f32 %v3136_v34, %v3136_v34  ;;  %v629_v29 = vmul.f32 %v597_v51, %v3098_v35  ;;  %v701_v43 = vmul.f32 %v597_v51, %v2900_v57 }
 0x195   :  { %v465_v47 = vpop.xlane.xlu0 %464  ;;  %2603 = vrsqrt.f32 %v561_v58  ;;  %v546_v46 = vmax.f32 %v530_v59, 0.0  ;;  %v3152_v42 = vmul.f32 0.00390625, %v371_v2  ;;  %v600_v25 = vmul.f32 %v2598_v62, %v3125_v8 }
 0x196   :  { %v499_v17 = vmul.f32 0.00390625, %v465_v47  ;;  %v670_v45 = vsub.f32 %v3141_v50, %v630_v26  ;;  %v599_v31 = vmul.f32 %v2598_v62, %v3132_v14  ;;  %v669_v44 = vsub.f32 %v3146_v60, %v629_v29 }
 0x197   :  { %v562_v11 = vadd.f32 1e-05, %v546_v46  ;;  %v516_v35 = vmul.f32 %v3152_v42, %v3152_v42  ;;  %v632_v2 = vmul.f32 %v600_v25, %v3102_v56  ;;  %v704_v47 = vmul.f32 %v600_v25, %v2915_v9 }
 0x198   :  { %v531_v49 = vsub.f32 %v499_v17, %v515_v15  ;;  %v468_v58 = vpop.xlane.xlu1 %467  ;;  %v631_v26 = vmul.f32 %v599_v31, %v3102_v56  ;;  %v734_v57 = vadd.f32 %v702_v30, %v670_v45  ;;  %v703_v46 = vmul.f32 %v599_v31, %v2912_v4 }
 0x199   :  { %v374_v59 = vpop.xlane.xlu0 %373  ;;  %2605 = vrsqrt.f32 %v562_v11  ;;  %v500_v36 = vmul.f32 0.00390625, %v468_v58  ;;  %v672_v29 = vsub.f32 %v3141_v50, %v632_v2  ;;  %v733_v22 = vadd.f32 %v701_v43, %v669_v44 }
 0x19a   :  { %v547_v61 = vmax.f32 %v531_v49, 0.0  ;;  %v3165_v62 = vmul.f32 0.00390625, %v374_v59  ;;  %v2600_v15 = vpop.eup %2599  ;;  %v671_v51 = vsub.f32 %v3146_v60, %v631_v26 }
 0x19b   :  { %v532_v48 = vsub.f32 %v500_v36, %v516_v35  ;;  %v602_v9 = vmul.f32 %v2600_v15, %v3125_v8  ;;  %v736_v11 = vadd.f32 %v704_v47, %v672_v29  ;;  %v601_v59 = vmul.f32 %v2600_v15, %v3132_v14 }
 0x19c   :  { %v563_v17 = vadd.f32 1e-05, %v547_v61  ;;  %v377_v25 = vpop.xlane.xlu1 %376  ;;  %v517_v56 = vmul.f32 %v3165_v62, %v3165_v62  ;;  %v735_v58 = vadd.f32 %v703_v46, %v671_v51 }
 0x19d   :  { %v471_v49 = vpop.xlane.xlu0 %470  ;;  %v548_v45 = vmax.f32 %v532_v48, 0.0  ;;  %v3174_v30 = vmul.f32 0.00390625, %v377_v25  ;;  %v766_v31 = vpack.c.bf16 %v736_v11, %v734_v57  ;;  %v634_v43 = vmul.f32 %v602_v9, %v3106_v10 }
 0x19e   :  { %2607 = vrsqrt.f32 %v563_v17  ;;  %v501_v2 = vmul.f32 0.00390625, %v471_v49  ;;  %v2602_v4 = vpop.eup %2601  ;;  %v765_v35 = vpack.c.bf16 %v735_v58, %v733_v22  ;;  %v706_v44 = vmul.f32 %v602_v9, %v2927_v21 }
 0x19f   :  { %v564_v26 = vadd.f32 1e-05, %v548_v45  ;;  %v518_v47 = vmul.f32 %v3174_v30, %v3174_v30  ;;  %v604_v36 = vmul.f32 %v2602_v4, %v3125_v8  ;;  %1013 = vmatprep.mubr.bf16.mxu1 %v766_v31  ;;  %v674_v29 = vsub.f32 %v3141_v50, %v634_v43 }
 0x1a0   :  { %v533_v61 = vsub.f32 %v501_v2, %v517_v56  ;;  %v474_v15 = vpop.xlane.xlu1 %473  ;;  %v603_v51 = vmul.f32 %v2602_v4, %v3132_v14  ;;  %v633_v22 = vmul.f32 %v601_v59, %v3106_v10  ;;  %v705_v57 = vmul.f32 %v601_v59, %v2925_v20  ;;  %1014 = vmatmul.mubr.bf16.vlgmr.msra.gmra.mxu1 %v765_v35 }
 0x1a1   :  { %v380_v48 = vpop.xlane.xlu0 %379  ;;  %2609 = vrsqrt.f32 %v564_v26  ;;  %v502_v46 = vmul.f32 0.00390625, %v474_v15  ;;  %v636_v25 = vmul.f32 %v604_v36, %v3108_v16  ;;  %v708_v56 = vmul.f32 %v604_v36, %v2939_v33 }
 0x1a2   :  { %v549_v21 = vmax.f32 %v533_v61, 0.0  ;;  %v3185_v17 = vmul.f32 0.00390625, %v380_v48  ;;  %v2604_v9 = vpop.eup %2603  ;;  %v738_v49 = vadd.f32 %v706_v44, %v674_v29  ;;  %v635_v11 = vmul.f32 %v603_v51, %v3108_v16 }
 0x1a3   :  { %v534_v45 = vsub.f32 %v502_v46, %v518_v47  ;;  %v673_v20 = vsub.f32 %v3146_v60, %v633_v22  ;;  %v676_v4 = vsub.f32 %v3141_v50, %v636_v25  ;;  %v707_v35 = vmul.f32 %v603_v51, %v2937_v32 }
 0x1a4   :  { %v565_v58 = vadd.f32 1e-05, %v549_v21  ;;  %v519_v10 = vmul.f32 %v3185_v17, %v3185_v17  ;;  %v383_v59 = vpop.xlane.xlu1 %382  ;;  %v675_v31 = vsub.f32 %v3146_v60, %v635_v11  ;;  %v606_v33 = vmul.f32 %v2604_v9, %v3125_v8 }
 0x1a5   :  { %v477_v2 = vpop.xlane.xlu0 %476  ;;  %v550_v43 = vmax.f32 %v534_v45, 0.0  ;;  %v3197_v16 = vmul.f32 0.00390625, %v383_v59  ;;  %v740_v61 = vadd.f32 %v708_v56, %v676_v4  ;;  %v737_v47 = vadd.f32 %v705_v57, %v673_v20 }
 0x1a6   :  { %2611 = vrsqrt.f32 %v565_v58  ;;  %v503_v44 = vmul.f32 0.00390625, %v477_v2  ;;  %v2606_v26 = vpop.eup %2605  ;;  %v739_v36 = vadd.f32 %v707_v35, %v675_v31  ;;  %v638_v15 = vmul.f32 %v606_v33, %v3114_v37 }
 0x1a7   :  { %v566_v48 = vadd.f32 1e-05, %v550_v43  ;;  %v520_v22 = vmul.f32 %v3197_v16, %v3197_v16  ;;  %v608_v32 = vmul.f32 %v2606_v26, %v3125_v8  ;;  %v768_v46 = vpack.c.bf16 %v740_v61, %v738_v49 }
 0x1a8   :  { %v535_v29 = vsub.f32 %v503_v44, %v519_v10  ;;  %v480_v51 = vpop.xlane.xlu1 %479  ;;  %v767_v25 = vpack.c.bf16 %v739_v36, %v737_v47  ;;  %v678_v11 = vsub.f32 %v3141_v50, %v638_v15  ;;  %v710_v58 = vmul.f32 %v606_v33, %v2952_v54 }
 0x1a9   :  { %v386_v21 = vpop.xlane.xlu0 %385  ;;  %2613 = vrsqrt.f32 %v566_v48  ;;  %v504_v56 = vmul.f32 0.00390625, %v480_v51  ;;  %1023 = vmatprep.mubr.bf16.mxu1 %v768_v46  ;;  %v640_v10 = vmul.f32 %v608_v32, %v3121_v63  ;;  %v712_v59 = vmul.f32 %v608_v32, %v2965_v7 }
 0x1aa   :  { %v551_v57 = vmax.f32 %v535_v29, 0.0  ;;  %v3205_v45 = vmul.f32 0.00390625, %v386_v21  ;;  %v742_v2 = vadd.f32 %v710_v58, %v678_v11  ;;  %v605_v4 = vmul.f32 %v2604_v9, %v3132_v14  ;;  %1024 = vmatmul.mubr.bf16.gmra.mxu1 %v767_v25 }
 0x1ab   :  { %v2608_v20 = vpop.eup %2607  ;;  %v536_v31 = vsub.f32 %v504_v56, %v520_v22  ;;  %v607_v35 = vmul.f32 %v2606_v26, %v3132_v14  ;;  %v680_v44 = vsub.f32 %v3141_v50, %v640_v10 }
 0x1ac   :  { %v567_v49 = vadd.f32 1e-05, %v551_v57  ;;  %v521_v54 = vmul.f32 %v3205_v45, %v3205_v45  ;;  %v389_v33 = vpop.xlane.xlu1 %388  ;;  %v637_v61 = vmul.f32 %v605_v4, %v3114_v37  ;;  %v709_v47 = vmul.f32 %v605_v4, %v2950_v53 }
 0x1ad   :  { %v483_v43 = vpop.xlane.xlu0 %482  ;;  %v610_v7 = vmul.f32 %v2608_v20, %v3125_v8  ;;  %v552_v9 = vmax.f32 %v536_v31, 0.0  ;;  %v3217_v36 = vmul.f32 0.00390625, %v389_v33  ;;  %v744_v29 = vadd.f32 %v712_v59, %v680_v44 }
 0x1ae   :  { %2615 = vrsqrt.f32 %v567_v49  ;;  %v505_v15 = vmul.f32 0.00390625, %v483_v43  ;;  %v2610_v48 = vpop.eup %2609  ;;  %v639_v22 = vmul.f32 %v607_v35, %v3121_v63  ;;  %v677_v26 = vsub.f32 %v3146_v60, %v637_v61 }
 0x1af   :  { %v711_v32 = vmul.f32 %v607_v35, %v2963_v6  ;;  %v568_v51 = vadd.f32 1e-05, %v552_v9  ;;  %v522_v53 = vmul.f32 %v3217_v36, %v3217_v36  ;;  %v612_v37 = vmul.f32 %v2610_v48, %v3125_v8 }
 0x1b0   :  { %v537_v21 = vsub.f32 %v505_v15, %v521_v54  ;;  %v486_v46 = vpop.xlane.xlu1 %485  ;;  %v770_v11 = vpack.c.bf16 %v744_v29, %v742_v2  ;;  %v679_v58 = vsub.f32 %v3146_v60, %v639_v22  ;;  %v741_v57 = vadd.f32 %v709_v47, %v677_v26 }
 0x1b1   :  { %v392_v25 = vpop.xlane.xlu0 %391  ;;  %v642_v56 = vmul.f32 %v610_v7, %v3136_v34  ;;  %2617 = vrsqrt.f32 %v568_v51  ;;  %v506_v10 = vmul.f32 0.00390625, %v486_v46  ;;  %v644_v49 = vmul.f32 %v612_v37, %v3152_v42 }
 0x1b2   :  { %v553_v63 = vmax.f32 %v537_v21, 0.0  ;;  %v3227_v59 = vmul.f32 0.00390625, %v392_v25  ;;  %1033 = vmatprep.mubr.bf16.mxu1 %v770_v11  ;;  %v743_v4 = vadd.f32 %v711_v32, %v679_v58  ;;  %v714_v54 = vmul.f32 %v610_v7, %v2978_v24 }
 0x1b3   :  { %v2612_v6 = vpop.eup %2611  ;;  %v682_v31 = vsub.f32 %v3141_v50, %v642_v56  ;;  %v538_v35 = vsub.f32 %v506_v10, %v522_v53  ;;  %v716_v43 = vmul.f32 %v612_v37, %v2991_v40  ;;  %v684_v9 = vsub.f32 %v3141_v50, %v644_v49 }
 0x1b4   :  { %v569_v2 = vadd.f32 1e-05, %v553_v63  ;;  %v523_v33 = vmul.f32 %v3227_v59, %v3227_v59  ;;  %v769_v44 = vpack.c.bf16 %v743_v4, %v741_v57  ;;  %v395_v61 = vpop.xlane.xlu1 %394  ;;  %v609_v29 = vmul.f32 %v2608_v20, %v3132_v14 }
 0x1b5   :  { %v489_v47 = vpop.xlane.xlu0 %488  ;;  %v746_v15 = vadd.f32 %v714_v54, %v682_v31  ;;  %v554_v22 = vmax.f32 %v538_v35, 0.0  ;;  %v3237_v26 = vmul.f32 0.00390625, %v395_v61  ;;  %v748_v32 = vadd.f32 %v716_v43, %v684_v9 }
 0x1b6   :  { %2619 = vrsqrt.f32 %v569_v2  ;;  %v507_v24 = vmul.f32 0.00390625, %v489_v47  ;;  %v2614_v7 = vpop.eup %2613  ;;  %1034 = vmatmul.mubr.bf16.gmra.mxu1 %v769_v44  ;;  %v611_v51 = vmul.f32 %v2610_v48, %v3132_v14  ;;  %v641_v40 = vmul.f32 %v609_v29, %v3136_v34 }
 0x1b7   :  { %v713_v21 = vmul.f32 %v609_v29, %v2976_v23  ;;  %v570_v53 = vadd.f32 1e-05, %v554_v22  ;;  %v524_v46 = vmul.f32 %v3237_v26, %v3237_v26  ;;  %v614_v20 = vmul.f32 %v2612_v6, %v3125_v8 }
 0x1b8   :  { %v539_v37 = vsub.f32 %v507_v24, %v523_v33  ;;  %v492_v25 = vpop.xlane.xlu1 %491  ;;  %v772_v11 = vpack.c.bf16 %v748_v32, %v746_v15  ;;  %v643_v58 = vmul.f32 %v611_v51, %v3152_v42  ;;  %v681_v57 = vsub.f32 %v3146_v60, %v641_v40 }
 0x1b9   :  { %v715_v56 = vmul.f32 %v611_v51, %v2989_v39  ;;  %2621 = vrsqrt.f32 %v570_v53  ;;  %v508_v34 = vmul.f32 0.00390625, %v492_v25  ;;  %v616_v23 = vmul.f32 %v2614_v7, %v3125_v8 }
 0x1ba   :  { %v555_v48 = vmax.f32 %v539_v37, 0.0  ;;  %1043 = vmatprep.mubr.bf16.mxu1 %v772_v11  ;;  %v683_v10 = vsub.f32 %v3146_v60, %v643_v58  ;;  %v745_v4 = vadd.f32 %v713_v21, %v681_v57  ;;  %v646_v49 = vmul.f32 %v614_v20, %v3165_v62 }
 0x1bb   :  { %v2616_v63 = vpop.eup %2615  ;;  %v718_v31 = vmul.f32 %v614_v20, %v3004_v1  ;;  %v540_v42 = vsub.f32 %v508_v34, %v524_v46  ;;  %v648_v2 = vmul.f32 %v616_v23, %v3174_v30  ;;  %v720_v39 = vmul.f32 %v616_v23, %v3017_v19 }
 0x1bc   :  { %v571_v54 = vadd.f32 1e-05, %v555_v48  ;;  %v747_v35 = vadd.f32 %v715_v56, %v683_v10  ;;  %v686_v33 = vsub.f32 %v3141_v50, %v646_v49  ;;  %v613_v43 = vmul.f32 %v2612_v6, %v3132_v14 }
 0x1bd   :  { %v615_v44 = vmul.f32 %v2614_v7, %v3132_v14  ;;  %v556_v61 = vmax.f32 %v540_v42, 0.0  ;;  %v688_v47 = vsub.f32 %v3141_v50, %v648_v2  ;;  %v618_v9 = vmul.f32 %v2616_v63, %v3125_v8 }
 0x1be   :  { %2623 = vrsqrt.f32 %v571_v54  ;;  %v2618_v1 = vpop.eup %2617  ;;  %v771_v15 = vpack.c.bf16 %v747_v35, %v745_v4  ;;  %v750_v29 = vadd.f32 %v718_v31, %v686_v33  ;;  %v645_v22 = vmul.f32 %v613_v43, %v3165_v62 }
 0x1bf   :  { %v647_v19 = vmul.f32 %v615_v44, %v3174_v30  ;;  %v572_v24 = vadd.f32 1e-05, %v556_v61  ;;  %v752_v32 = vadd.f32 %v720_v39, %v688_v47  ;;  %v717_v51 = vmul.f32 %v613_v43, %v3002_v0 }
 0x1c0   :  { %v719_v6 = vmul.f32 %v615_v44, %v3015_v18  ;;  %1044 = vmatmul.mubr.bf16.gmra.mxu1 %v771_v15  ;;  %v685_v7 = vsub.f32 %v3146_v60, %v645_v22  ;;  %v620_v21 = vmul.f32 %v2618_v1, %v3125_v8  ;;  %v650_v53 = vmul.f32 %v618_v9, %v3185_v17 }
 0x1c1   :  { %v687_v40 = vsub.f32 %v3146_v60, %v647_v19  ;;  %2625 = vrsqrt.f32 %v572_v24  ;;  %v774_v37 = vpack.c.bf16 %v752_v32, %v750_v29  ;;  %v617_v62 = vmul.f32 %v2616_v63, %v3132_v14 }
 0x1c2   :  { %v749_v46 = vadd.f32 %v717_v51, %v685_v7  ;;  %v652_v0 = vmul.f32 %v620_v21, %v3197_v16  ;;  %v690_v18 = vsub.f32 %v3141_v50, %v650_v53  ;;  %v722_v25 = vmul.f32 %v618_v9, %v3030_v41 }
 0x1c3   :  { %v2620_v30 = vpop.eup %2619  ;;  %v751_v20 = vadd.f32 %v719_v6, %v687_v40  ;;  %1053 = vmatprep.mubr.bf16.mxu1 %v774_v37  ;;  %v619_v11 = vmul.f32 %v2618_v1, %v3132_v14  ;;  %v649_v58 = vmul.f32 %v617_v62, %v3185_v17  ;;  %v724_v48 = vmul.f32 %v620_v21, %v3043_v5 }
 0x1c4   :  { %v692_v56 = vsub.f32 %v3141_v50, %v652_v0  ;;  %v622_v34 = vmul.f32 %v2620_v30, %v3125_v8  ;;  %v754_v23 = vadd.f32 %v722_v25, %v690_v18  ;;  %v621_v31 = vmul.f32 %v2620_v30, %v3132_v14  ;;  %v4112_v25 = vld [vmem:[#allocation14_spill] sm:$0xff] }
 0x1c5   :  { %v773_v57 = vpack.c.bf16 %v751_v20, %v749_v46  ;;  %v651_v63 = vmul.f32 %v619_v11, %v3197_v16  ;;  %v689_v49 = vsub.f32 %v3146_v60, %v649_v58  ;;  %v723_v54 = vmul.f32 %v619_v11, %v3041_v3  ;;  %v4111_v20 = vld [vmem:[#allocation15_spill] sm:$0xff] }
 0x1c6   :  { %v2622_v10 = vpop.eup %2621  ;;  %v756_v4 = vadd.f32 %v724_v48, %v692_v56  ;;  %v654_v41 = vmul.f32 %v622_v34, %v3205_v45  ;;  %v721_v16 = vmul.f32 %v617_v62, %v3028_v38  ;;  %v653_v3 = vmul.f32 %v621_v31, %v3205_v45 }
 0x1c7   :  { %v691_v17 = vsub.f32 %v3146_v60, %v651_v63  ;;  %v624_v42 = vmul.f32 %v2622_v10, %v3125_v8  ;;  %v623_v5 = vmul.f32 %v2622_v10, %v3132_v14  ;;  %v726_v9 = vmul.f32 %v622_v34, %v3056_v28  ;;  %v2583_v34 = vld [vmem:[%s4091_s3 + $0x68] sm:$0xff]   ;;  %v4113_v63 = vld [vmem:[#allocation12_spill] sm:$0xff] }
 0x1c8   :  { %1054 = vmatmul.mubr.bf16.gmra.mxu1 %v773_v57  ;;  %v776_v2 = vpack.c.bf16 %v756_v4, %v754_v23  ;;  %v694_v33 = vsub.f32 %v3141_v50, %v654_v41  ;;  %v753_v61 = vadd.f32 %v721_v16, %v689_v49  ;;  %v693_v45 = vsub.f32 %v3146_v60, %v653_v3  ;;  %v2584_v23 = vld [vmem:[%s4091_s3 + $0x28] sm:$0xff]   ;;  %v3333_v4 = vld [vmem:[#allocation6] sm:$0xff] }
 0x1c9   :  { %v755_v39 = vadd.f32 %v723_v54, %v691_v17  ;;  %v656_v35 = vmul.f32 %v624_v42, %v3217_v36  ;;  %v655_v43 = vmul.f32 %v623_v5, %v3217_v36  ;;  %v728_v1 = vmul.f32 %v624_v42, %v3068_v55  ;;  %v3339_v41 = vld [vmem:[#allocation6 + $0x8] sm:$0xff] }
 0x1ca   :  { %1063 = vmatprep.mubr.bf16.mxu1 %v776_v2  ;;  %v758_v19 = vadd.f32 %v726_v9, %v694_v33  ;;  %v727_v51 = vmul.f32 %v623_v5, %v3066_v52  ;;  %v725_v55 = vmul.f32 %v621_v31, %v3054_v27  ;;  %v3331_v10 = vsub.s32 3, %v4113_v63 }
 0x1cb   :  { %v2624_v44 = vpop.eup %2623  ;;  %v696_v47 = vsub.f32 %v3141_v50, %v656_v35  ;;  %v775_v15 = vpack.c.bf16 %v755_v39, %v753_v61  ;;  %v695_v29 = vsub.f32 %v3146_v60, %v655_v43 }
 0x1cc   :  { %v626_v38 = vmul.f32 %v2624_v44, %v3125_v8  ;;  %v625_v22 = vmul.f32 %v2624_v44, %v3132_v14  ;;  %v757_v30 = vadd.f32 %v725_v55, %v693_v45  ;;  %v3337_v49 = vrot.slane %v3333_v4, %v3331_v10 }
 0x1cd   :  { %v760_v36 = vadd.f32 %v728_v1, %v696_v47  ;;  %v759_v40 = vadd.f32 %v727_v51, %v695_v29  ;;  %v3343_v31 = vrot.slane %v3339_v41, %v3331_v10 }
 0x1ce   :  { %v658_v24 = vmul.f32 %v626_v38, %v3227_v59  ;;  %v2626_v32 = vpop.eup %2625  ;;  %v657_v28 = vmul.f32 %v625_v22, %v3227_v59  ;;  %v729_v37 = vmul.f32 %v625_v22, %v3078_v12 }
 0x1cf   :  { %v778_v6 = vpack.c.bf16 %v760_v36, %v758_v19  ;;  %v628_v7 = vmul.f32 %v2626_v32, %v3125_v8  ;;  %v627_v21 = vmul.f32 %v2626_v32, %v3132_v14  ;;  %v730_v8 = vmul.f32 %v626_v38, %v3080_v13  ;;  %v2580_v13 = vld [vmem:[%s4091_s3 + $0x38] sm:$0xff]  }
 0x1d0   :  { %1064 = vmatmul.mubr.bf16.gmra.mxu1 %v775_v15  ;;  %v697_v53 = vsub.f32 %v3146_v60, %v657_v28  ;;  %v698_v52 = vsub.f32 %v3141_v50, %v658_v24  ;;  %v777_v14 = vpack.c.bf16 %v759_v40, %v757_v30 }
 0x1d1   :  { %1073 = vmatprep.mubr.bf16.mxu1 %v778_v6  ;;  %v660_v62 = vmul.f32 %v628_v7, %v3237_v26  ;;  %v659_v59 = vmul.f32 %v627_v21, %v3237_v26  ;;  %v732_v0 = vmul.f32 %v628_v7, %v4111_v20  ;;  %v731_v12 = vmul.f32 %v627_v21, %v4112_v25  ;;  %v2582_v26 = vld [vmem:[%s4091_s3 + $0x30] sm:$0xff]   ;;  %v2585_v20 = vld [vmem:[%s4091_s3 + $0x60] sm:$0xff]  }
 0x1d2   :  { %v761_v46 = vadd.f32 %v729_v37, %v697_v53  ;;  %v762_v11 = vadd.f32 %v730_v8, %v698_v52 }
 0x1d3   :  { %v700_v27 = vsub.f32 %v3141_v50, %v660_v62  ;;  %v699_v18 = vsub.f32 %v3146_v60, %v659_v59  ;;  %v2579_v50 = vld [vmem:[%s4091_s3 + $0x78] sm:$0xff]   ;;  %v2581_v60 = vld [vmem:[%s4091_s3 + $0x70] sm:$0xff]  }
 0x1d4   :  { %2455 = vmatprep.subr.bf16.mxu0 %v2579_v50 }
 0x1d5   :  { %v764_v58 = vadd.f32 %v732_v0, %v700_v27  ;;  %v763_v57 = vadd.f32 %v731_v12, %v699_v18  ;;  %2456 = vmatpush3.bf16.msra.mxu0 %v2580_v13  ;;  %v2586_v0 = vld [vmem:[%s4091_s3 + $0x20] sm:$0xff]  }
 0x1d6   :  { %2457 = vmatprep.subr.bf16.mxu0 %v2581_v60 }
 0x1d7   :  { %v780_v56 = vpack.c.bf16 %v764_v58, %v762_v11  ;;  %v779_v48 = vpack.c.bf16 %v763_v57, %v761_v46 }
 0x1d8   :  { %1074 = vmatmul.mubr.bf16.gmra.mxu1 %v777_v14 }
 0x1d9   :  { %1083 = vmatprep.mubr.bf16.mxu1 %v780_v56  ;;  %2458 = vmatpush3.bf16.msra.mxu0 %v2582_v26 }
 0x1da   :  { %2459 = vmatprep.subr.bf16.mxu0 %v2583_v34 }
 0x1dd   :  { %2460 = vmatpush3.bf16.msra.mxu0 %v2584_v23 }
 0x1de   :  { %2461 = vmatprep.subr.bf16.mxu0 %v2585_v20 }
 0x1e0   :  { %1084 = vmatmul.mubr.bf16.gmra.mxu1 %v779_v48 }
 0x1e1   :  { %2462 = vmatpush3.bf16.msra.mxu0 %v2586_v0 }
 0x260   :  { %v1015_v17 = vpop.f32.mrf.mxu1 }
 0x261   :  { %v1016_v54 = vadd.f32 %v1015_v17, %v3337_v49 }
 0x262   :  { %v1017_v42 = vpop.f32.mrf.mxu1 }
 0x263   :  { %v1126_v5 = vmul.f32 0.01, %v1016_v54  ;;  %v1018_v2 = vadd.f32 %v1017_v42, %v3343_v31  ;;  %vm1094_vm1 = vcmp.ge.f32.partialorder %v1016_v54, 0.0 }
 0x264   :  { %v1019_v16 = vpop.f32.mrf.mxu1 }
 0x265   :  { %vm1095_vm2 = vcmp.ge.f32.partialorder %v1018_v2, 0.0  ;;  %v1127_v39 = vmul.f32 0.01, %v1018_v2  ;;  %v1020_v35 = vadd.f32 %v1019_v16, %v3337_v49  ;;  %v3349_v61 = vsel %vm1094_vm1, %v1016_v54, %v1126_v5 }
 0x266   :  { %v1021_v33 = vpop.f32.mrf.mxu1  ;;  %v1254_v15 = vmul.f32 %v3349_v61, %v3349_v61 }
 0x267   :  { %v1128_v43 = vmul.f32 0.01, %v1020_v35  ;;  %v1022_v44 = vadd.f32 %v1021_v33, %v3343_v31  ;;  %v3351_v3 = vsel %vm1095_vm2, %v1018_v2, %v1127_v39  ;;  %vm1096_vm3 = vcmp.ge.f32.partialorder %v1020_v35, 0.0 }
 0x268   :  { %v1190_v47 = vadd.f32 %v3351_v3, %v3349_v61  ;;  %v1255_v9 = vmul.f32 %v3351_v3, %v3351_v3 }
 0x269   :  { %vm1097_vm4 = vcmp.ge.f32.partialorder %v1022_v44, 0.0  ;;  %v1129_v1 = vmul.f32 0.01, %v1022_v44  ;;  %v3360_v22 = vsel %vm1096_vm3, %v1020_v35, %v1128_v43 }
 0x26a   :  { %1191 = vadd.xlane.f32.xlu0 %v1190_v47  ;;  %v1025_v38 = vpop.f32.mrf.mxu1  ;;  %v1286_v32 = vadd.f32 %v1255_v9, %v1254_v15  ;;  %v1256_v55 = vmul.f32 %v3360_v22, %v3360_v22 }
 0x26b   :  { %v1026_v29 = vadd.f32 %v1025_v38, %v3337_v49  ;;  %v3362_v19 = vsel %vm1097_vm4, %v1022_v44, %v1129_v1 }
 0x26c   :  { %v1027_v36 = vpop.f32.mrf.mxu1  ;;  %v1193_v24 = vadd.f32 %v3362_v19, %v3360_v22  ;;  %v1257_v45 = vmul.f32 %v3362_v19, %v3362_v19 }
 0x26d   :  { %v1130_v51 = vmul.f32 0.01, %v1026_v29  ;;  %v1028_v28 = vadd.f32 %v1027_v36, %v3343_v31  ;;  %vm1098_vm5 = vcmp.ge.f32.partialorder %v1026_v29, 0.0 }
 0x26e   :  { %1194 = vadd.xlane.f32.xlu1 %v1193_v24  ;;  %1287 = vadd.xlane.f32.xlu0 %v1286_v32  ;;  %v1029_v6 = vpop.f32.mrf.mxu1  ;;  %v1289_v53 = vadd.f32 %v1257_v45, %v1256_v55  ;;  %v2588_v55 = vld [vmem:[%s4091_s3 + $0x18] sm:$0xff]  }
 0x26f   :  { %vm1099_vm6 = vcmp.ge.f32.partialorder %v1028_v28, 0.0  ;;  %v1131_v7 = vmul.f32 0.01, %v1028_v28  ;;  %v1030_v40 = vadd.f32 %v1029_v6, %v3337_v49  ;;  %v3373_v52 = vsel %vm1098_vm5, %v1026_v29, %v1130_v51  ;;  %v2587_v6 = vld [vmem:[%s4091_s3 + $0x58] sm:$0xff]  }
 0x270   :  { %v1031_v21 = vpop.f32.mrf.mxu1  ;;  %v1258_v8 = vmul.f32 %v3373_v52, %v3373_v52  ;;  %2463 = vmatprep.subr.bf16.mxu0 %v2587_v6 }
 0x271   :  { %v1132_v37 = vmul.f32 0.01, %v1030_v40  ;;  %v1032_v62 = vadd.f32 %v1031_v21, %v3343_v31  ;;  %v3375_v30 = vsel %vm1099_vm6, %v1028_v28, %v1131_v7  ;;  %vm1100_vm7 = vcmp.ge.f32.partialorder %v1030_v40, 0.0  ;;  %2464 = vmatpush3.bf16.msra.mxu0 %v2588_v55 }
 0x272   :  { %1290 = vadd.xlane.f32.xlu1 %v1289_v53  ;;  %v1196_v59 = vadd.f32 %v3375_v30, %v3373_v52  ;;  %v1259_v46 = vmul.f32 %v3375_v30, %v3375_v30 }
 0x273   :  { %vm1101_vm8 = vcmp.ge.f32.partialorder %v1032_v62, 0.0  ;;  %v1133_v27 = vmul.f32 0.01, %v1032_v62  ;;  %v3389_v18 = vsel %vm1100_vm7, %v1030_v40, %v1132_v37 }
 0x274   :  { %1197 = vadd.xlane.f32.xlu0 %v1196_v59  ;;  %v1292_v58 = vadd.f32 %v1259_v46, %v1258_v8  ;;  %v1260_v13 = vmul.f32 %v3389_v18, %v3389_v18 }
 0x275   :  { %v3391_v25 = vsel %vm1101_vm8, %v1032_v62, %v1133_v27 }
 0x276   :  { %v1035_v14 = vpop.f32.mrf.mxu1  ;;  %v1199_v11 = vadd.f32 %v3391_v25, %v3389_v18  ;;  %v1261_v57 = vmul.f32 %v3391_v25, %v3391_v25 }
 0x277   :  { %v1036_v12 = vadd.f32 %v1035_v14, %v3337_v49 }
 0x278   :  { %v1037_v56 = vpop.f32.mrf.mxu1  ;;  %1200 = vadd.xlane.f32.xlu1 %v1199_v11  ;;  %1293 = vadd.xlane.f32.xlu0 %v1292_v58  ;;  %v1295_v23 = vadd.f32 %v1261_v57, %v1260_v13 }
 0x279   :  { %v1134_v48 = vmul.f32 0.01, %v1036_v12  ;;  %v1038_v50 = vadd.f32 %v1037_v56, %v3343_v31  ;;  %vm1102_vm9 = vcmp.ge.f32.partialorder %v1036_v12, 0.0 }
 0x27a   :  { %v1039_v60 = vpop.f32.mrf.mxu1 }
 0x27b   :  { %vm1103_vm10 = vcmp.ge.f32.partialorder %v1038_v50, 0.0  ;;  %v1135_v26 = vmul.f32 0.01, %v1038_v50  ;;  %v1040_v34 = vadd.f32 %v1039_v60, %v3337_v49  ;;  %v3403_v5 = vsel %vm1102_vm9, %v1036_v12, %v1134_v48 }
 0x27c   :  { %v1041_v17 = vpop.f32.mrf.mxu1  ;;  %1296 = vadd.xlane.f32.xlu1 %v1295_v23  ;;  %v1262_v43 = vmul.f32 %v3403_v5, %v3403_v5 }
 0x27d   :  { %v1136_v54 = vmul.f32 0.01, %v1040_v34  ;;  %v1042_v42 = vadd.f32 %v1041_v17, %v3343_v31  ;;  %v3405_v2 = vsel %vm1103_vm10, %v1038_v50, %v1135_v26  ;;  %vm1104_vm11 = vcmp.ge.f32.partialorder %v1040_v34, 0.0 }
 0x27e   :  { %v1202_v16 = vadd.f32 %v3405_v2, %v3403_v5  ;;  %v1263_v39 = vmul.f32 %v3405_v2, %v3405_v2 }
 0x27f   :  { %vm1105_vm12 = vcmp.ge.f32.partialorder %v1042_v42, 0.0  ;;  %v1137_v35 = vmul.f32 0.01, %v1042_v42  ;;  %v3414_v47 = vsel %vm1104_vm11, %v1040_v34, %v1136_v54 }
 0x280   :  { %v1045_v33 = vpop.f32.mrf.mxu1  ;;  %1203 = vadd.xlane.f32.xlu0 %v1202_v16  ;;  %v1298_v15 = vadd.f32 %v1263_v39, %v1262_v43  ;;  %v1264_v45 = vmul.f32 %v3414_v47, %v3414_v47  ;;  %v2589_v39 = vld [vmem:[%s4091_s3 + $0x50] sm:$0xff]  }
 0x281   :  { %v1046_v44 = vadd.f32 %v1045_v33, %v3337_v49  ;;  %v3416_v9 = vsel %vm1105_vm12, %v1042_v42, %v1137_v35  ;;  %v2590_v35 = vld [vmem:[%s4091_s3 + $0x10] sm:$0xff]   ;;  %2465 = vmatprep.subr.bf16.mxu0 %v2589_v39 }
 0x282   :  { %v1047_v1 = vpop.f32.mrf.mxu1  ;;  %v1205_v38 = vadd.f32 %v3416_v9, %v3414_v47  ;;  %v1265_v29 = vmul.f32 %v3416_v9, %v3416_v9  ;;  %2466 = vmatpush3.bf16.msra.mxu0 %v2590_v35 }
 0x283   :  { %v1138_v36 = vmul.f32 0.01, %v1046_v44  ;;  %v1048_v24 = vadd.f32 %v1047_v1, %v3343_v31  ;;  %vm1106_vm13 = vcmp.ge.f32.partialorder %v1046_v44, 0.0 }
 0x284   :  { %v1049_v32 = vpop.f32.mrf.mxu1  ;;  %1206 = vadd.xlane.f32.xlu1 %v1205_v38  ;;  %1299 = vadd.xlane.f32.xlu0 %v1298_v15  ;;  %v1301_v40 = vadd.f32 %v1265_v29, %v1264_v45 }
 0x285   :  { %vm1107_vm14 = vcmp.ge.f32.partialorder %v1048_v24, 0.0  ;;  %v1139_v51 = vmul.f32 0.01, %v1048_v24  ;;  %v1050_v28 = vadd.f32 %v1049_v32, %v3337_v49  ;;  %v3433_v37 = vsel %vm1106_vm13, %v1046_v44, %v1138_v36 }
 0x286   :  { %v1051_v7 = vpop.f32.mrf.mxu1  ;;  %v1266_v14 = vmul.f32 %v3433_v37, %v3433_v37 }
 0x287   :  { %v1140_v21 = vmul.f32 0.01, %v1050_v28  ;;  %v1052_v53 = vadd.f32 %v1051_v7, %v3343_v31  ;;  %v3435_v62 = vsel %vm1107_vm14, %v1048_v24, %v1139_v51  ;;  %vm1108_vm15 = vcmp.ge.f32.partialorder %v1050_v28, 0.0 }
 0x288   :  { %v1055_v59 = vpop.f32.mrf.mxu1  ;;  %1302 = vadd.xlane.f32.xlu1 %v1301_v40  ;;  %v1208_v46 = vadd.f32 %v3435_v62, %v3433_v37  ;;  %v1267_v27 = vmul.f32 %v3435_v62, %v3435_v62 }
 0x289   :  { %vm1109_vm0 = vcmp.ge.f32.partialorder %v1052_v53, 0.0  ;;  %v1141_v8 = vmul.f32 0.01, %v1052_v53  ;;  %v1056_v20 = vadd.f32 %v1055_v59, %v3337_v49  ;;  %v3445_v58 = vsel %vm1108_vm15, %v1050_v28, %v1140_v21 }
 0x28a   :  { %1209 = vadd.xlane.f32.xlu0 %v1208_v46  ;;  %v1057_v0 = vpop.f32.mrf.mxu1  ;;  %v1304_v50 = vadd.f32 %v1267_v27, %v1266_v14  ;;  %v1268_v23 = vmul.f32 %v3445_v58, %v3445_v58 }
 0x28b   :  { %v1142_v12 = vmul.f32 0.01, %v1056_v20  ;;  %v1058_v11 = vadd.f32 %v1057_v0, %v3343_v31  ;;  %v3447_v57 = vsel %vm1109_vm0, %v1052_v53, %v1141_v8  ;;  %vm1110_vm1 = vcmp.ge.f32.partialorder %v1056_v20, 0.0 }
 0x28c   :  { %v1059_v56 = vpop.f32.mrf.mxu1  ;;  %v1211_v48 = vadd.f32 %v3447_v57, %v3445_v58  ;;  %v1269_v13 = vmul.f32 %v3447_v57, %v3447_v57 }
 0x28d   :  { %vm1111_vm2 = vcmp.ge.f32.partialorder %v1058_v11, 0.0  ;;  %v1143_v60 = vmul.f32 0.01, %v1058_v11  ;;  %v1060_v26 = vadd.f32 %v1059_v56, %v3337_v49  ;;  %v3457_v42 = vsel %vm1110_vm1, %v1056_v20, %v1142_v12 }
 0x28e   :  { %1212 = vadd.xlane.f32.xlu1 %v1211_v48  ;;  %1305 = vadd.xlane.f32.xlu0 %v1304_v50  ;;  %v1061_v34 = vpop.f32.mrf.mxu1  ;;  %v1307_v43 = vadd.f32 %v1269_v13, %v1268_v23  ;;  %v1270_v36 = vmul.f32 %v3457_v42, %v3457_v42 }
 0x28f   :  { %v1144_v17 = vmul.f32 0.01, %v1060_v26  ;;  %v1062_v54 = vadd.f32 %v1061_v34, %v3343_v31  ;;  %v3459_v16 = vsel %vm1111_vm2, %v1058_v11, %v1143_v60  ;;  %vm1112_vm3 = vcmp.ge.f32.partialorder %v1060_v26, 0.0  ;;  %v2591_v60 = vld [vmem:[%s4091_s3 + $0x48] sm:$0xff]  }
 0x290   :  { %v1065_v33 = vpop.f32.mrf.mxu1  ;;  %v1214_v44 = vadd.f32 %v3459_v16, %v3457_v42  ;;  %v1271_v1 = vmul.f32 %v3459_v16, %v3459_v16  ;;  %2467 = vmatprep.subr.bf16.mxu0 %v2591_v60 }
 0x291   :  { %vm1113_vm4 = vcmp.ge.f32.partialorder %v1062_v54, 0.0  ;;  %v1145_v38 = vmul.f32 0.01, %v1062_v54  ;;  %v1066_v15 = vadd.f32 %v1065_v33, %v3337_v49  ;;  %v3475_v45 = vsel %vm1112_vm3, %v1060_v26, %v1144_v17  ;;  %v2592_v26 = vld [vmem:[%s4091_s3 + $0x8] sm:$0xff]  }
 0x292   :  { %1308 = vadd.xlane.f32.xlu1 %v1307_v43  ;;  %1215 = vadd.xlane.f32.xlu0 %v1214_v44  ;;  %v1067_v29 = vpop.f32.mrf.mxu1  ;;  %v1310_v55 = vadd.f32 %v1271_v1, %v1270_v36  ;;  %v1272_v59 = vmul.f32 %v3475_v45, %v3475_v45 }
 0x293   :  { %v1146_v24 = vmul.f32 0.01, %v1066_v15  ;;  %v1068_v32 = vadd.f32 %v1067_v29, %v3343_v31  ;;  %v3477_v51 = vsel %vm1113_vm4, %v1062_v54, %v1145_v38  ;;  %vm1114_vm5 = vcmp.ge.f32.partialorder %v1066_v15, 0.0  ;;  %2468 = vmatpush3.bf16.msra.mxu0 %v2592_v26 }
 0x294   :  { %v1069_v28 = vpop.f32.mrf.mxu1  ;;  %v1217_v6 = vadd.f32 %v3477_v51, %v3475_v45  ;;  %v1273_v7 = vmul.f32 %v3477_v51, %v3477_v51 }
 0x295   :  { %vm1115_vm6 = vcmp.ge.f32.partialorder %v1068_v32, 0.0  ;;  %v1147_v40 = vmul.f32 0.01, %v1068_v32  ;;  %v1070_v21 = vadd.f32 %v1069_v28, %v3337_v49  ;;  %v3487_v8 = vsel %vm1114_vm5, %v1066_v15, %v1146_v24 }
 0x296   :  { %1218 = vadd.xlane.f32.xlu1 %v1217_v6  ;;  %1311 = vadd.xlane.f32.xlu0 %v1310_v55  ;;  %v1071_v53 = vpop.f32.mrf.mxu1  ;;  %v1313_v14 = vadd.f32 %v1273_v7, %v1272_v59  ;;  %v1274_v13 = vmul.f32 %v3487_v8, %v3487_v8 }
 0x297   :  { %v1148_v46 = vmul.f32 0.01, %v1070_v21  ;;  %v1072_v27 = vadd.f32 %v1071_v53, %v3343_v31  ;;  %v3489_v20 = vsel %vm1115_vm6, %v1068_v32, %v1147_v40  ;;  %vm1116_vm7 = vcmp.ge.f32.partialorder %v1070_v21, 0.0  ;;  %v2593_v53 = vld [vmem:[%s4091_s3 + $0x40] sm:$0xff]  }
 0x298   :  { %v1075_v0 = vpop.f32.mrf.mxu1  ;;  %v1220_v12 = vadd.f32 %v3489_v20, %v3487_v8  ;;  %v1275_v11 = vmul.f32 %v3489_v20, %v3489_v20  ;;  %2469 = vmatprep.subr.bf16.mxu0 %v2593_v53 }
 0x299   :  { %vm1117_vm8 = vcmp.ge.f32.partialorder %v1072_v27, 0.0  ;;  %v1149_v56 = vmul.f32 0.01, %v1072_v27  ;;  %v1076_v48 = vadd.f32 %v1075_v0, %v3337_v49  ;;  %v3506_v17 = vsel %vm1116_vm7, %v1070_v21, %v1148_v46 }
 0x29a   :  { %1314 = vadd.xlane.f32.xlu1 %v1313_v14  ;;  %1221 = vadd.xlane.f32.xlu0 %v1220_v12  ;;  %v1077_v50 = vpop.f32.mrf.mxu1  ;;  %v1316_v33 = vadd.f32 %v1275_v11, %v1274_v13  ;;  %v1276_v15 = vmul.f32 %v3506_v17, %v3506_v17 }
 0x29b   :  { %v1150_v34 = vmul.f32 0.01, %v1076_v48  ;;  %v1078_v23 = vadd.f32 %v1077_v50, %v3343_v31  ;;  %v3508_v54 = vsel %vm1117_vm8, %v1072_v27, %v1149_v56  ;;  %vm1118_vm9 = vcmp.ge.f32.partialorder %v1076_v48, 0.0  ;;  %v2594_v27 = vld [vmem:[%s4091_s3] sm:$0xff]  }
 0x29c   :  { %v1079_v39 = vpop.f32.mrf.mxu1  ;;  %v1223_v35 = vadd.f32 %v3508_v54, %v3506_v17  ;;  %v1277_v43 = vmul.f32 %v3508_v54, %v3508_v54  ;;  %2470 = vmatpush3.bf16.msra.mxu0 %v2594_v27 }
 0x29d   :  { %vm1119_vm10 = vcmp.ge.f32.partialorder %v1078_v23, 0.0  ;;  %v1151_v44 = vmul.f32 0.01, %v1078_v23  ;;  %v1080_v1 = vadd.f32 %v1079_v39, %v3337_v49  ;;  %v3519_v24 = vsel %vm1118_vm9, %v1076_v48, %v1150_v34 }
 0x29e   :  { %1224 = vadd.xlane.f32.xlu1 %v1223_v35  ;;  %1317 = vadd.xlane.f32.xlu0 %v1316_v33  ;;  %v1081_v38 = vpop.f32.mrf.mxu1  ;;  %v1319_v6 = vadd.f32 %v1277_v43, %v1276_v15  ;;  %v1278_v46 = vmul.f32 %v3519_v24, %v3519_v24 }
 0x29f   :  { %v1152_v29 = vmul.f32 0.01, %v1080_v1  ;;  %v1082_v36 = vadd.f32 %v1081_v38, %v3343_v31  ;;  %v3521_v32 = vsel %vm1119_vm10, %v1078_v23, %v1151_v44  ;;  %vm1120_vm11 = vcmp.ge.f32.partialorder %v1080_v1, 0.0 }
 0x2a0   :  { %v1085_v28 = vpop.f32.mrf.mxu1  ;;  %v1226_v55 = vadd.f32 %v3521_v32, %v3519_v24  ;;  %v1279_v7 = vmul.f32 %v3521_v32, %v3521_v32 }
 0x2a1   :  { %vm1121_vm12 = vcmp.ge.f32.partialorder %v1082_v36, 0.0  ;;  %v1153_v40 = vmul.f32 0.01, %v1082_v36  ;;  %v1086_v21 = vadd.f32 %v1085_v28, %v3337_v49  ;;  %v3538_v12 = vsel %vm1120_vm11, %v1080_v1, %v1152_v29 }
 0x2a2   :  { %1320 = vadd.xlane.f32.xlu1 %v1319_v6  ;;  %1227 = vadd.xlane.f32.xlu0 %v1226_v55  ;;  %v1087_v59 = vpop.f32.mrf.mxu1  ;;  %v1322_v50 = vadd.f32 %v1279_v7, %v1278_v46  ;;  %v1280_v23 = vmul.f32 %v3538_v12, %v3538_v12 }
 0x2a3   :  { %v1154_v0 = vmul.f32 0.01, %v1086_v21  ;;  %v1088_v14 = vadd.f32 %v1087_v59, %v3343_v31  ;;  %v3540_v11 = vsel %vm1121_vm12, %v1082_v36, %v1153_v40  ;;  %vm1122_vm13 = vcmp.ge.f32.partialorder %v1086_v21, 0.0 }
 0x2a4   :  { %v1089_v56 = vpop.f32.mrf.mxu1  ;;  %v1229_v48 = vadd.f32 %v3540_v11, %v3538_v12  ;;  %v1281_v13 = vmul.f32 %v3540_v11, %v3540_v11 }
 0x2a5   :  { %vm1123_vm14 = vcmp.ge.f32.partialorder %v1088_v14, 0.0  ;;  %v1155_v60 = vmul.f32 0.01, %v1088_v14  ;;  %v1090_v26 = vadd.f32 %v1089_v56, %v3337_v49  ;;  %v3550_v33 = vsel %vm1122_vm13, %v1086_v21, %v1154_v0 }
 0x2a6   :  { %1230 = vadd.xlane.f32.xlu1 %v1229_v48  ;;  %1323 = vadd.xlane.f32.xlu0 %v1322_v50  ;;  %v1091_v34 = vpop.f32.mrf.mxu1  ;;  %v1325_v44 = vadd.f32 %v1281_v13, %v1280_v23  ;;  %v1282_v15 = vmul.f32 %v3550_v33, %v3550_v33 }
 0x2a7   :  { %v1156_v39 = vmul.f32 0.01, %v1090_v26  ;;  %v1092_v35 = vadd.f32 %v1091_v34, %v3343_v31  ;;  %v3552_v43 = vsel %vm1123_vm14, %v1088_v14, %v1155_v60  ;;  %vm1124_vm15 = vcmp.ge.f32.partialorder %v1090_v26, 0.0 }
 0x2a8   :  { %v1232_v1 = vadd.f32 %v3552_v43, %v3550_v33  ;;  %v1283_v49 = vmul.f32 %v3552_v43, %v3552_v43 }
 0x2a9   :  { %vm1125_vm0 = vcmp.ge.f32.partialorder %v1092_v35, 0.0  ;;  %v1157_v38 = vmul.f32 0.01, %v1092_v35  ;;  %v3560_v31 = vsel %vm1124_vm15, %v1090_v26, %v1156_v39 }
 0x2aa   :  { %1326 = vadd.xlane.f32.xlu1 %v1325_v44  ;;  %1233 = vadd.xlane.f32.xlu0 %v1232_v1  ;;  %v1328_v28 = vadd.f32 %v1283_v49, %v1282_v15  ;;  %v1284_v55 = vmul.f32 %v3560_v31, %v3560_v31 }
 0x2ab   :  { %v3562_v29 = vsel %vm1125_vm0, %v1092_v35, %v1157_v38 }
 0x2ac   :  { %v1235_v36 = vadd.f32 %v3562_v29, %v3560_v31  ;;  %v1285_v6 = vmul.f32 %v3562_v29, %v3562_v29 }
 0x2ae   :  { %1236 = vadd.xlane.f32.xlu1 %v1235_v36  ;;  %1329 = vadd.xlane.f32.xlu0 %v1328_v28  ;;  %v1331_v7 = vadd.f32 %v1285_v6, %v1284_v55  ;;  %v1432_v6 = vsub.s32 4, %v4113_v63 }
 0x2b2   :  { %1332 = vadd.xlane.f32.xlu1 %v1331_v7 }
 0x2f3   :  { %v1192_v40 = vpop.xlane.xlu0 %1191 }
 0x2f4   :  { %v1238_v21 = vmul.f32 0.00390625, %v1192_v40 }
 0x2f6   :  { %v1350_v27 = vmul.f32 %v1238_v21, %v1238_v21 }
 0x2f7   :  { %v1195_v53 = vpop.xlane.xlu1 %1194  ;;  %v1288_v59 = vpop.xlane.xlu0 %1287 }
 0x2f8   :  { %v3570_v46 = vmul.f32 0.00390625, %v1195_v53  ;;  %v1334_v0 = vmul.f32 0.00390625, %v1288_v59 }
 0x2fa   :  { %v1366_v14 = vsub.f32 %v1334_v0, %v1350_v27  ;;  %v1351_v50 = vmul.f32 %v3570_v46, %v3570_v46 }
 0x2fb   :  { %v1291_v56 = vpop.xlane.xlu1 %1290 }
 0x2fc   :  { %v1382_v48 = vmax.f32 %v1366_v14, 0.0  ;;  %v1335_v13 = vmul.f32 0.00390625, %v1291_v56  ;;  %v3586_v14 = vrot.slane %v3333_v4, %v1432_v6 }
 0x2fd   :  { %v1198_v60 = vpop.xlane.xlu0 %1197 }
 0x2fe   :  { %v1398_v26 = vadd.f32 1e-05, %v1382_v48  ;;  %v1367_v34 = vsub.f32 %v1335_v13, %v1351_v50  ;;  %v3574_v23 = vmul.f32 0.00390625, %v1198_v60  ;;  %v3589_v48 = vrot.slane %v3339_v41, %v1432_v6 }
 0x2ff   :  { %v1504_v50 = vsub.s32 5, %v4113_v63 }
 0x300   :  { %2627 = vrsqrt.f32 %v1398_v26  ;;  %v1383_v39 = vmax.f32 %v1367_v34, 0.0  ;;  %v1352_v38 = vmul.f32 %v3574_v23, %v3574_v23 }
 0x301   :  { %v1201_v35 = vpop.xlane.xlu1 %1200  ;;  %v1294_v44 = vpop.xlane.xlu0 %1293 }
 0x302   :  { %v1399_v1 = vadd.f32 1e-05, %v1383_v39  ;;  %v3576_v49 = vmul.f32 0.00390625, %v1201_v35  ;;  %v1336_v15 = vmul.f32 0.00390625, %v1294_v44 }
 0x304   :  { %2629 = vrsqrt.f32 %v1399_v1  ;;  %v1368_v36 = vsub.f32 %v1336_v15, %v1352_v38  ;;  %v1353_v7 = vmul.f32 %v3576_v49, %v3576_v49  ;;  %v3598_v38 = vrot.slane %v3339_v41, %v1504_v50 }
 0x305   :  { %v1297_v28 = vpop.xlane.xlu1 %1296 }
 0x306   :  { %v1384_v55 = vmax.f32 %v1368_v36, 0.0  ;;  %v1337_v40 = vmul.f32 0.00390625, %v1297_v28  ;;  %v3602_v28 = vrot.slane %v3333_v4, %v1504_v50 }
 0x308   :  { %v1400_v53 = vadd.f32 1e-05, %v1384_v55  ;;  %v1369_v59 = vsub.f32 %v1337_v40, %v1353_v7 }
 0x309   :  { %v1204_v27 = vpop.xlane.xlu0 %1203 }
 0x30a   :  { %v3583_v0 = vmul.f32 0.00390625, %v1204_v27  ;;  %2631 = vrsqrt.f32 %v1400_v53  ;;  %v1385_v56 = vmax.f32 %v1369_v59, 0.0 }
 0x30c   :  { %v1401_v13 = vadd.f32 1e-05, %v1385_v56  ;;  %v1354_v35 = vmul.f32 %v3583_v0, %v3583_v0 }
 0x30d   :  { %v1207_v60 = vpop.xlane.xlu1 %1206  ;;  %v1300_v26 = vpop.xlane.xlu0 %1299 }
 0x30e   :  { %v2628_v34 = vpop.eup %2627  ;;  %v3592_v39 = vmul.f32 0.00390625, %v1207_v60  ;;  %v1338_v44 = vmul.f32 0.00390625, %v1300_v26  ;;  %2633 = vrsqrt.f32 %v1401_v13 }
 0x30f   :  { %v1439_v1 = vmul.f32 %v2628_v34, %v3589_v48  ;;  %v1438_v15 = vmul.f32 %v2628_v34, %v3586_v14 }
 0x310   :  { %v1370_v36 = vsub.f32 %v1338_v44, %v1354_v35  ;;  %v1355_v59 = vmul.f32 %v3592_v39, %v3592_v39 }
 0x311   :  { %v1303_v6 = vpop.xlane.xlu1 %1302  ;;  %v1471_v55 = vmul.f32 %v1439_v1, %v1238_v21  ;;  %v1470_v7 = vmul.f32 %v1438_v15, %v1238_v21  ;;  %v2630_v40 = vpop.eup %2629  ;;  %v1543_v60 = vmul.f32 %v1439_v1, %v3351_v3 }
 0x312   :  { %v1386_v53 = vmax.f32 %v1370_v36, 0.0  ;;  %v1339_v27 = vmul.f32 0.00390625, %v1303_v6  ;;  %v1441_v13 = vmul.f32 %v2630_v40, %v3589_v48  ;;  %v1440_v26 = vmul.f32 %v2630_v40, %v3586_v14 }
 0x313   :  { %v1210_v56 = vpop.xlane.xlu0 %1209  ;;  %v1511_v41 = vsub.f32 %v3598_v38, %v1471_v55  ;;  %v1510_v21 = vsub.f32 %v3602_v28, %v1470_v7  ;;  %v1542_v36 = vmul.f32 %v1438_v15, %v3349_v61 }
 0x314   :  { %v1402_v4 = vadd.f32 1e-05, %v1386_v53  ;;  %v1371_v50 = vsub.f32 %v1339_v27, %v1355_v59  ;;  %v3610_v34 = vmul.f32 0.00390625, %v1210_v56  ;;  %v1473_v35 = vmul.f32 %v1441_v13, %v3570_v46 }
 0x315   :  { %v1472_v44 = vmul.f32 %v1440_v26, %v3570_v46  ;;  %v1545_v55 = vmul.f32 %v1441_v13, %v3362_v19  ;;  %v1575_v63 = vadd.f32 %v1543_v60, %v1511_v41  ;;  %v1544_v59 = vmul.f32 %v1440_v26, %v3360_v22 }
 0x316   :  { %2635 = vrsqrt.f32 %v1402_v4  ;;  %v1387_v6 = vmax.f32 %v1371_v50, 0.0  ;;  %v1356_v1 = vmul.f32 %v3610_v34, %v3610_v34  ;;  %v1513_v53 = vsub.f32 %v3598_v38, %v1473_v35 }
 0x317   :  { %v1213_v3 = vpop.xlane.xlu1 %1212  ;;  %v1306_v40 = vpop.xlane.xlu0 %1305  ;;  %v1512_v7 = vsub.f32 %v3602_v28, %v1472_v44  ;;  %v1574_v15 = vadd.f32 %v1542_v36, %v1510_v21 }
 0x318   :  { %v2632_v27 = vpop.eup %2631  ;;  %v1403_v46 = vadd.f32 1e-05, %v1387_v6  ;;  %v3622_v56 = vmul.f32 0.00390625, %v1213_v3  ;;  %v1340_v61 = vmul.f32 0.00390625, %v1306_v40  ;;  %v1577_v4 = vadd.f32 %v1545_v55, %v1513_v53 }
 0x319   :  { %v1576_v19 = vadd.f32 %v1544_v59, %v1512_v7  ;;  %v1443_v13 = vmul.f32 %v2632_v27, %v3589_v48  ;;  %v1442_v41 = vmul.f32 %v2632_v27, %v3586_v14 }
 0x31a   :  { %2637 = vrsqrt.f32 %v1403_v46  ;;  %v1372_v60 = vsub.f32 %v1340_v61, %v1356_v1  ;;  %v1357_v50 = vmul.f32 %v3622_v56, %v3622_v56  ;;  %v1607_v22 = vpack.c.bf16 %v1577_v4, %v1575_v63 }
 0x31b   :  { %v1309_v35 = vpop.xlane.xlu1 %1308  ;;  %v1216_v44 = vpop.xlane.xlu0 %1215  ;;  %v1606_v26 = vpack.c.bf16 %v1576_v19, %v1574_v15  ;;  %v1475_v6 = vmul.f32 %v1443_v13, %v3574_v23  ;;  %v1474_v55 = vmul.f32 %v1442_v41, %v3574_v23  ;;  %v1547_v1 = vmul.f32 %v1443_v13, %v3375_v30 }
 0x31c   :  { %v2634_v3 = vpop.eup %2633  ;;  %v1388_v40 = vmax.f32 %v1372_v60, 0.0  ;;  %v1341_v21 = vmul.f32 0.00390625, %v1309_v35  ;;  %v3629_v36 = vmul.f32 0.00390625, %v1216_v44  ;;  %1786 = vmatprep.mubr.bf16.mxu0 %v1607_v22  ;;  %v1546_v46 = vmul.f32 %v1442_v41, %v3373_v52 }
 0x31d   :  { %v1445_v53 = vmul.f32 %v2634_v3, %v3589_v48  ;;  %v1444_v7 = vmul.f32 %v2634_v3, %v3586_v14  ;;  %1787 = vmatmul.mubr.bf16.vlgmr.msra.gmra.mxu0 %v1606_v26  ;;  %v1515_v63 = vsub.f32 %v3598_v38, %v1475_v6  ;;  %v1514_v30 = vsub.f32 %v3602_v28, %v1474_v55 }
 0x31e   :  { %v1404_v59 = vadd.f32 1e-05, %v1388_v40  ;;  %v1373_v27 = vsub.f32 %v1341_v21, %v1357_v50  ;;  %v1358_v15 = vmul.f32 %v3629_v36, %v3629_v36 }
 0x31f   :  { %v1219_v61 = vpop.xlane.xlu1 %1218  ;;  %v1312_v4 = vpop.xlane.xlu0 %1311  ;;  %v1477_v23 = vmul.f32 %v1445_v53, %v3576_v49  ;;  %v1476_v19 = vmul.f32 %v1444_v7, %v3576_v49  ;;  %v1549_v52 = vmul.f32 %v1445_v53, %v3391_v25  ;;  %v1548_v44 = vmul.f32 %v1444_v7, %v3389_v18 }
 0x320   :  { %2639 = vrsqrt.f32 %v1404_v59  ;;  %v1389_v13 = vmax.f32 %v1373_v27, 0.0  ;;  %v3642_v60 = vmul.f32 0.00390625, %v1219_v61  ;;  %v1342_v50 = vmul.f32 0.00390625, %v1312_v4 }
 0x321   :  { %v1517_v35 = vsub.f32 %v3598_v38, %v1477_v23  ;;  %v1516_v41 = vsub.f32 %v3602_v28, %v1476_v19  ;;  %v1579_v6 = vadd.f32 %v1547_v1, %v1515_v63  ;;  %v1578_v59 = vadd.f32 %v1546_v46, %v1514_v30 }
 0x322   :  { %v1405_v22 = vadd.f32 1e-05, %v1389_v13  ;;  %v1374_v26 = vsub.f32 %v1342_v50, %v1358_v15  ;;  %v1359_v49 = vmul.f32 %v3642_v60, %v3642_v60 }
 0x323   :  { %v2636_v3 = vpop.eup %2635  ;;  %v1315_v40 = vpop.xlane.xlu1 %1314  ;;  %v1581_v55 = vadd.f32 %v1549_v52, %v1517_v35  ;;  %v1580_v27 = vadd.f32 %v1548_v44, %v1516_v41 }
 0x324   :  { %v1222_v21 = vpop.xlane.xlu0 %1221  ;;  %2641 = vrsqrt.f32 %v1405_v22  ;;  %v1390_v61 = vmax.f32 %v1374_v26, 0.0  ;;  %v1343_v4 = vmul.f32 0.00390625, %v1315_v40  ;;  %v1447_v18 = vmul.f32 %v2636_v3, %v3589_v48 }
 0x325   :  { %v3650_v25 = vmul.f32 0.00390625, %v1222_v21  ;;  %v1609_v53 = vpack.c.bf16 %v1581_v55, %v1579_v6  ;;  %v1608_v23 = vpack.c.bf16 %v1580_v27, %v1578_v59  ;;  %v1446_v1 = vmul.f32 %v2636_v3, %v3586_v14 }
 0x326   :  { %v1406_v7 = vadd.f32 1e-05, %v1390_v61  ;;  %v1375_v63 = vsub.f32 %v1343_v4, %v1359_v49  ;;  %v1479_v30 = vmul.f32 %v1447_v18, %v3583_v0  ;;  %v1551_v26 = vmul.f32 %v1447_v18, %v3405_v2 }
 0x327   :  { %v2638_v15 = vpop.eup %2637  ;;  %v1225_v19 = vpop.xlane.xlu1 %1224  ;;  %v1360_v13 = vmul.f32 %v3650_v25, %v3650_v25  ;;  %1794 = vmatprep.mubr.bf16.mxu0 %v1609_v53  ;;  %v1478_v50 = vmul.f32 %v1446_v1, %v3583_v0  ;;  %v1550_v0 = vmul.f32 %v1446_v1, %v3403_v5 }
 0x328   :  { %v1318_v46 = vpop.xlane.xlu0 %1317  ;;  %2643 = vrsqrt.f32 %v1406_v7  ;;  %v1391_v35 = vmax.f32 %v1375_v63, 0.0  ;;  %v3658_v52 = vmul.f32 0.00390625, %v1225_v19  ;;  %1795 = vmatmul.mubr.bf16.gmra.mxu0 %v1608_v23  ;;  %v1449_v44 = vmul.f32 %v2638_v15, %v3589_v48 }
 0x329   :  { %v1344_v41 = vmul.f32 0.00390625, %v1318_v46  ;;  %v1519_v22 = vsub.f32 %v3598_v38, %v1479_v30  ;;  %v1448_v6 = vmul.f32 %v2638_v15, %v3586_v14  ;;  %v1518_v40 = vsub.f32 %v3602_v28, %v1478_v50 }
 0x32a   :  { %v1407_v3 = vadd.f32 1e-05, %v1391_v35  ;;  %v1361_v21 = vmul.f32 %v3658_v52, %v3658_v52  ;;  %v1481_v27 = vmul.f32 %v1449_v44, %v3592_v39  ;;  %v1553_v61 = vmul.f32 %v1449_v44, %v3416_v9 }
 0x32b   :  { %v1376_v49 = vsub.f32 %v1344_v41, %v1360_v13  ;;  %v1321_v55 = vpop.xlane.xlu1 %1320  ;;  %v1480_v4 = vmul.f32 %v1448_v6, %v3592_v39  ;;  %v1583_v5 = vadd.f32 %v1551_v26, %v1519_v22  ;;  %v1552_v63 = vmul.f32 %v1448_v6, %v3414_v47 }
 0x32c   :  { %v1228_v59 = vpop.xlane.xlu0 %1227  ;;  %2645 = vrsqrt.f32 %v1407_v3  ;;  %v1345_v53 = vmul.f32 0.00390625, %v1321_v55  ;;  %v1521_v7 = vsub.f32 %v3598_v38, %v1481_v27  ;;  %v1582_v13 = vadd.f32 %v1550_v0, %v1518_v40 }
 0x32d   :  { %v1392_v2 = vmax.f32 %v1376_v49, 0.0  ;;  %v3671_v23 = vmul.f32 0.00390625, %v1228_v59  ;;  %v2640_v18 = vpop.eup %2639  ;;  %v1520_v1 = vsub.f32 %v3602_v28, %v1480_v4 }
 0x32e   :  { %v1377_v19 = vsub.f32 %v1345_v53, %v1361_v21  ;;  %v1451_v9 = vmul.f32 %v2640_v18, %v3589_v48  ;;  %v1585_v50 = vadd.f32 %v1553_v61, %v1521_v7  ;;  %v1450_v41 = vmul.f32 %v2640_v18, %v3586_v14 }
 0x32f   :  { %v1408_v15 = vadd.f32 1e-05, %v1392_v2  ;;  %v1231_v46 = vpop.xlane.xlu1 %1230  ;;  %v1362_v39 = vmul.f32 %v3671_v23, %v3671_v23  ;;  %v1584_v35 = vadd.f32 %v1552_v63, %v1520_v1 }
 0x330   :  { %v1324_v30 = vpop.xlane.xlu0 %1323  ;;  %v1393_v44 = vmax.f32 %v1377_v19, 0.0  ;;  %v3680_v22 = vmul.f32 0.00390625, %v1231_v46  ;;  %v1611_v6 = vpack.c.bf16 %v1585_v50, %v1583_v5  ;;  %v1483_v49 = vmul.f32 %v1451_v9, %v3610_v34 }
 0x331   :  { %2647 = vrsqrt.f32 %v1408_v15  ;;  %v1346_v26 = vmul.f32 0.00390625, %v1324_v30  ;;  %v2642_v47 = vpop.eup %2641  ;;  %v1610_v3 = vpack.c.bf16 %v1584_v35, %v1582_v13  ;;  %v1555_v40 = vmul.f32 %v1451_v9, %v3435_v62 }
 0x332   :  { %v1409_v0 = vadd.f32 1e-05, %v1393_v44  ;;  %v1363_v55 = vmul.f32 %v3680_v22, %v3680_v22  ;;  %v1453_v59 = vmul.f32 %v2642_v47, %v3589_v48  ;;  %1802 = vmatprep.mubr.bf16.mxu0 %v1611_v6  ;;  %v1523_v4 = vsub.f32 %v3598_v38, %v1483_v49 }
 0x333   :  { %v1378_v21 = vsub.f32 %v1346_v26, %v1362_v39  ;;  %v1327_v27 = vpop.xlane.xlu1 %1326  ;;  %v1452_v2 = vmul.f32 %v2642_v47, %v3586_v14  ;;  %v1482_v53 = vmul.f32 %v1450_v41, %v3610_v34  ;;  %v1554_v18 = vmul.f32 %v1450_v41, %v3433_v37  ;;  %1803 = vmatmul.mubr.bf16.gmra.mxu0 %v1610_v3 }
 0x334   :  { %v1234_v61 = vpop.xlane.xlu0 %1233  ;;  %2649 = vrsqrt.f32 %v1409_v0  ;;  %v1347_v7 = vmul.f32 0.00390625, %v1327_v27  ;;  %v1485_v63 = vmul.f32 %v1453_v59, %v3622_v56  ;;  %v1557_v15 = vmul.f32 %v1453_v59, %v3447_v57 }
 0x335   :  { %v1394_v62 = vmax.f32 %v1378_v21, 0.0  ;;  %v3691_v5 = vmul.f32 0.00390625, %v1234_v61  ;;  %v2644_v1 = vpop.eup %2643  ;;  %v1587_v19 = vadd.f32 %v1555_v40, %v1523_v4  ;;  %v1484_v13 = vmul.f32 %v1452_v2, %v3622_v56 }
 0x336   :  { %v1379_v46 = vsub.f32 %v1347_v7, %v1363_v55  ;;  %v1522_v37 = vsub.f32 %v3602_v28, %v1482_v53  ;;  %v1525_v50 = vsub.f32 %v3598_v38, %v1485_v63  ;;  %v1556_v41 = vmul.f32 %v1452_v2, %v3445_v58 }
 0x337   :  { %v1410_v9 = vadd.f32 1e-05, %v1394_v62  ;;  %v1364_v34 = vmul.f32 %v3691_v5, %v3691_v5  ;;  %v1237_v39 = vpop.xlane.xlu1 %1236  ;;  %v1524_v35 = vsub.f32 %v3602_v28, %v1484_v13  ;;  %v1455_v57 = vmul.f32 %v2644_v1, %v3589_v48 }
 0x338   :  { %v1330_v30 = vpop.xlane.xlu0 %1329  ;;  %v1395_v44 = vmax.f32 %v1379_v46, 0.0  ;;  %v3703_v56 = vmul.f32 0.00390625, %v1237_v39  ;;  %v1589_v6 = vadd.f32 %v1557_v15, %v1525_v50  ;;  %v1586_v3 = vadd.f32 %v1554_v18, %v1522_v37 }
 0x339   :  { %2651 = vrsqrt.f32 %v1410_v9  ;;  %v1348_v26 = vmul.f32 0.00390625, %v1330_v30  ;;  %v2646_v47 = vpop.eup %2645  ;;  %v1588_v49 = vadd.f32 %v1556_v41, %v1524_v35  ;;  %v1487_v40 = vmul.f32 %v1455_v57, %v3629_v36 }
 0x33a   :  { %v1411_v0 = vadd.f32 1e-05, %v1395_v44  ;;  %v1457_v55 = vmul.f32 %v2646_v47, %v3589_v48  ;;  %v1365_v58 = vmul.f32 %v3703_v56, %v3703_v56  ;;  %v1613_v27 = vpack.c.bf16 %v1589_v6, %v1587_v19 }
 0x33b   :  { %v1380_v21 = vsub.f32 %v1348_v26, %v1364_v34  ;;  %v1333_v59 = vpop.xlane.xlu1 %1332  ;;  %v1612_v61 = vpack.c.bf16 %v1588_v49, %v1586_v3  ;;  %v1527_v4 = vsub.f32 %v3598_v38, %v1487_v40  ;;  %v1559_v7 = vmul.f32 %v1455_v57, %v3459_v16 }
 0x33c   :  { %2653 = vrsqrt.f32 %v1411_v0  ;;  %v1349_v53 = vmul.f32 0.00390625, %v1333_v59  ;;  %v1489_v18 = vmul.f32 %v1457_v55, %v3642_v60  ;;  %1810 = vmatprep.mubr.bf16.mxu0 %v1613_v27  ;;  %v1561_v63 = vmul.f32 %v1457_v55, %v3477_v51 }
 0x33d   :  { %v1396_v2 = vmax.f32 %v1380_v21, 0.0  ;;  %v1454_v15 = vmul.f32 %v2644_v1, %v3586_v14  ;;  %v1456_v13 = vmul.f32 %v2646_v47, %v3586_v14  ;;  %1811 = vmatmul.mubr.bf16.gmra.mxu0 %v1612_v61  ;;  %v1591_v37 = vadd.f32 %v1559_v7, %v1527_v4 }
 0x33e   :  { %v2648_v62 = vpop.eup %2647  ;;  %v1381_v19 = vsub.f32 %v1349_v53, %v1365_v58  ;;  %v1529_v46 = vsub.f32 %v3598_v38, %v1489_v18 }
 0x33f   :  { %v1412_v9 = vadd.f32 1e-05, %v1396_v2  ;;  %v1459_v34 = vmul.f32 %v2648_v62, %v3589_v48  ;;  %v1486_v39 = vmul.f32 %v1454_v15, %v3629_v36  ;;  %v1488_v30 = vmul.f32 %v1456_v13, %v3642_v60 }
 0x340   :  { %v1558_v16 = vmul.f32 %v1454_v15, %v3457_v42  ;;  %v1397_v51 = vmax.f32 %v1381_v19, 0.0  ;;  %v1593_v50 = vadd.f32 %v1561_v63, %v1529_v46  ;;  %v1560_v44 = vmul.f32 %v1456_v13, %v3475_v45 }
 0x341   :  { %2655 = vrsqrt.f32 %v1412_v9  ;;  %v1491_v1 = vmul.f32 %v1459_v34, %v3650_v25  ;;  %v2650_v35 = vpop.eup %2649  ;;  %v1526_v41 = vsub.f32 %v3602_v28, %v1486_v39  ;;  %v1528_v57 = vsub.f32 %v3602_v28, %v1488_v30 }
 0x342   :  { %v1458_v26 = vmul.f32 %v2648_v62, %v3586_v14  ;;  %v1413_v47 = vadd.f32 1e-05, %v1397_v51  ;;  %v1615_v36 = vpack.c.bf16 %v1593_v50, %v1591_v37  ;;  %v1461_v60 = vmul.f32 %v2650_v35, %v3589_v48 }
 0x343   :  { %v1590_v6 = vadd.f32 %v1558_v16, %v1526_v41  ;;  %v1592_v42 = vadd.f32 %v1560_v44, %v1528_v57  ;;  %v1460_v3 = vmul.f32 %v2650_v35, %v3586_v14  ;;  %v1531_v0 = vsub.f32 %v3598_v38, %v1491_v1 }
 0x344   :  { %v1490_v49 = vmul.f32 %v1458_v26, %v3650_v25  ;;  %2657 = vrsqrt.f32 %v1413_v47  ;;  %1818 = vmatprep.mubr.bf16.mxu0 %v1615_v36  ;;  %v1493_v40 = vmul.f32 %v1461_v60, %v3658_v52  ;;  %v1563_v55 = vmul.f32 %v1459_v34, %v3489_v20 }
 0x345   :  { %v1614_v45 = vpack.c.bf16 %v1592_v42, %v1590_v6  ;;  %v1492_v58 = vmul.f32 %v1460_v3, %v3658_v52  ;;  %v1565_v61 = vmul.f32 %v1461_v60, %v3508_v54  ;;  %v1562_v53 = vmul.f32 %v1458_v26, %v3487_v8 }
 0x346   :  { %v2652_v21 = vpop.eup %2651  ;;  %v1530_v59 = vsub.f32 %v3602_v28, %v1490_v49  ;;  %v1533_v27 = vsub.f32 %v3598_v38, %v1493_v40  ;;  %v1564_v18 = vmul.f32 %v1460_v3, %v3506_v17  ;;  %v1595_v20 = vadd.f32 %v1563_v55, %v1531_v0 }
 0x347   :  { %v1463_v25 = vmul.f32 %v2652_v21, %v3589_v48  ;;  %v1462_v4 = vmul.f32 %v2652_v21, %v3586_v14  ;;  %1819 = vmatmul.mubr.bf16.gmra.mxu0 %v1614_v45  ;;  %v1532_v2 = vsub.f32 %v3602_v28, %v1492_v58 }
 0x348   :  { %v1597_v62 = vadd.f32 %v1565_v61, %v1533_v27  ;;  %v1594_v63 = vadd.f32 %v1562_v53, %v1530_v59 }
 0x349   :  { %v1495_v52 = vmul.f32 %v1463_v25, %v3671_v23  ;;  %v2654_v7 = vpop.eup %2653  ;;  %v1596_v15 = vadd.f32 %v1564_v18, %v1532_v2  ;;  %v1494_v54 = vmul.f32 %v1462_v4, %v3671_v23  ;;  %v1567_v39 = vmul.f32 %v1463_v25, %v3521_v32 }
 0x34a   :  { %v1617_v13 = vpack.c.bf16 %v1597_v62, %v1595_v20  ;;  %v1465_v9 = vmul.f32 %v2654_v7, %v3589_v48  ;;  %v1464_v19 = vmul.f32 %v2654_v7, %v3586_v14 }
 0x34b   :  { %v1616_v46 = vpack.c.bf16 %v1596_v15, %v1594_v63  ;;  %v1535_v17 = vsub.f32 %v3598_v38, %v1495_v52  ;;  %v1534_v23 = vsub.f32 %v3602_v28, %v1494_v54 }
 0x34c   :  { %1826 = vmatprep.mubr.bf16.mxu0 %v1617_v13  ;;  %v1497_v8 = vmul.f32 %v1465_v9, %v3680_v22  ;;  %v1496_v34 = vmul.f32 %v1464_v19, %v3680_v22  ;;  %v1569_v30 = vmul.f32 %v1465_v9, %v3540_v11  ;;  %v1568_v16 = vmul.f32 %v1464_v19, %v3538_v12 }
 0x34d   :  { %v1566_v22 = vmul.f32 %v1462_v4, %v3519_v24  ;;  %v1599_v41 = vadd.f32 %v1567_v39, %v1535_v17 }
 0x34e   :  { %v2656_v37 = vpop.eup %2655  ;;  %v1537_v51 = vsub.f32 %v3598_v38, %v1497_v8  ;;  %v1536_v50 = vsub.f32 %v3602_v28, %v1496_v34 }
 0x34f   :  { %v1467_v1 = vmul.f32 %v2656_v37, %v3589_v48  ;;  %v1466_v35 = vmul.f32 %v2656_v37, %v3586_v14  ;;  %1827 = vmatmul.mubr.bf16.gmra.mxu0 %v1616_v46  ;;  %v1598_v26 = vadd.f32 %v1566_v22, %v1534_v23 }
 0x350   :  { %v1601_v57 = vadd.f32 %v1569_v30, %v1537_v51  ;;  %v1600_v32 = vadd.f32 %v1568_v16, %v1536_v50 }
 0x351   :  { %v1499_v11 = vmul.f32 %v1467_v1, %v3691_v5  ;;  %v2658_v44 = vpop.eup %2657  ;;  %v1498_v12 = vmul.f32 %v1466_v35, %v3691_v5  ;;  %v1571_v6 = vmul.f32 %v1467_v1, %v3552_v43  ;;  %v1570_v43 = vmul.f32 %v1466_v35, %v3550_v33 }
 0x352   :  { %v1619_v47 = vpack.c.bf16 %v1601_v57, %v1599_v41  ;;  %v1469_v36 = vmul.f32 %v2658_v44, %v3589_v48  ;;  %v1618_v42 = vpack.c.bf16 %v1600_v32, %v1598_v26  ;;  %v1468_v3 = vmul.f32 %v2658_v44, %v3586_v14 }
 0x353   :  { %v1539_v60 = vsub.f32 %v3598_v38, %v1499_v11  ;;  %v1538_v0 = vsub.f32 %v3602_v28, %v1498_v12 }
 0x354   :  { %1834 = vmatprep.mubr.bf16.mxu0 %v1619_v47  ;;  %v1501_v24 = vmul.f32 %v1469_v36, %v3703_v56  ;;  %v1500_v40 = vmul.f32 %v1468_v3, %v3703_v56  ;;  %v1573_v21 = vmul.f32 %v1469_v36, %v3562_v29  ;;  %v1572_v45 = vmul.f32 %v1468_v3, %v3560_v31  ;;  %v4114_v56 = vld [vmem:[#allocation13_spill] sm:$0xff] }
 0x355   :  { %v1603_v49 = vadd.f32 %v1571_v6, %v1539_v60  ;;  %v1602_v55 = vadd.f32 %v1570_v43, %v1538_v0 }
 0x356   :  { %v1541_v5 = vsub.f32 %v3598_v38, %v1501_v24  ;;  %v1540_v48 = vsub.f32 %v3602_v28, %v1500_v40  ;;  %v3773_v38 = vld [vmem:[%s4093_s5] sm:$0xff] }
 0x357   :  { %1835 = vmatmul.mubr.bf16.gmra.mxu0 %v1618_v42  ;;  %v3777_v28 = vrot.slane %v3773_v38, %v4114_v56 }
 0x358   :  { %v1605_v14 = vadd.f32 %v1573_v21, %v1541_v5  ;;  %v1604_v58 = vadd.f32 %v1572_v45, %v1540_v48 }
 0x35a   :  { %v1621_v59 = vpack.c.bf16 %v1605_v14, %v1603_v49  ;;  %v1620_v27 = vpack.c.bf16 %v1604_v58, %v1602_v55 }
 0x35c   :  { %1842 = vmatprep.mubr.bf16.mxu0 %v1621_v59 }
 0x35f   :  { %1843 = vmatmul.mubr.bf16.gmra.mxu0 %v1620_v27 }
 0x3dd   :  { %v2471_v29 = vpop.f32.mrf.mxu0 }
 0x3df   :  { %v2472_v33 = vpop.f32.mrf.mxu0 }
 0x3e0   :  { %v2473_v61 = vadd.f32 %v2472_v33, %v2471_v29 }
 0x3e1   :  { %v2474_v31 = vpop.f32.mrf.mxu0 }
 0x3e2   :  { %v1789_v25 = vadd.f32 %v2473_v61, %v3777_v28 }
 0x3e3   :  { %v2475_v4 = vpop.f32.mrf.mxu0 }
 0x3e4   :  { %v2476_v2 = vadd.f32 %v2475_v4, %v2474_v31  ;;  %vm1851_vm1 = vcmp.ge.f32.partialorder %v1789_v25, 0.0  ;;  %v1867_v53 = vmul.f32 0.01, %v1789_v25 }
 0x3e6   :  { %v1792_v18 = vadd.f32 %v2476_v2, %v3777_v28  ;;  %v3781_v20 = vsel %vm1851_vm1, %v1789_v25, %v1867_v53  ;;  %vm2277_vm1 = vcmask 130112  }
 0x3e7   :  { %1899 = vadd.xlane.f32.xlu0 %v3781_v20  ;;  %v1948_v63 = vmul.f32 %v3781_v20, %v3781_v20 }
 0x3e8   :  { %v2477_v62 = vpop.f32.mrf.mxu0  ;;  %vm1852_vm2 = vcmp.ge.f32.partialorder %v1792_v18, 0.0  ;;  %v1868_v52 = vmul.f32 0.01, %v1792_v18 }
 0x3ea   :  { %v2478_v7 = vpop.f32.mrf.mxu0  ;;  %v3786_v54 = vsel %vm1852_vm2, %v1792_v18, %v1868_v52  ;;  %vm2284_vm2 = vcmask 195712  }
 0x3eb   :  { %v2479_v15 = vadd.f32 %v2478_v7, %v2477_v62  ;;  %1901 = vadd.xlane.f32.xlu1 %v3786_v54  ;;  %1964 = vadd.xlane.f32.xlu0 %v1948_v63  ;;  %v1949_v46 = vmul.f32 %v3786_v54, %v3786_v54 }
 0x3ec   :  { %v2480_v13 = vpop.f32.mrf.mxu0 }
 0x3ed   :  { %v1797_v9 = vadd.f32 %v2479_v15, %v3777_v28 }
 0x3ee   :  { %v2481_v19 = vpop.f32.mrf.mxu0 }
 0x3ef   :  { %v2482_v8 = vadd.f32 %v2481_v19, %v2480_v13  ;;  %vm1853_vm3 = vcmp.ge.f32.partialorder %v1797_v9, 0.0  ;;  %v1869_v17 = vmul.f32 0.01, %v1797_v9  ;;  %1966 = vadd.xlane.f32.xlu1 %v1949_v46 }
 0x3f1   :  { %v1800_v34 = vadd.f32 %v2482_v8, %v3777_v28  ;;  %v3793_v37 = vsel %vm1853_vm3, %v1797_v9, %v1869_v17  ;;  %vm2291_vm3 = vcmask 261312  }
 0x3f2   :  { %1903 = vadd.xlane.f32.xlu0 %v3793_v37  ;;  %v1950_v39 = vmul.f32 %v3793_v37, %v3793_v37 }
 0x3f3   :  { %v1870_v30 = vmul.f32 0.01, %v1800_v34  ;;  %v2483_v23 = vpop.f32.mrf.mxu0  ;;  %vm1854_vm4 = vcmp.ge.f32.partialorder %v1800_v34, 0.0 }
 0x3f4   :  { %1968 = vadd.xlane.f32.xlu1 %v1950_v39 }
 0x3f5   :  { %v2484_v16 = vpop.f32.mrf.mxu0  ;;  %v3798_v50 = vsel %vm1854_vm4, %v1800_v34, %v1870_v30  ;;  %vm2298_vm4 = vcmask 326912  }
 0x3f6   :  { %v2485_v51 = vadd.f32 %v2484_v16, %v2483_v23  ;;  %v1951_v41 = vmul.f32 %v3798_v50, %v3798_v50 }
 0x3f7   :  { %v2486_v1 = vpop.f32.mrf.mxu0 }
 0x3f8   :  { %1905 = vadd.xlane.f32.xlu1 %v3798_v50  ;;  %v1805_v35 = vadd.f32 %v2485_v51, %v3777_v28 }
 0x3f9   :  { %v2487_v22 = vpop.f32.mrf.mxu0 }
 0x3fa   :  { %v2488_v57 = vadd.f32 %v2487_v22, %v2486_v1  ;;  %vm1855_vm5 = vcmp.ge.f32.partialorder %v1805_v35, 0.0  ;;  %v1871_v32 = vmul.f32 0.01, %v1805_v35 }
 0x3fc   :  { %1970 = vadd.xlane.f32.xlu1 %v1951_v41  ;;  %v1808_v11 = vadd.f32 %v2488_v57, %v3777_v28  ;;  %v3805_v44 = vsel %vm1855_vm5, %v1805_v35, %v1871_v32  ;;  %vm2305_vm5 = vcmask 392512  }
 0x3fd   :  { %v2489_v26 = vpop.f32.mrf.mxu0  ;;  %1907 = vadd.xlane.f32.xlu0 %v3805_v44  ;;  %v1952_v12 = vmul.f32 %v3805_v44, %v3805_v44 }
 0x3fe   :  { %vm1856_vm6 = vcmp.ge.f32.partialorder %v1808_v11, 0.0  ;;  %v1872_v47 = vmul.f32 0.01, %v1808_v11 }
 0x3ff   :  { %v2490_v36 = vpop.f32.mrf.mxu0 }
 0x400   :  { %1972 = vadd.xlane.f32.xlu1 %v1952_v12  ;;  %v2491_v60 = vadd.f32 %v2490_v36, %v2489_v26  ;;  %v3810_v6 = vsel %vm1856_vm6, %v1808_v11, %v1872_v47  ;;  %vm2312_vm6 = vcmask 458112  }
 0x401   :  { %v2492_v42 = vpop.f32.mrf.mxu0  ;;  %1909 = vadd.xlane.f32.xlu0 %v3810_v6  ;;  %v1953_v3 = vmul.f32 %v3810_v6, %v3810_v6 }
 0x402   :  { %v1813_v24 = vadd.f32 %v2491_v60, %v3777_v28 }
 0x403   :  { %v2493_v49 = vpop.f32.mrf.mxu0 }
 0x404   :  { %1974 = vadd.xlane.f32.xlu1 %v1953_v3  ;;  %v2494_v40 = vadd.f32 %v2493_v49, %v2492_v42  ;;  %vm1857_vm7 = vcmp.ge.f32.partialorder %v1813_v24, 0.0  ;;  %v1873_v0 = vmul.f32 0.01, %v1813_v24 }
 0x406   :  { %v1816_v5 = vadd.f32 %v2494_v40, %v3777_v28  ;;  %v3817_v48 = vsel %vm1857_vm7, %v1813_v24, %v1873_v0  ;;  %vm2319_vm7 = vcmask 523712  }
 0x407   :  { %v2495_v21 = vpop.f32.mrf.mxu0  ;;  %1911 = vadd.xlane.f32.xlu0 %v3817_v48  ;;  %v1954_v43 = vmul.f32 %v3817_v48, %v3817_v48 }
 0x408   :  { %vm1858_vm8 = vcmp.ge.f32.partialorder %v1816_v5, 0.0  ;;  %v1874_v14 = vmul.f32 0.01, %v1816_v5 }
 0x409   :  { %v2496_v45 = vpop.f32.mrf.mxu0  ;;  %1976 = vadd.xlane.f32.xlu1 %v1954_v43 }
 0x40a   :  { %v2497_v55 = vadd.f32 %v2496_v45, %v2495_v21  ;;  %v3822_v59 = vsel %vm1858_vm8, %v1816_v5, %v1874_v14  ;;  %vm2326_vm8 = vcmask 589312  }
 0x40b   :  { %v2498_v58 = vpop.f32.mrf.mxu0  ;;  %1913 = vadd.xlane.f32.xlu0 %v3822_v59  ;;  %v1955_v29 = vmul.f32 %v3822_v59, %v3822_v59 }
 0x40c   :  { %v1821_v27 = vadd.f32 %v2497_v55, %v3777_v28 }
 0x40d   :  { %v2499_v56 = vpop.f32.mrf.mxu0  ;;  %1978 = vadd.xlane.f32.xlu1 %v1955_v29 }
 0x40e   :  { %v2500_v33 = vadd.f32 %v2499_v56, %v2498_v58  ;;  %vm1859_vm9 = vcmp.ge.f32.partialorder %v1821_v27, 0.0  ;;  %v1875_v61 = vmul.f32 0.01, %v1821_v27 }
 0x40f   :  { %v2501_v31 = vpop.f32.mrf.mxu0 }
 0x410   :  { %v1824_v25 = vadd.f32 %v2500_v33, %v3777_v28  ;;  %v3829_v4 = vsel %vm1859_vm9, %v1821_v27, %v1875_v61  ;;  %vm2333_vm9 = vcmask 654912  }
 0x411   :  { %1915 = vadd.xlane.f32.xlu0 %v3829_v4  ;;  %v2502_v2 = vpop.f32.mrf.mxu0  ;;  %v1956_v53 = vmul.f32 %v3829_v4, %v3829_v4 }
 0x412   :  { %v2503_v18 = vadd.f32 %v2502_v2, %v2501_v31  ;;  %vm1860_vm10 = vcmp.ge.f32.partialorder %v1824_v25, 0.0  ;;  %v1876_v62 = vmul.f32 0.01, %v1824_v25 }
 0x413   :  { %v2504_v52 = vpop.f32.mrf.mxu0  ;;  %1980 = vadd.xlane.f32.xlu1 %v1956_v53 }
 0x414   :  { %v1829_v7 = vadd.f32 %v2503_v18, %v3777_v28  ;;  %v3835_v63 = vsel %vm1860_vm10, %v1824_v25, %v1876_v62  ;;  %vm2340_vm10 = vcmask 720512  }
 0x415   :  { %1917 = vadd.xlane.f32.xlu0 %v3835_v63  ;;  %v2505_v15 = vpop.f32.mrf.mxu0  ;;  %v1957_v13 = vmul.f32 %v3835_v63, %v3835_v63 }
 0x416   :  { %v2506_v9 = vadd.f32 %v2505_v15, %v2504_v52  ;;  %vm1861_vm11 = vcmp.ge.f32.partialorder %v1829_v7, 0.0  ;;  %v1877_v19 = vmul.f32 0.01, %v1829_v7 }
 0x417   :  { %v2507_v46 = vpop.f32.mrf.mxu0  ;;  %1982 = vadd.xlane.f32.xlu1 %v1957_v13 }
 0x418   :  { %v1832_v8 = vadd.f32 %v2506_v9, %v3777_v28  ;;  %v3841_v17 = vsel %vm1861_vm11, %v1829_v7, %v1877_v19  ;;  %vm2347_vm11 = vcmask 786112  }
 0x419   :  { %1919 = vadd.xlane.f32.xlu0 %v3841_v17  ;;  %v2508_v34 = vpop.f32.mrf.mxu0  ;;  %v1958_v39 = vmul.f32 %v3841_v17, %v3841_v17 }
 0x41a   :  { %v2509_v30 = vadd.f32 %v2508_v34, %v2507_v46  ;;  %vm1862_vm12 = vcmp.ge.f32.partialorder %v1832_v8, 0.0  ;;  %v1878_v23 = vmul.f32 0.01, %v1832_v8 }
 0x41b   :  { %v2510_v16 = vpop.f32.mrf.mxu0  ;;  %1984 = vadd.xlane.f32.xlu1 %v1958_v39 }
 0x41c   :  { %v1837_v51 = vadd.f32 %v2509_v30, %v3777_v28  ;;  %v3847_v1 = vsel %vm1862_vm12, %v1832_v8, %v1878_v23  ;;  %vm2354_vm12 = vcmask 851712  }
 0x41d   :  { %1921 = vadd.xlane.f32.xlu0 %v3847_v1  ;;  %v2511_v35 = vpop.f32.mrf.mxu0  ;;  %v1959_v22 = vmul.f32 %v3847_v1, %v3847_v1 }
 0x41e   :  { %v2512_v41 = vadd.f32 %v2511_v35, %v2510_v16  ;;  %vm1863_vm13 = vcmp.ge.f32.partialorder %v1837_v51, 0.0  ;;  %v1879_v57 = vmul.f32 0.01, %v1837_v51 }
 0x41f   :  { %v2513_v32 = vpop.f32.mrf.mxu0  ;;  %1986 = vadd.xlane.f32.xlu1 %v1959_v22 }
 0x420   :  { %v1840_v11 = vadd.f32 %v2512_v41, %v3777_v28  ;;  %v3853_v26 = vsel %vm1863_vm13, %v1837_v51, %v1879_v57  ;;  %vm2361_vm13 = vcmask 917312  }
 0x421   :  { %1923 = vadd.xlane.f32.xlu0 %v3853_v26  ;;  %v2514_v12 = vpop.f32.mrf.mxu0  ;;  %v1960_v47 = vmul.f32 %v3853_v26, %v3853_v26 }
 0x422   :  { %v2515_v36 = vadd.f32 %v2514_v12, %v2513_v32  ;;  %vm1864_vm14 = vcmp.ge.f32.partialorder %v1840_v11, 0.0  ;;  %v1880_v60 = vmul.f32 0.01, %v1840_v11  ;;  %v4115_v12 = vld [vmem:[#allocation16_spill] sm:$0xff] }
 0x423   :  { %v2516_v42 = vpop.f32.mrf.mxu0  ;;  %1988 = vadd.xlane.f32.xlu1 %v1960_v47  ;;  %v3887_v47 = vrot.slane %v3773_v38, %v4115_v12 }
 0x424   :  { %v1845_v3 = vadd.f32 %v2515_v36, %v3777_v28  ;;  %v3859_v24 = vsel %vm1864_vm14, %v1840_v11, %v1880_v60  ;;  %vm2368_vm14 = vcmask 982912  }
 0x425   :  { %1925 = vadd.xlane.f32.xlu0 %v3859_v24  ;;  %v2517_v49 = vpop.f32.mrf.mxu0  ;;  %v1961_v40 = vmul.f32 %v3859_v24, %v3859_v24 }
 0x426   :  { %v2518_v0 = vadd.f32 %v2517_v49, %v2516_v42  ;;  %vm1865_vm15 = vcmp.ge.f32.partialorder %v1845_v3, 0.0  ;;  %v1881_v5 = vmul.f32 0.01, %v1845_v3 }
 0x427   :  { %1990 = vadd.xlane.f32.xlu1 %v1961_v40 }
 0x428   :  { %v1848_v21 = vadd.f32 %v2518_v0, %v3777_v28  ;;  %v3865_v43 = vsel %vm1865_vm15, %v1845_v3, %v1881_v5  ;;  %vm2375_vm15 = vcmask 1048512  }
 0x429   :  { %1927 = vadd.xlane.f32.xlu0 %v3865_v43  ;;  %v1962_v58 = vmul.f32 %v3865_v43, %v3865_v43 }
 0x42a   :  { %vm1866_vm0 = vcmp.ge.f32.partialorder %v1848_v21, 0.0  ;;  %v1882_v45 = vmul.f32 0.01, %v1848_v21 }
 0x42c   :  { %v3868_v14 = vsel %vm1866_vm0, %v1848_v21, %v1882_v45 }
 0x42d   :  { %1929 = vadd.xlane.f32.xlu0 %v3868_v14  ;;  %v1963_v55 = vmul.f32 %v3868_v14, %v3868_v14 }
 0x42f   :  { %1994 = vadd.xlane.f32.xlu1 %v1963_v55 }
 0x431   :  { %1992 = vadd.xlane.f32.xlu0 %v1962_v58  ;;  %v4116_v58 = vld [vmem:[#allocation17_spill] sm:$0xff] }
 0x470   :  { %v1900_v27 = vpop.xlane.xlu0 %1899 }
 0x471   :  { %v1932_v28 = vmul.f32 0.0078125, %v1900_v27  ;;  %v3896_v27 = vrot.slane %v3773_v38, %v4116_v58 }
 0x473   :  { %v2012_v33 = vmul.f32 %v1932_v28, %v1932_v28 }
 0x474   :  { %v1902_v29 = vpop.xlane.xlu1 %1901  ;;  %v1965_v56 = vpop.xlane.xlu0 %1964 }
 0x475   :  { %v1933_v61 = vmul.f32 0.0078125, %v1902_v29  ;;  %v1996_v31 = vmul.f32 0.0078125, %v1965_v56 }
 0x477   :  { %v2028_v25 = vsub.f32 %v1996_v31, %v2012_v33  ;;  %v2013_v53 = vmul.f32 %v1933_v61, %v1933_v61 }
 0x478   :  { %v1967_v2 = vpop.xlane.xlu1 %1966 }
 0x479   :  { %v2044_v18 = vmax.f32 %v2028_v25, 0.0  ;;  %v1997_v62 = vmul.f32 0.0078125, %v1967_v2 }
 0x47b   :  { %v1904_v52 = vpop.xlane.xlu0 %1903  ;;  %v2060_v7 = vadd.f32 1e-05, %v2044_v18  ;;  %v2029_v15 = vsub.f32 %v1997_v62, %v2013_v53 }
 0x47c   :  { %v3875_v13 = vmul.f32 0.0078125, %v1904_v52 }
 0x47d   :  { %v1969_v9 = vpop.xlane.xlu1 %1968  ;;  %2659 = vrsqrt.f32 %v2060_v7  ;;  %v2045_v19 = vmax.f32 %v2029_v15, 0.0  ;;  %v3905_v15 = vrot.slane %v3773_v38, %v3331_v10 }
 0x47e   :  { %v2014_v46 = vmul.f32 %v3875_v13, %v3875_v13  ;;  %v1998_v8 = vmul.f32 0.0078125, %v1969_v9 }
 0x47f   :  { %v2061_v34 = vadd.f32 1e-05, %v2045_v19 }
 0x480   :  { %v2030_v39 = vsub.f32 %v1998_v8, %v2014_v46 }
 0x481   :  { %v1906_v30 = vpop.xlane.xlu1 %1905  ;;  %2661 = vrsqrt.f32 %v2061_v34 }
 0x482   :  { %v2046_v23 = vmax.f32 %v2030_v39, 0.0  ;;  %v3879_v16 = vmul.f32 0.0078125, %v1906_v30 }
 0x484   :  { %v2062_v51 = vadd.f32 1e-05, %v2046_v23  ;;  %v2015_v22 = vmul.f32 %v3879_v16, %v3879_v16 }
 0x485   :  { %v1971_v35 = vpop.xlane.xlu1 %1970 }
 0x486   :  { %2663 = vrsqrt.f32 %v2062_v51  ;;  %v1999_v41 = vmul.f32 0.0078125, %v1971_v35  ;;  %v1908_v57 = vpop.xlane.xlu0 %1907 }
 0x487   :  { %v3883_v32 = vmul.f32 0.0078125, %v1908_v57 }
 0x488   :  { %v2031_v11 = vsub.f32 %v1999_v41, %v2015_v22 }
 0x489   :  { %v1973_v36 = vpop.xlane.xlu1 %1972  ;;  %v2016_v60 = vmul.f32 %v3883_v32, %v3883_v32 }
 0x48a   :  { %v2047_v42 = vmax.f32 %v2031_v11, 0.0  ;;  %v2000_v3 = vmul.f32 0.0078125, %v1973_v36  ;;  %v2660_v49 = vpop.eup %2659  ;;  %v1910_v40 = vpop.xlane.xlu0 %1909 }
 0x48b   :  { %v3891_v5 = vmul.f32 0.0078125, %v1910_v40  ;;  %v2096_v45 = vmul.f32 %v2660_v49, %v3887_v47 }
 0x48c   :  { %v2063_v0 = vadd.f32 1e-05, %v2047_v42  ;;  %v2032_v21 = vsub.f32 %v2000_v3, %v2016_v60 }
 0x48d   :  { %v1975_v55 = vpop.xlane.xlu1 %1974  ;;  %v2017_v29 = vmul.f32 %v3891_v5, %v3891_v5  ;;  %v2112_v25 = vmul.f32 %v2096_v45, %v1932_v28  ;;  %v2148_v7 = vmul.f32 %v2096_v45, %v3781_v20 }
 0x48e   :  { %2665 = vrsqrt.f32 %v2063_v0  ;;  %v2048_v56 = vmax.f32 %v2032_v21, 0.0  ;;  %v2001_v33 = vmul.f32 0.0078125, %v1975_v55  ;;  %v2662_v31 = vpop.eup %2661 }
 0x48f   :  { %v2097_v18 = vmul.f32 %v2662_v31, %v3887_v47  ;;  %v2132_v52 = vsub.f32 %v3896_v27, %v2112_v25 }
 0x490   :  { %v2064_v2 = vadd.f32 1e-05, %v2048_v56  ;;  %v2033_v53 = vsub.f32 %v2001_v33, %v2017_v29  ;;  %v1912_v62 = vpop.xlane.xlu0 %1911 }
 0x491   :  { %v3907_v9 = vmul.f32 0.0078125, %v1912_v62  ;;  %v2113_v46 = vmul.f32 %v2097_v18, %v1933_v61  ;;  %v2164_v34 = vadd.f32 %v2148_v7, %v2132_v52  ;;  %v2149_v39 = vmul.f32 %v2097_v18, %v3786_v54 }
 0x492   :  { %2667 = vrsqrt.f32 %v2064_v2  ;;  %v2049_v19 = vmax.f32 %v2033_v53, 0.0  ;;  %v1977_v28 = vpop.xlane.xlu1 %1976 }
 0x493   :  { %v2664_v8 = vpop.eup %2663  ;;  %v2018_v30 = vmul.f32 %v3907_v9, %v3907_v9  ;;  %v2002_v51 = vmul.f32 0.0078125, %v1977_v28  ;;  %v2133_v20 = vsub.f32 %v3896_v27, %v2113_v46  ;;  %v2184_v10 = vmul.f32 %v3905_v15, %v2164_v34 }
 0x494   :  { %v2065_v23 = vadd.f32 1e-05, %v2049_v19  ;;  %v1914_v35 = vpop.xlane.xlu0 %1913  ;;  %v2098_v38 = vmul.f32 %v2664_v8, %v3887_v47 }
 0x495   :  { %v3915_v22 = vmul.f32 0.0078125, %v1914_v35  ;;  %v2034_v61 = vsub.f32 %v2002_v51, %v2018_v30  ;;  %v2165_v41 = vadd.f32 %v2149_v39, %v2133_v20  ;;  %2200 = vadd.xlane.f32.xlu0 %v2184_v10 }
 0x496   :  { %2669 = vrsqrt.f32 %v2065_v23  ;;  %v1979_v57 = vpop.xlane.xlu1 %1978  ;;  %v2114_v54 = vmul.f32 %v2098_v38, %v3875_v13  ;;  %v2150_v3 = vmul.f32 %v2098_v38, %v3793_v37 }
 0x497   :  { %v2019_v11 = vmul.f32 %v3915_v22, %v3915_v22  ;;  %v2050_v12 = vmax.f32 %v2034_v61, 0.0  ;;  %v2003_v36 = vmul.f32 0.0078125, %v1979_v57  ;;  %v2185_v60 = vmul.f32 %v3905_v15, %v2165_v41 }
 0x498   :  { %v2134_v42 = vsub.f32 %v3896_v27, %v2114_v54 }
 0x499   :  { %v2066_v49 = vadd.f32 1e-05, %v2050_v12  ;;  %v2035_v0 = vsub.f32 %v2003_v36, %v2019_v11  ;;  %2202 = vadd.xlane.f32.xlu1 %v2185_v60 }
 0x49a   :  { %v1916_v40 = vpop.xlane.xlu0 %1915  ;;  %v2166_v55 = vadd.f32 %v2150_v3, %v2134_v42 }
 0x49b   :  { %v2666_v21 = vpop.eup %2665  ;;  %v3923_v45 = vmul.f32 0.0078125, %v1916_v40  ;;  %2671 = vrsqrt.f32 %v2066_v49  ;;  %v2051_v13 = vmax.f32 %v2035_v0, 0.0 }
 0x49c   :  { %v1981_v58 = vpop.xlane.xlu1 %1980  ;;  %v2099_v29 = vmul.f32 %v2666_v21, %v3887_v47  ;;  %v2186_v31 = vmul.f32 %v3905_v15, %v2166_v55 }
 0x49d   :  { %v2020_v56 = vmul.f32 %v3923_v45, %v3923_v45  ;;  %v2004_v33 = vmul.f32 0.0078125, %v1981_v58  ;;  %v2067_v37 = vadd.f32 1e-05, %v2051_v13 }
 0x49e   :  { %v1918_v25 = vpop.xlane.xlu0 %1917  ;;  %v2115_v2 = vmul.f32 %v2099_v29, %v3879_v16  ;;  %2204 = vadd.xlane.f32.xlu0 %v2186_v31  ;;  %v2151_v19 = vmul.f32 %v2099_v29, %v3798_v50 }
 0x49f   :  { %v2668_v53 = vpop.eup %2667  ;;  %v3930_v18 = vmul.f32 0.0078125, %v1918_v25  ;;  %v2036_v62 = vsub.f32 %v2004_v33, %v2020_v56  ;;  %2673 = vrsqrt.f32 %v2067_v37 }
 0x4a0   :  { %v1983_v52 = vpop.xlane.xlu1 %1982  ;;  %v2135_v7 = vsub.f32 %v3896_v27, %v2115_v2  ;;  %v2100_v46 = vmul.f32 %v2668_v53, %v3887_v47 }
 0x4a1   :  { %v2021_v8 = vmul.f32 %v3930_v18, %v3930_v18  ;;  %v2052_v28 = vmax.f32 %v2036_v62, 0.0  ;;  %v2005_v34 = vmul.f32 0.0078125, %v1983_v52 }
 0x4a2   :  { %v1920_v39 = vpop.xlane.xlu0 %1919  ;;  %v2167_v16 = vadd.f32 %v2151_v19, %v2135_v7  ;;  %v2116_v30 = vmul.f32 %v2100_v46, %v3883_v32  ;;  %v2152_v61 = vmul.f32 %v2100_v46, %v3805_v44 }
 0x4a3   :  { %v2670_v23 = vpop.eup %2669  ;;  %v2068_v51 = vadd.f32 1e-05, %v2052_v28  ;;  %v3938_v20 = vmul.f32 0.0078125, %v1920_v39  ;;  %v2037_v35 = vsub.f32 %v2005_v34, %v2021_v8 }
 0x4a4   :  { %v1985_v10 = vpop.xlane.xlu1 %1984  ;;  %v2187_v38 = vmul.f32 %v3905_v15, %v2167_v16  ;;  %v2136_v50 = vsub.f32 %v3896_v27, %v2116_v30  ;;  %v2101_v41 = vmul.f32 %v2670_v23, %v3887_v47 }
 0x4a5   :  { %2675 = vrsqrt.f32 %v2068_v51  ;;  %v2022_v57 = vmul.f32 %v3938_v20, %v3938_v20  ;;  %v2053_v54 = vmax.f32 %v2037_v35, 0.0  ;;  %v2006_v32 = vmul.f32 0.0078125, %v1985_v10 }
 0x4a6   :  { %v1922_v11 = vpop.xlane.xlu0 %1921  ;;  %2206 = vadd.xlane.f32.xlu1 %v2187_v38  ;;  %v2168_v12 = vadd.f32 %v2152_v61, %v2136_v50  ;;  %v2117_v36 = vmul.f32 %v2101_v41, %v3891_v5  ;;  %v2153_v0 = vmul.f32 %v2101_v41, %v3810_v6 }
 0x4a7   :  { %v2069_v60 = vadd.f32 1e-05, %v2053_v54  ;;  %v3947_v42 = vmul.f32 0.0078125, %v1922_v11  ;;  %v2038_v3 = vsub.f32 %v2006_v32, %v2022_v57 }
 0x4a8   :  { %v1987_v49 = vpop.xlane.xlu1 %1986  ;;  %v2188_v44 = vmul.f32 %v3905_v15, %v2168_v12  ;;  %v2137_v40 = vsub.f32 %v3896_v27, %v2117_v36  ;;  %v2672_v21 = vpop.eup %2671 }
 0x4a9   :  { %2677 = vrsqrt.f32 %v2069_v60  ;;  %v2023_v55 = vmul.f32 %v3947_v42, %v3947_v42  ;;  %v2054_v13 = vmax.f32 %v2038_v3, 0.0  ;;  %v2007_v58 = vmul.f32 0.0078125, %v1987_v49 }
 0x4aa   :  { %v1924_v29 = vpop.xlane.xlu0 %1923  ;;  %2208 = vadd.xlane.f32.xlu0 %v2188_v44  ;;  %v2169_v5 = vadd.f32 %v2153_v0, %v2137_v40  ;;  %v2102_v56 = vmul.f32 %v2672_v21, %v3887_v47 }
 0x4ab   :  { %v2070_v33 = vadd.f32 1e-05, %v2054_v13  ;;  %v3955_v31 = vmul.f32 0.0078125, %v1924_v29  ;;  %v2039_v37 = vsub.f32 %v2007_v58, %v2023_v55 }
 0x4ac   :  { %v1989_v25 = vpop.xlane.xlu1 %1988  ;;  %v2189_v2 = vmul.f32 %v3905_v15, %v2169_v5  ;;  %v2118_v6 = vmul.f32 %v2102_v56, %v3907_v9  ;;  %v2674_v53 = vpop.eup %2673  ;;  %v2154_v8 = vmul.f32 %v2102_v56, %v3817_v48 }
 0x4ad   :  { %2679 = vrsqrt.f32 %v2070_v33  ;;  %v2024_v62 = vmul.f32 %v3955_v31, %v3955_v31  ;;  %v2055_v52 = vmax.f32 %v2039_v37, 0.0  ;;  %v2008_v7 = vmul.f32 0.0078125, %v1989_v25 }
 0x4ae   :  { %v1926_v19 = vpop.xlane.xlu0 %1925  ;;  %2210 = vadd.xlane.f32.xlu1 %v2189_v2  ;;  %v2138_v46 = vsub.f32 %v3896_v27, %v2118_v6  ;;  %v2103_v28 = vmul.f32 %v2674_v53, %v3887_v47 }
 0x4af   :  { %v2071_v34 = vadd.f32 1e-05, %v2055_v52  ;;  %v3964_v39 = vmul.f32 0.0078125, %v1926_v19  ;;  %v2040_v16 = vsub.f32 %v2008_v7, %v2024_v62 }
 0x4b0   :  { %v1991_v9 = vpop.xlane.xlu1 %1990  ;;  %v2170_v30 = vadd.f32 %v2154_v8, %v2138_v46  ;;  %v2119_v23 = vmul.f32 %v2103_v28, %v3915_v22  ;;  %v2155_v41 = vmul.f32 %v2103_v28, %v3822_v59 }
 0x4b1   :  { %2681 = vrsqrt.f32 %v2071_v34  ;;  %v2025_v51 = vmul.f32 %v3964_v39, %v3964_v39  ;;  %v2056_v35 = vmax.f32 %v2040_v16, 0.0  ;;  %v2009_v10 = vmul.f32 0.0078125, %v1991_v9 }
 0x4b2   :  { %v2676_v38 = vpop.eup %2675  ;;  %v1928_v50 = vpop.xlane.xlu0 %1927  ;;  %v2190_v48 = vmul.f32 %v3905_v15, %v2170_v30  ;;  %v2139_v61 = vsub.f32 %v3896_v27, %v2119_v23 }
 0x4b3   :  { %v2072_v57 = vadd.f32 1e-05, %v2056_v35  ;;  %v2041_v54 = vsub.f32 %v2009_v10, %v2025_v51  ;;  %v2104_v32 = vmul.f32 %v2676_v38, %v3887_v47  ;;  %v3974_v60 = vmul.f32 0.0078125, %v1928_v50 }
 0x4b4   :  { %2212 = vadd.xlane.f32.xlu0 %v2190_v48  ;;  %v2171_v22 = vadd.f32 %v2155_v41, %v2139_v61 }
 0x4b5   :  { %2683 = vrsqrt.f32 %v2072_v57  ;;  %v2057_v11 = vmax.f32 %v2041_v54, 0.0  ;;  %v2120_v12 = vmul.f32 %v2104_v32, %v3923_v45  ;;  %v2156_v44 = vmul.f32 %v2104_v32, %v3829_v4 }
 0x4b6   :  { %v2678_v36 = vpop.eup %2677  ;;  %v1930_v3 = vpop.xlane.xlu0 %1929  ;;  %v2191_v49 = vmul.f32 %v3905_v15, %v2171_v22  ;;  %v2026_v5 = vmul.f32 %v3974_v60, %v3974_v60 }
 0x4b7   :  { %v2073_v40 = vadd.f32 1e-05, %v2057_v11  ;;  %v3978_v59 = vmul.f32 0.0078125, %v1930_v3  ;;  %v2140_v0 = vsub.f32 %v3896_v27, %v2120_v12  ;;  %v2105_v21 = vmul.f32 %v2678_v36, %v3887_v47 }
 0x4b8   :  { %v1995_v55 = vpop.xlane.xlu1 %1994  ;;  %2214 = vadd.xlane.f32.xlu1 %v2191_v49 }
 0x4b9   :  { %2685 = vrsqrt.f32 %v2073_v40  ;;  %v2027_v45 = vmul.f32 %v3978_v59, %v3978_v59  ;;  %v2011_v13 = vmul.f32 0.0078125, %v1995_v55  ;;  %v2172_v58 = vadd.f32 %v2156_v44, %v2140_v0 }
 0x4ba   :  { %v2680_v29 = vpop.eup %2679  ;;  %v1993_v4 = vpop.xlane.xlu0 %1992  ;;  %v2121_v56 = vmul.f32 %v2105_v21, %v3930_v18  ;;  %v2157_v53 = vmul.f32 %v2105_v21, %v3835_v63 }
 0x4bb   :  { %v2043_v33 = vsub.f32 %v2011_v13, %v2027_v45  ;;  %v2010_v37 = vmul.f32 0.0078125, %v1993_v4  ;;  %v2192_v25 = vmul.f32 %v3905_v15, %v2172_v58  ;;  %v2106_v2 = vmul.f32 %v2680_v29, %v3887_v47 }
 0x4bc   :  { %v2141_v6 = vsub.f32 %v3896_v27, %v2121_v56  ;;  %v4117_v4 = vlaneseq }
 0x4bd   :  { %v2059_v62 = vmax.f32 %v2043_v33, 0.0  ;;  %v2042_v52 = vsub.f32 %v2010_v37, %v2026_v5  ;;  %2216 = vadd.xlane.f32.xlu0 %v2192_v25  ;;  %v2122_v7 = vmul.f32 %v2106_v2, %v3938_v20  ;;  %v2158_v8 = vmul.f32 %v2106_v2, %v3841_v17 }
 0x4be   :  { %v2682_v19 = vpop.eup %2681  ;;  %v2173_v46 = vadd.f32 %v2157_v53, %v2141_v6  ;;  %v4031_v2 = vstv %s4094_s6  ;;  %v4118_v53 = vld [vmem:[#allocation12_spill] sm:$0xff]  ;;  %s2764_s6 = smov [#allocation8]  }
 0x4bf   :  { %v2075_v18 = vadd.f32 1e-05, %v2059_v62  ;;  %v2058_v28 = vmax.f32 %v2042_v52, 0.0  ;;  %v2142_v34 = vsub.f32 %v3896_v27, %v2122_v7  ;;  %v2107_v16 = vmul.f32 %v2682_v19, %v3887_v47  ;;  %s2385_s30 = sshll.u32 %s2764_s6, 4  ;;  %s2386_s30 = int_to_ptr.vmem [resolvable:$true] %s2385_s30 }
 0x4c0   :  { %v2193_v9 = vmul.f32 %v3905_v15, %v2173_v46  ;;  %s2733_s8 = scalar_lea.vmem %s2386_s30, 16  ;;  %s2737_s9 = scalar_lea.vmem %s2386_s30, 32 }
 0x4c1   :  { %2687 = vrsqrt.f32 %v2075_v18  ;;  %v2074_v30 = vadd.f32 1e-05, %v2058_v28  ;;  %v2174_v63 = vadd.f32 %v2158_v8, %v2142_v34  ;;  %v2123_v23 = vmul.f32 %v2107_v16, %v3947_v42  ;;  %p2734_p10 = scmp.ne.s32.totalorder %s2386_s30, %s2733_s8  ;;  %p2738_p11 = scmp.lt.s32.totalorder %s2386_s30, %s2386_s30 }
 0x4c2   :  { %v2684_v51 = vpop.eup %2683  ;;  %2218 = vadd.xlane.f32.xlu1 %v2193_v9  ;;  %v2159_v20 = vmul.f32 %v2107_v16, %v3847_v1  ;;  %p2739_p12 = scmp.lt.s32.totalorder %s2737_s9, %s2733_s8 }
 0x4c3   :  { %2689 = vrsqrt.f32 %v2074_v30  ;;  %v2194_v17 = vmul.f32 %v3905_v15, %v2174_v63  ;;  %v2143_v35 = vsub.f32 %v3896_v27, %v2123_v23  ;;  %v2108_v10 = vmul.f32 %v2684_v51, %v3887_v47 }
 0x4c4   :  { %p2740_p13 = por %p2739_p12, %p2738_p11 }
 0x4c5   :  { %2220 = vadd.xlane.f32.xlu0 %v2194_v17  ;;  %v2175_v38 = vadd.f32 %v2159_v20, %v2143_v35  ;;  %v2124_v50 = vmul.f32 %v2108_v10, %v3955_v31  ;;  %v2160_v41 = vmul.f32 %v2108_v10, %v3853_v26 }
 0x4c6   :  { %v2686_v48 = vpop.eup %2685  ;;  %p2741_p0 = pnand %p2740_p13, %p2734_p10 }
 0x4c7   :  { %v2195_v61 = vmul.f32 %v3905_v15, %v2175_v38  ;;  %v2144_v42 = vsub.f32 %v3896_v27, %v2124_v50  ;;  %v2109_v1 = vmul.f32 %v2686_v48, %v3887_v47 }
 0x4c9   :  { %2222 = vadd.xlane.f32.xlu1 %v2195_v61  ;;  %v2176_v57 = vadd.f32 %v2160_v41, %v2144_v42  ;;  %v2125_v54 = vmul.f32 %v2109_v1, %v3964_v39  ;;  %v2161_v11 = vmul.f32 %v2109_v1, %v3859_v24 }
 0x4cb   :  { %v2196_v32 = vmul.f32 %v3905_v15, %v2176_v57  ;;  %v2145_v22 = vsub.f32 %v3896_v27, %v2125_v54 }
 0x4cd   :  { %2224 = vadd.xlane.f32.xlu0 %v2196_v32  ;;  %v2177_v31 = vadd.f32 %v2161_v11, %v2145_v22 }
 0x4ce   :  { %v2688_v12 = vpop.eup %2687 }
 0x4cf   :  { %v2197_v36 = vmul.f32 %v3905_v15, %v2177_v31  ;;  %v2111_v3 = vmul.f32 %v2688_v12, %v3887_v47 }
 0x4d0   :  { %v2690_v26 = vpop.eup %2689 }
 0x4d1   :  { %2226 = vadd.xlane.f32.xlu1 %v2197_v36  ;;  %v2127_v49 = vmul.f32 %v2111_v3, %v3978_v59  ;;  %v2110_v44 = vmul.f32 %v2690_v26, %v3887_v47  ;;  %v2163_v40 = vmul.f32 %v2111_v3, %v3868_v14  ;;  %v4022_v14 = vand.u32 127, %v4117_v4 }
 0x4d3   :  { %v2147_v39 = vsub.f32 %v3896_v27, %v2127_v49  ;;  %v2126_v0 = vmul.f32 %v2110_v44, %v3974_v60  ;;  %v2162_v55 = vmul.f32 %v2110_v44, %v3865_v43  ;;  %v2279_v43 = vadd.s32 4294967280, %v4022_v14 }
 0x4d4   :  { %v2286_v33 = vadd.s32 4294967272, %v4022_v14  ;;  %v2293_v37 = vadd.s32 4294967264, %v4022_v14  ;;  %v2300_v6 = vadd.s32 4294967256, %v4022_v14  ;;  %v2270_v62 = vsub.s32 %v4022_v14, %v4118_v53 }
 0x4d5   :  { %v2179_v24 = vadd.f32 %v2163_v40, %v2147_v39  ;;  %v2146_v21 = vsub.f32 %v3896_v27, %v2126_v0  ;;  %v2272_v27 = vadd.s32 4294967288, %v4022_v14  ;;  %v2307_v7 = vadd.s32 4294967248, %v4022_v14 }
 0x4d6   :  { %v2282_v19 = vsub.s32 %v2279_v43, %v4118_v53  ;;  %v2314_v46 = vadd.s32 4294967240, %v4022_v14  ;;  %v2289_v18 = vsub.s32 %v2286_v33, %v4118_v53  ;;  %v2296_v28 = vsub.s32 %v2293_v37, %v4118_v53 }
 0x4d7   :  { %v2199_v45 = vmul.f32 %v3905_v15, %v2179_v24  ;;  %v2178_v13 = vadd.f32 %v2162_v55, %v2146_v21  ;;  %v2275_v52 = vsub.s32 %v2272_v27, %v4118_v53  ;;  %v2303_v30 = vsub.s32 %v2300_v6, %v4118_v53 }
 0x4d8   :  { %v2321_v63 = vadd.s32 4294967232, %v4022_v14  ;;  %v2310_v20 = vsub.s32 %v2307_v7, %v4118_v53  ;;  %v2317_v35 = vsub.s32 %v2314_v46, %v4118_v53  ;;  %v2328_v10 = vadd.s32 4294967224, %v4022_v14 }
 0x4d9   :  { %2230 = vadd.xlane.f32.xlu1 %v2199_v45  ;;  %v2198_v58 = vmul.f32 %v3905_v15, %v2178_v13  ;;  %v2335_v38 = vadd.s32 4294967216, %v4022_v14  ;;  %v2342_v42 = vadd.s32 4294967208, %v4022_v14  ;;  %v2349_v32 = vadd.s32 4294967200, %v4022_v14 }
 0x4da   :  { %v2324_v54 = vsub.s32 %v2321_v63, %v4118_v53  ;;  %v2356_v12 = vadd.s32 4294967192, %v4022_v14  ;;  %v2331_v26 = vsub.s32 %v2328_v10, %v4118_v53  ;;  %v2363_v27 = vadd.s32 4294967184, %v4022_v14 }
 0x4db   :  { %2228 = vadd.xlane.f32.xlu0 %v2198_v58  ;;  %v2338_v49 = vsub.s32 %v2335_v38, %v4118_v53  ;;  %v2345_v0 = vsub.s32 %v2342_v42, %v4118_v53  ;;  %v2352_v58 = vsub.s32 %v2349_v32, %v4118_v53 }
 0x51e   :  { %v2201_v59 = vpop.xlane.xlu0 %2200 }
 0x51f   :  { %v2234_v23 = vadd.f32 %v4031_v2, %v2201_v59 }
 0x521   :  { %v2271_v22 = vrot.slane %v2234_v23, %v2270_v62 }
 0x522   :  { %v2203_v47 = vpop.xlane.xlu1 %2202 }
 0x523   :  { %v2235_v8 = vadd.f32 %v4031_v2, %v2203_v47 }
 0x525   :  { %v2276_v50 = vrot.slane %v2235_v8, %v2275_v52  ;;  %v2366_v8 = vsub.s32 %v2363_v27, %v4118_v53 }
 0x527   :  { %v2205_v29 = vpop.xlane.xlu0 %2204  ;;  %v2278_v44 = vsel %vm2277_vm1, %v2276_v50, %v2271_v22 }
 0x528   :  { %v2236_v9 = vadd.f32 %v4031_v2, %v2205_v29 }
 0x52a   :  { %v2283_v1 = vrot.slane %v2236_v9, %v2282_v19 }
 0x52c   :  { %v2285_v55 = vsel %vm2284_vm2, %v2283_v1, %v2278_v44 }
 0x52f   :  { %v2207_v5 = vpop.xlane.xlu1 %2206 }
 0x530   :  { %v2237_v51 = vadd.f32 %v4031_v2, %v2207_v5  ;;  %v2359_v5 = vsub.s32 %v2356_v12, %v4118_v53 }
 0x532   :  { %v2290_v11 = vrot.slane %v2237_v51, %v2289_v18 }
 0x533   :  { %v2209_v60 = vpop.xlane.xlu0 %2208 }
 0x534   :  { %v2238_v17 = vadd.f32 %v4031_v2, %v2209_v60  ;;  %v2292_v59 = vsel %vm2291_vm3, %v2290_v11, %v2285_v55 }
 0x536   :  { %v2297_v36 = vrot.slane %v2238_v17, %v2296_v28 }
 0x537   :  { %v2211_v56 = vpop.xlane.xlu1 %2210 }
 0x538   :  { %v2239_v48 = vadd.f32 %v4031_v2, %v2211_v56  ;;  %v2299_v4 = vsel %vm2298_vm4, %v2297_v36, %v2292_v59 }
 0x53a   :  { %v2304_v39 = vrot.slane %v2239_v48, %v2303_v30 }
 0x53c   :  { %v2306_v43 = vsel %vm2305_vm5, %v2304_v39, %v2299_v4 }
 0x53d   :  { %v2213_v25 = vpop.xlane.xlu0 %2212 }
 0x53e   :  { %v2240_v57 = vadd.f32 %v4031_v2, %v2213_v25  ;;  %v2370_v25 = vadd.s32 4294967176, %v4022_v14 }
 0x540   :  { %v2311_v45 = vrot.slane %v2240_v57, %v2310_v20  ;;  %v2373_v14 = vsub.s32 %v2370_v25, %v4118_v53 }
 0x541   :  { %v2215_v15 = vpop.xlane.xlu1 %2214 }
 0x542   :  { %v2241_v31 = vadd.f32 %v4031_v2, %v2215_v15  ;;  %v2313_v15 = vsel %vm2312_vm6, %v2311_v45, %v2306_v43 }
 0x544   :  { %v2318_v47 = vrot.slane %v2241_v31, %v2317_v35 }
 0x546   :  { %v2217_v34 = vpop.xlane.xlu0 %2216  ;;  %v2320_v62 = vsel %vm2319_vm7, %v2318_v47, %v2313_v15 }
 0x547   :  { %v2242_v3 = vadd.f32 %v4031_v2, %v2217_v34 }
 0x549   :  { %v2325_v60 = vrot.slane %v2242_v3, %v2324_v54 }
 0x54b   :  { %v2219_v16 = vpop.xlane.xlu1 %2218  ;;  %v2327_v19 = vsel %vm2326_vm8, %v2325_v60, %v2320_v62 }
 0x54c   :  { %v2243_v40 = vadd.f32 %v4031_v2, %v2219_v16 }
 0x54e   :  { %v2221_v61 = vpop.xlane.xlu0 %2220  ;;  %v2332_v33 = vrot.slane %v2243_v40, %v2331_v26 }
 0x54f   :  { %v2244_v13 = vadd.f32 %v4031_v2, %v2221_v61 }
 0x550   :  { %v2334_v18 = vsel %vm2333_vm9, %v2332_v33, %v2327_v19 }
 0x551   :  { %v2339_v6 = vrot.slane %v2244_v13, %v2338_v49 }
 0x552   :  { %v2223_v41 = vpop.xlane.xlu1 %2222 }
 0x553   :  { %v2245_v29 = vadd.f32 %v4031_v2, %v2223_v41  ;;  %v2341_v9 = vsel %vm2340_vm10, %v2339_v6, %v2334_v18 }
 0x555   :  { %v2346_v52 = vrot.slane %v2245_v29, %v2345_v0 }
 0x556   :  { %v2225_v24 = vpop.xlane.xlu0 %2224 }
 0x557   :  { %v2246_v56 = vadd.f32 %v4031_v2, %v2225_v24  ;;  %v2348_v63 = vsel %vm2347_vm11, %v2346_v52, %v2341_v9 }
 0x559   :  { %v2353_v46 = vrot.slane %v2246_v56, %v2352_v58 }
 0x55a   :  { %v2227_v21 = vpop.xlane.xlu1 %2226 }
 0x55b   :  { %v2247_v37 = vadd.f32 %v4031_v2, %v2227_v21  ;;  %v2355_v23 = vsel %vm2354_vm12, %v2353_v46, %v2348_v63 }
 0x55d   :  { %v2360_v28 = vrot.slane %v2247_v37, %v2359_v5 }
 0x55f   :  { %v2362_v20 = vsel %vm2361_vm13, %v2360_v28, %v2355_v23 }
 0x562   :  { %v2231_v7 = vpop.xlane.xlu1 %2230 }
 0x563   :  { %v2249_v34 = vadd.f32 %v4031_v2, %v2231_v7 }
 0x564   :  { %v2229_v16 = vpop.xlane.xlu0 %2228 }
 0x565   :  { %v2248_v30 = vadd.f32 %v4031_v2, %v2229_v16  ;;  %v2374_v17 = vrot.slane %v2249_v34, %v2373_v14 }
 0x567   :  { %v2367_v51 = vrot.slane %v2248_v30, %v2366_v8 }
 0x569   :  { %v2369_v35 = vsel %vm2368_vm14, %v2367_v51, %v2362_v20 }
 0x56a   :  { %v2376_v10 = vsel %vm2375_vm15, %v2374_v17, %v2369_v35 }
 0x56b   :  { %2378 = vst [vmem:[#allocation8] sm:$0x1] %v2376_v10 }
 0x56c   :  { %2744 = shalt.err (!%p2741_p0)
}
 0x56d   :  { %2388 = dma.vmem_to_hbm [thread:$0]  %s2386_s30, 16, %s4095_s7, [#allocation5]  }
 0x56e   :  { %2757 = dma.done.wait [#allocation5], 16  }
 0x56f   :  { %2758 = vsyncadd [#allocation5], 4294967280 }
 0x570   :  { %2392 = vsyncpa [#allocation4], 1 }
 0x571   :  { %2393 = vsyncpa [#allocation7], 1 }
 0x572   :  { %2394 = vsyncpa [#allocation5], 1 }

</bundles_post_ra>
